<compile_context>
chip_gen: v5e
topology: v5e:2x2
jax: 0.10.0
libtpu: 0.0.40
codegen_flags: <defaults>
</compile_context>

<pallas_src>
import functools

import numpy as np
import jax
import jax.numpy as jnp
from jax import lax
from jax.experimental import pallas as pl
from jax.experimental.pallas import tpu as pltpu


# ------------------------------ Pallas kernel -------------------------------

def _bottleneck_kernel(x_ref, wr_ref, wc_ref, we_ref, o_ref, *scratch, H, W):
    """Fused ResNeXt bottleneck on a (rows, lanes) slab.

    x_ref : (RB, P*Cin)      f32   rows = (image, h, w) row-major
    wr_ref: (P*Cin, P*D)     bf16  1x1 reduce weight (block-diag over P images)
    wc_ref: (9*P*D, P*D)     bf16  stacked 3x3 tap weights (block-diag)
    we_ref: (P*D, P*Cout)    bf16  1x1 expand weight (block-diag)
    o_ref : (RB, P*Cout)     f32
    scratch (only when fused): (RB, 9*P*D) bf16 staging slab for the tap lhs.
    """
    RB = x_ref.shape[0]
    PD = wr_ref.shape[1]
    fuse = len(scratch) == 1

    # ---- conv_reduce (1x1) + ReLU : bf16 MXU operands, f32 accumulation ----
    t = jnp.dot(x_ref[...].astype(jnp.bfloat16), wr_ref[...],
                preferred_element_type=jnp.float32)
    t = jnp.maximum(t, 0.0)                          # (RB, PD) f32

    # ---- hoisted spatial coordinates & border masks (built once) -----------
    r = lax.broadcasted_iota(jnp.int32, (RB, PD), 0)
    if (H & (H - 1)) == 0 and (W & (W - 1)) == 0:
        # powers of two -> single-op shifts/ands instead of integer div/mod
        w = r & (W - 1)
        h = (r >> (W.bit_length() - 1)) & (H - 1)
    else:
        # TODO(synk): non-pow2 H/W falls back to VPU integer div/mod.
        hw = r % (H * W)
        h = hw // W
        w = hw % W
    m_top, m_bot = h >= 1, h < (H - 1)
    m_left, m_right = w >= 1, w < (W - 1)

    def tap(dy, dx):
        off = dy * W + dx
        # circular-roll wrap rows are exactly the rows zeroed by the masks
        t_s = t if off == 0 else pltpu.roll(t, shift=(-off) % RB, axis=0)
        m = None
        if dy:
            m = m_top if dy < 0 else m_bot
        if dx:
            mx = m_left if dx < 0 else m_right
            m = mx if m is None else (m & mx)
        if m is not None:
            t_s = jnp.where(m, t_s, 0.0)
        # TODO(synk): rolling/masking a pre-cast bf16 copy would halve XLU roll
        # volume; kept f32 here because packed-bf16 sublane rotate lowering is
        # not guaranteed on every TPU generation.
        return t_s.astype(jnp.bfloat16)

    # ---- grouped 3x3 conv (padding=1, stride=1) + ReLU ----------------------
    if fuse:
        # Stage the 9 shifted/masked taps lane-aligned (multiples of 128) into
        # VMEM and do ONE K = 9*PD matmul (MXU-side accumulation).
        lhs_ref = scratch[0]
        for k in range(9):
            lhs_ref[:, pl.ds(k * PD, PD)] = tap(k // 3 - 1, k % 3 - 1)
        acc = jnp.dot(lhs_ref[...], wc_ref[...],
                      preferred_element_type=jnp.float32)
    else:
        # Centre tap initialises the accumulator (no zero-fill + add pass).
        acc = jnp.dot(tap(0, 0), wc_ref[pl.ds(4 * PD, PD), :],
                      preferred_element_type=jnp.float32)
        for k in range(9):
            if k == 4:
                continue
            acc = acc + jnp.dot(tap(k // 3 - 1, k % 3 - 1),
                                wc_ref[pl.ds(k * PD, PD), :],
                                preferred_element_type=jnp.float32)
    acc = jnp.maximum(acc, 0.0)

    # ---- conv_expand (1x1) + identity shortcut (re-read x, no long liveness)
    out = jnp.dot(acc.astype(jnp.bfloat16), we_ref[...],
                  preferred_element_type=jnp.float32)
    o_ref[...] = (out + x_ref[...]).astype(o_ref.dtype)


# --------------------------- device-aware sizing -----------------------------

def _tpu_hardware():
    kind = ""
    try:
        kind = jax.devices()[0].device_kind.lower()
    except Exception:
        pass
    vmem_phys = 128 << 20
    try:
        vmem_phys = int(pltpu.get_tpu_info().vmem_capacity_bytes)
    except Exception:
        pass
    return kind, vmem_phys


def _choose_pack(batch, device_kind):
    # v5e MXU is 128-deep: pack=2 already fills K for the 1x1s; 256-wide MXU
    # chips (v6e/v7x) want pack=4 so P*D hits 128 lanes and the tap dot fuses.
    narrow_mxu = "v5" in device_kind
    for p in ((2, 1) if narrow_mxu else (4, 2, 1)):
        if batch % p == 0:
            return p
    return 1


def _choose_vmem_limit(device_kind, vmem_phys):
    limit = max(32 << 20, min(vmem_phys // 2, 64 << 20))
    if "v7" in device_kind:                 # v7x: only 64 MiB physical per TC
        limit = min(limit, 32 << 20)
    return limit


def _max_block_rows(vmem_limit, P, Cin, Cout, D, fuse):
    """Rows per block that keep double-buffered tiles + scratch within VMEM."""
    PD = P * D
    per_row = (2 * 4 * P * Cin                       # 2x buffered f32 input
               + 2 * 4 * P * Cout                    # 2x buffered f32 output
               + 2 * PD                              # bf16 reduced activation
               + (2 * 9 * PD if fuse else 2 * 2 * PD)  # staged lhs / tap temps
               + 4 * PD                              # f32 conv accumulator
               + 4 * P * Cout                        # f32 expand result
               + 4 * 6 * PD)                         # iota + hoisted masks
    return max(8, int(0.7 * vmem_limit) // per_row)


def _pick_group_block(num_groups, rows_per_group, max_rows):
    """Largest divisor of num_groups fitting max_rows, keeping >=2 grid steps
    when possible so v7x can shard the parallel axis across its 2 TCs."""
    max_g = num_groups if num_groups == 1 else max(1, num_groups // 2)
    best = 1
    for g in range(1, num_groups + 1):
        if num_groups % g or g > max_g or g * rows_per_group > max_rows:
            continue
        if (g * rows_per_group) % 8 and g != num_groups:
            continue
        best = g
    return best


# -------------------------------- wrapper -----------------------------------

@functools.partial(jax.jit, static_argnames=("pack", "vmem_limit_bytes"))
def _bottleneck_impl(x_nchw, w_reduce, w_conv_taps, w_expand, *,
                     pack, vmem_limit_bytes):
    N, Cin, H, W = x_nchw.shape
    D = w_reduce.shape[1]
    Cout = w_expand.shape[1]
    assert Cin == Cout, "identity shortcut requires in_channels == out_channels"
    # TODO(synk): stride > 1 / dilation > 1 conv_conv variants not implemented
    # (the module's forward as written only works for stride=1, Cin == Cout).

    P = pack if N % pack == 0 else 1
    G = N // P
    HW = H * W
    PD = P * D
    fuse = (PD % 128 == 0)                 # fused K=9*PD tap matmul path

    # NCHW -> rows=(g,h,w), lanes=(p,c).  Pure XLA layout plumbing.
    x_nhwc = jnp.transpose(x_nchw, (0, 2, 3, 1))
    x2d = jnp.transpose(x_nhwc.reshape(G, P, H, W, Cin),
                        (0, 2, 3, 1, 4)).reshape(G * HW, P * Cin)

    # Block-diagonal "packed" weights (one copy per packed image), bf16 MXU.
    # TODO(synk): for real ResNeXt widths (D >= 256) restructure the grouped
    # conv as per-group matmuls instead of block-diag dense weights, otherwise
    # most MXU MACs are spent on structural zeros.
    eye = jnp.eye(P, dtype=w_reduce.dtype)
    wr_p = jnp.einsum('pq,cd->pcqd', eye, w_reduce
                      ).reshape(P * Cin, PD).astype(jnp.bfloat16)
    wc_p = jnp.einsum('pq,kio->kpiqo', eye, w_conv_taps
                      ).reshape(9 * PD, PD).astype(jnp.bfloat16)
    we_p = jnp.einsum('pq,do->pdqo', eye, w_expand
                      ).reshape(PD, P * Cout).astype(jnp.bfloat16)

    # VMEM-derived row-block size; whole images per block.
    # TODO(synk): for large feature maps switch to spatial H-tiling with a
    # 1-row halo (overlapping index_map) instead of whole-image blocks.
    max_rows = _max_block_rows(vmem_limit_bytes, P, Cin, Cout, D, fuse)
    Gb = _pick_group_block(G, HW, max_rows)
    RB = Gb * HW
    total_rows = G * HW

    flops = 2 * total_rows * (P * Cin * PD + 9 * PD * PD + PD * P * Cout)
    bytes_accessed = (x2d.size * x2d.dtype.itemsize
                      + total_rows * P * Cout * x2d.dtype.itemsize
                      + (wr_p.size + wc_p.size + we_p.size) * 2)

    scratch = [pltpu.VMEM((RB, 9 * PD), jnp.bfloat16)] if fuse else []

    out2d = pl.pallas_call(
        functools.partial(_bottleneck_kernel, H=H, W=W),
        out_shape=jax.ShapeDtypeStruct((total_rows, P * Cout), x_nchw.dtype),
        grid_spec=pltpu.PrefetchScalarGridSpec(
            num_scalar_prefetch=0,
            grid=(G // Gb,),
            in_specs=[
                pl.BlockSpec((RB, P * Cin), lambda i: (i, 0)),
                pl.BlockSpec((P * Cin, PD), lambda i: (0, 0)),
                pl.BlockSpec((9 * PD, PD), lambda i: (0, 0)),
                pl.BlockSpec((PD, P * Cout), lambda i: (0, 0)),
            ],
            out_specs=pl.BlockSpec((RB, P * Cout), lambda i: (i, 0)),
            scratch_shapes=scratch,
        ),
        compiler_params=pltpu.CompilerParams(
            dimension_semantics=("parallel",),
            vmem_limit_bytes=vmem_limit_bytes),
        cost_estimate=pl.CostEstimate(
            flops=flops, transcendentals=0, bytes_accessed=bytes_accessed),
    )(x2d, wr_p, wc_p, we_p)

    # rows/lanes slab -> NCHW
    y = out2d.reshape(G, H, W, P, Cout)
    y = jnp.transpose(y, (0, 3, 1, 2, 4)).reshape(N, H, W, Cout)
    return jnp.transpose(y, (0, 3, 1, 2))


def resnext_bottleneck_nchw(x_nchw, w_reduce, w_conv_taps, w_expand):
    """ResNeXt bottleneck forward, NCHW in / NCHW out (stride=1, dilate=1)."""
    kind, vmem_phys = _tpu_hardware()
    pack = _choose_pack(x_nchw.shape[0], kind)
    vmem_limit = _choose_vmem_limit(kind, vmem_phys)
    return _bottleneck_impl(x_nchw, w_reduce, w_conv_taps, w_expand,
                            pack=pack, vmem_limit_bytes=vmem_limit)


# ----------------------------- parameter setup ------------------------------

def make_bottleneck_params(key, in_channels, out_channels, cardinality):
    """Deterministic synthetic weights: PyTorch layout + kernel layouts."""
    D = out_channels // 2
    cg = D // cardinality
    k_r, k_c, k_e = jax.random.split(key, 3)

    # PyTorch shapes: reduce (D,Cin,1,1); grouped (D, D//G, 3, 3); expand (Cout,D,1,1)
    wr_t = jax.random.normal(k_r, (D, in_channels, 1, 1), jnp.float32) * 0.1
    wc_t = jax.random.normal(k_c, (D, cg, 3, 3), jnp.float32) * 0.1
    we_t = jax.random.normal(k_e, (out_channels, D, 1, 1), jnp.float32) * 0.1

    # Kernel layouts.
    w_reduce = jnp.transpose(wr_t[:, :, 0, 0], (1, 0))              # (Cin, D)
    w_expand = jnp.transpose(we_t[:, :, 0, 0], (1, 0))              # (D, Cout)

    # Dense block-diagonal per-tap weight == groups=cardinality conv:
    # taps[k, i, o] with k = ky*3 + kx.
    wc_np = np.array(wc_t)                                          # (D, cg, 3, 3)
    full = np.zeros((3, 3, D, D), np.float32)
    for g in range(cardinality):
        blk = wc_np[g * cg:(g + 1) * cg]                            # (cg, cg, 3, 3)
        full[:, :, g * cg:(g + 1) * cg, g * cg:(g + 1) * cg] = \
            np.transpose(blk, (2, 3, 1, 0))
    w_conv_taps = jnp.asarray(full.reshape(9, D, D))

    return (w_reduce, w_conv_taps, w_expand), (wr_t, wc_t, we_t)


# ----------------------------- pure-JAX reference ---------------------------

def reference_bottleneck_nchw(x_nchw, torch_weights, cardinality):
    """Pure-XLA f32 reference with the PyTorch-layout weights."""
    wr_t, wc_t, we_t = torch_weights
    x = jnp.transpose(x_nchw, (0, 2, 3, 1))                          # NHWC
    dn = lax.conv_dimension_numbers(x.shape, (1, 1, 1, 1),
                                    ("NHWC", "HWIO", "NHWC"))
    t = lax.conv_general_dilated(x, jnp.transpose(wr_t, (2, 3, 1, 0)),
                                 (1, 1), "VALID", dimension_numbers=dn)
    t = jnp.maximum(t, 0.0)
    t = lax.conv_general_dilated(t, jnp.transpose(wc_t, (2, 3, 1, 0)),
                                 (1, 1), ((1, 1), (1, 1)),
                                 dimension_numbers=dn,
                                 feature_group_count=cardinality)
    t = jnp.maximum(t, 0.0)
    t = lax.conv_general_dilated(t, jnp.transpose(we_t, (2, 3, 1, 0)),
                                 (1, 1), "VALID", dimension_numbers=dn)
    return jnp.transpose(x + t, (0, 3, 1, 2))


# ----------------------------------- main ------------------------------------

if __name__ == "__main__":
    N, C, H, W = 4, 64, 16, 16          # small shapes consistent with the module
    cardinality = 8                     # D = 32, group size = 4
    key = jax.random.PRNGKey(0)
    k_x, k_w = jax.random.split(key)
    x = jax.random.normal(k_x, (N, C, H, W), jnp.float32)   # NCHW, like PyTorch

    (w_reduce, w_conv_taps, w_expand), torch_w = make_bottleneck_params(
        k_w, C, C, cardinality)

    y = jax.block_until_ready(
        resnext_bottleneck_nchw(x, w_reduce, w_conv_taps, w_expand))

    y_ref = jax.block_until_ready(
        reference_bottleneck_nchw(x, torch_w, cardinality))

    # bf16 matmul operands (f32 accumulation) vs a full-f32 reference.
    np.testing.assert_allclose(np.array(y), np.array(y_ref),
                               rtol=2e-2, atol=2e-2)
    print("KERNEL_OK")
</pallas_src>

<mosaic_0001>
module attributes {stable_mosaic.version = 11 : i64} {
  func.func @_bottleneck_kernel(%arg0: i32, %arg1: memref<256x256xf32, #tpu.memory_space<vmem>>, %arg2: memref<256x128xbf16, #tpu.memory_space<vmem>>, %arg3: memref<1152x128xbf16, #tpu.memory_space<vmem>>, %arg4: memref<128x256xbf16, #tpu.memory_space<vmem>>, %arg5: memref<256x256xf32, #tpu.memory_space<vmem>>, %arg6: memref<256x1152xbf16, #tpu.memory_space<vmem>>) attributes {dimension_semantics = [#tpu.dimension_semantics<parallel>], iteration_bounds = array<i64: 1>, scalar_prefetch = 0 : i64, scratch_operands = 1 : i64, tpu.core_type = #tpu.core_type<tc>, window_params = [{transform_indices = @transform_0, window_bounds = array<i64: 256, 256>}, {pipeline_mode = #tpu.pipeline_mode<synchronous>, transform_indices = @transform_1, window_bounds = array<i64: 256, 128>}, {pipeline_mode = #tpu.pipeline_mode<synchronous>, transform_indices = @transform_2, window_bounds = array<i64: 1152, 128>}, {pipeline_mode = #tpu.pipeline_mode<synchronous>, transform_indices = @transform_3, window_bounds = array<i64: 128, 256>}, {transform_indices = @transform_4, window_bounds = array<i64: 256, 256>}]} {
    %c0 = arith.constant 0 : index
    %c0_0 = arith.constant 0 : index
    %0 = vector.load %arg1[%c0, %c0_0] : memref<256x256xf32, #tpu.memory_space<vmem>>, vector<256x256xf32>
    %1 = arith.truncf %0 : vector<256x256xf32> to vector<256x256xbf16>
    %c0_1 = arith.constant 0 : index
    %c0_2 = arith.constant 0 : index
    %2 = vector.load %arg2[%c0_1, %c0_2] : memref<256x128xbf16, #tpu.memory_space<vmem>>, vector<256x128xbf16>
    %cst = arith.constant dense<0.000000e+00> : vector<256x128xf32>
    %3 = tpu.matmul %1, %2, %cst {dimension_numbers = #tpu.dot_dimension_numbers<[1], [0], [0], [1], [0, 0, 1, 1], [], []>} : vector<256x256xbf16>, vector<256x128xbf16>, vector<256x128xf32> -> vector<256x128xf32>
    %cst_3 = arith.constant 0.000000e+00 : f32
    %4 = vector.broadcast %cst_3 : f32 to vector<256x128xf32>
    %5 = arith.maximumf %3, %4 : vector<256x128xf32>
    %6 = tpu.iota {dimensions = array<i32: 0>} : vector<256x128xi32>
    %c15_i32 = arith.constant 15 : i32
    %7 = vector.broadcast %c15_i32 : i32 to vector<256x128xi32>
    %8 = arith.andi %6, %7 : vector<256x128xi32>
    %c4_i32 = arith.constant 4 : i32
    %9 = vector.broadcast %c4_i32 : i32 to vector<256x128xi32>
    %10 = arith.shrsi %6, %9 : vector<256x128xi32>
    %c15_i32_4 = arith.constant 15 : i32
    %11 = vector.broadcast %c15_i32_4 : i32 to vector<256x128xi32>
    %12 = arith.andi %10, %11 : vector<256x128xi32>
    %c1_i32 = arith.constant 1 : i32
    %13 = vector.broadcast %c1_i32 : i32 to vector<256x128xi32>
    %14 = arith.cmpi sge, %12, %13 : vector<256x128xi32>
    %c15_i32_5 = arith.constant 15 : i32
    %15 = vector.broadcast %c15_i32_5 : i32 to vector<256x128xi32>
    %16 = arith.cmpi slt, %12, %15 : vector<256x128xi32>
    %c1_i32_6 = arith.constant 1 : i32
    %17 = vector.broadcast %c1_i32_6 : i32 to vector<256x128xi32>
    %18 = arith.cmpi sge, %8, %17 : vector<256x128xi32>
    %c15_i32_7 = arith.constant 15 : i32
    %19 = vector.broadcast %c15_i32_7 : i32 to vector<256x128xi32>
    %20 = arith.cmpi slt, %8, %19 : vector<256x128xi32>
    %c17_i32 = arith.constant 17 : i32
    %21 = tpu.dynamic_rotate %5 by %c17_i32 dim 0 : vector<256x128xf32>, i32 -> vector<256x128xf32>
    %22 = arith.andi %14, %18 : vector<256x128xi1>
    %cst_8 = arith.constant 0.000000e+00 : f32
    %23 = vector.broadcast %cst_8 : f32 to vector<256x128xf32>
    %24 = arith.select %22, %21, %23 : vector<256x128xi1>, vector<256x128xf32>
    %25 = arith.truncf %24 : vector<256x128xf32> to vector<256x128xbf16>
    %c0_9 = arith.constant 0 : index
    %c0_10 = arith.constant 0 : index
    %26 = vector.load %arg6[%c0_9, %c0_10] : memref<256x1152xbf16, #tpu.memory_space<vmem>>, vector<256x128xbf16>
    tpu.vector_store %arg6[%c0_9, %c0_10], %25 {strides = array<i32>} : memref<256x1152xbf16, #tpu.memory_space<vmem>>, vector<256x128xbf16>,
    %c16_i32 = arith.constant 16 : i32
    %27 = tpu.dynamic_rotate %5 by %c16_i32 dim 0 : vector<256x128xf32>, i32 -> vector<256x128xf32>
    %cst_11 = arith.constant 0.000000e+00 : f32
    %28 = vector.broadcast %cst_11 : f32 to vector<256x128xf32>
    %29 = arith.select %14, %27, %28 : vector<256x128xi1>, vector<256x128xf32>
    %30 = arith.truncf %29 : vector<256x128xf32> to vector<256x128xbf16>
    %c0_12 = arith.constant 0 : index
    %c128 = arith.constant 128 : index
    %31 = vector.load %arg6[%c0_12, %c128] : memref<256x1152xbf16, #tpu.memory_space<vmem>>, vector<256x128xbf16>
    tpu.vector_store %arg6[%c0_12, %c128], %30 {strides = array<i32>} : memref<256x1152xbf16, #tpu.memory_space<vmem>>, vector<256x128xbf16>,
    %c15_i32_13 = arith.constant 15 : i32
    %32 = tpu.dynamic_rotate %5 by %c15_i32_13 dim 0 : vector<256x128xf32>, i32 -> vector<256x128xf32>
    %33 = arith.andi %14, %20 : vector<256x128xi1>
    %cst_14 = arith.constant 0.000000e+00 : f32
    %34 = vector.broadcast %cst_14 : f32 to vector<256x128xf32>
    %35 = arith.select %33, %32, %34 : vector<256x128xi1>, vector<256x128xf32>
    %36 = arith.truncf %35 : vector<256x128xf32> to vector<256x128xbf16>
    %c0_15 = arith.constant 0 : index
    %c256 = arith.constant 256 : index
    %37 = vector.load %arg6[%c0_15, %c256] : memref<256x1152xbf16, #tpu.memory_space<vmem>>, vector<256x128xbf16>
    tpu.vector_store %arg6[%c0_15, %c256], %36 {strides = array<i32>} : memref<256x1152xbf16, #tpu.memory_space<vmem>>, vector<256x128xbf16>,
    %c1_i32_16 = arith.constant 1 : i32
    %38 = tpu.dynamic_rotate %5 by %c1_i32_16 dim 0 : vector<256x128xf32>, i32 -> vector<256x128xf32>
    %cst_17 = arith.constant 0.000000e+00 : f32
    %39 = vector.broadcast %cst_17 : f32 to vector<256x128xf32>
    %40 = arith.select %18, %38, %39 : vector<256x128xi1>, vector<256x128xf32>
    %41 = arith.truncf %40 : vector<256x128xf32> to vector<256x128xbf16>
    %c0_18 = arith.constant 0 : index
    %c384 = arith.constant 384 : index
    %42 = vector.load %arg6[%c0_18, %c384] : memref<256x1152xbf16, #tpu.memory_space<vmem>>, vector<256x128xbf16>
    tpu.vector_store %arg6[%c0_18, %c384], %41 {strides = array<i32>} : memref<256x1152xbf16, #tpu.memory_space<vmem>>, vector<256x128xbf16>,
    %43 = arith.truncf %5 : vector<256x128xf32> to vector<256x128xbf16>
    %c0_19 = arith.constant 0 : index
    %c512 = arith.constant 512 : index
    %44 = vector.load %arg6[%c0_19, %c512] : memref<256x1152xbf16, #tpu.memory_space<vmem>>, vector<256x128xbf16>
    tpu.vector_store %arg6[%c0_19, %c512], %43 {strides = array<i32>} : memref<256x1152xbf16, #tpu.memory_space<vmem>>, vector<256x128xbf16>,
    %c255_i32 = arith.constant 255 : i32
    %45 = tpu.dynamic_rotate %5 by %c255_i32 dim 0 : vector<256x128xf32>, i32 -> vector<256x128xf32>
    %cst_20 = arith.constant 0.000000e+00 : f32
    %46 = vector.broadcast %cst_20 : f32 to vector<256x128xf32>
    %47 = arith.select %20, %45, %46 : vector<256x128xi1>, vector<256x128xf32>
    %48 = arith.truncf %47 : vector<256x128xf32> to vector<256x128xbf16>
    %c0_21 = arith.constant 0 : index
    %c640 = arith.constant 640 : index
    %49 = vector.load %arg6[%c0_21, %c640] : memref<256x1152xbf16, #tpu.memory_space<vmem>>, vector<256x128xbf16>
    tpu.vector_store %arg6[%c0_21, %c640], %48 {strides = array<i32>} : memref<256x1152xbf16, #tpu.memory_space<vmem>>, vector<256x128xbf16>,
    %c241_i32 = arith.constant 241 : i32
    %50 = tpu.dynamic_rotate %5 by %c241_i32 dim 0 : vector<256x128xf32>, i32 -> vector<256x128xf32>
    %51 = arith.andi %16, %18 : vector<256x128xi1>
    %cst_22 = arith.constant 0.000000e+00 : f32
    %52 = vector.broadcast %cst_22 : f32 to vector<256x128xf32>
    %53 = arith.select %51, %50, %52 : vector<256x128xi1>, vector<256x128xf32>
    %54 = arith.truncf %53 : vector<256x128xf32> to vector<256x128xbf16>
    %c0_23 = arith.constant 0 : index
    %c768 = arith.constant 768 : index
    %55 = vector.load %arg6[%c0_23, %c768] : memref<256x1152xbf16, #tpu.memory_space<vmem>>, vector<256x128xbf16>
    tpu.vector_store %arg6[%c0_23, %c768], %54 {strides = array<i32>} : memref<256x1152xbf16, #tpu.memory_space<vmem>>, vector<256x128xbf16>,
    %c240_i32 = arith.constant 240 : i32
    %56 = tpu.dynamic_rotate %5 by %c240_i32 dim 0 : vector<256x128xf32>, i32 -> vector<256x128xf32>
    %cst_24 = arith.constant 0.000000e+00 : f32
    %57 = vector.broadcast %cst_24 : f32 to vector<256x128xf32>
    %58 = arith.select %16, %56, %57 : vector<256x128xi1>, vector<256x128xf32>
    %59 = arith.truncf %58 : vector<256x128xf32> to vector<256x128xbf16>
    %c0_25 = arith.constant 0 : index
    %c896 = arith.constant 896 : index
    %60 = vector.load %arg6[%c0_25, %c896] : memref<256x1152xbf16, #tpu.memory_space<vmem>>, vector<256x128xbf16>
    tpu.vector_store %arg6[%c0_25, %c896], %59 {strides = array<i32>} : memref<256x1152xbf16, #tpu.memory_space<vmem>>, vector<256x128xbf16>,
    %c239_i32 = arith.constant 239 : i32
    %61 = tpu.dynamic_rotate %5 by %c239_i32 dim 0 : vector<256x128xf32>, i32 -> vector<256x128xf32>
    %62 = arith.andi %16, %20 : vector<256x128xi1>
    %cst_26 = arith.constant 0.000000e+00 : f32
    %63 = vector.broadcast %cst_26 : f32 to vector<256x128xf32>
    %64 = arith.select %62, %61, %63 : vector<256x128xi1>, vector<256x128xf32>
    %65 = arith.truncf %64 : vector<256x128xf32> to vector<256x128xbf16>
    %c0_27 = arith.constant 0 : index
    %c1024 = arith.constant 1024 : index
    %66 = vector.load %arg6[%c0_27, %c1024] : memref<256x1152xbf16, #tpu.memory_space<vmem>>, vector<256x128xbf16>
    tpu.vector_store %arg6[%c0_27, %c1024], %65 {strides = array<i32>} : memref<256x1152xbf16, #tpu.memory_space<vmem>>, vector<256x128xbf16>,
    %c0_28 = arith.constant 0 : index
    %c0_29 = arith.constant 0 : index
    %67 = vector.load %arg6[%c0_28, %c0_29] : memref<256x1152xbf16, #tpu.memory_space<vmem>>, vector<256x1152xbf16>
    %c0_30 = arith.constant 0 : index
    %c0_31 = arith.constant 0 : index
    %68 = vector.load %arg3[%c0_30, %c0_31] : memref<1152x128xbf16, #tpu.memory_space<vmem>>, vector<1152x128xbf16>
    %cst_32 = arith.constant dense<0.000000e+00> : vector<256x128xf32>
    %69 = tpu.matmul %67, %68, %cst_32 {dimension_numbers = #tpu.dot_dimension_numbers<[1], [0], [0], [1], [0, 0, 1, 1], [], []>} : vector<256x1152xbf16>, vector<1152x128xbf16>, vector<256x128xf32> -> vector<256x128xf32>
    %cst_33 = arith.constant 0.000000e+00 : f32
    %70 = vector.broadcast %cst_33 : f32 to vector<256x128xf32>
    %71 = arith.maximumf %69, %70 : vector<256x128xf32>
    %72 = arith.truncf %71 : vector<256x128xf32> to vector<256x128xbf16>
    %c0_34 = arith.constant 0 : index
    %c0_35 = arith.constant 0 : index
    %73 = vector.load %arg4[%c0_34, %c0_35] : memref<128x256xbf16, #tpu.memory_space<vmem>>, vector<128x256xbf16>
    %cst_36 = arith.constant dense<0.000000e+00> : vector<256x256xf32>
    %74 = tpu.matmul %72, %73, %cst_36 {dimension_numbers = #tpu.dot_dimension_numbers<[1], [0], [0], [1], [0, 0, 1, 1], [], []>} : vector<256x128xbf16>, vector<128x256xbf16>, vector<256x256xf32> -> vector<256x256xf32>
    %c0_37 = arith.constant 0 : index
    %c0_38 = arith.constant 0 : index
    %75 = vector.load %arg1[%c0_37, %c0_38] : memref<256x256xf32, #tpu.memory_space<vmem>>, vector<256x256xf32>
    %76 = arith.addf %74, %75 : vector<256x256xf32>
    %c0_39 = arith.constant 0 : index
    %c0_40 = arith.constant 0 : index
    %77 = vector.load %arg5[%c0_39, %c0_40] : memref<256x256xf32, #tpu.memory_space<vmem>>, vector<256x256xf32>
    tpu.vector_store %arg5[%c0_39, %c0_40], %76 {strides = array<i32>} : memref<256x256xf32, #tpu.memory_space<vmem>>, vector<256x256xf32>,
    return
  }
  func.func @transform_0(%arg0: i32) -> (i32, i32) {
    %c0_i32 = arith.constant 0 : i32
    %c0_i32_0 = arith.constant 0 : i32
    return %arg0, %c0_i32 : i32, i32
  }
  func.func @transform_1(%arg0: i32) -> (i32, i32) {
    %c0_i32 = arith.constant 0 : i32
    %c0_i32_0 = arith.constant 0 : i32
    %c0_i32_1 = arith.constant 0 : i32
    return %c0_i32, %c0_i32_0 : i32, i32
  }
  func.func @transform_2(%arg0: i32) -> (i32, i32) {
    %c0_i32 = arith.constant 0 : i32
    %c0_i32_0 = arith.constant 0 : i32
    %c0_i32_1 = arith.constant 0 : i32
    return %c0_i32, %c0_i32_0 : i32, i32
  }
  func.func @transform_3(%arg0: i32) -> (i32, i32) {
    %c0_i32 = arith.constant 0 : i32
    %c0_i32_0 = arith.constant 0 : i32
    %c0_i32_1 = arith.constant 0 : i32
    return %c0_i32, %c0_i32_0 : i32, i32
  }
  func.func @transform_4(%arg0: i32) -> (i32, i32) {
    %c0_i32 = arith.constant 0 : i32
    %c0_i32_0 = arith.constant 0 : i32
    return %arg0, %c0_i32 : i32, i32
  }
}

</mosaic_0001>

<bundles_post_ra>
// kernel: _bottleneck_impl.1
= control target key start
LH: loop header
LB: loop body
LE: loop exit
PB: predicated region body
PF: predicated region fallthrough
CT: control target
= control target key end

     0   :  { %s8839_s1 = inlined_call_operand.vmem [shape: bf16[256,128], index: 1, kind: input, shape index: {}]   ;;  %s8840_s0 = inlined_call_operand.vmem [shape: f32[256,256], index: 0, kind: input, shape index: {}]   ;;  %s8841_s2 = inlined_call_operand.vmem [shape: bf16[1152,128], index: 2, kind: input, shape index: {}]   ;;  %s8842_s3 = inlined_call_operand.vmem [shape: bf16[128,256], index: 3, kind: input, shape index: {}]   ;;  %s8843_s4 = inlined_call_operand.vmem [shape: f32[256,256], index: 4, kind: output, shape index: {}]  }
   0x1   :  { %v5524_v0 = vld [vmem:[%s8839_s1 + $0x38] sm:$0xff]  ;;  %v5523_v1 = vld [vmem:[%s8839_s1 + $0x30] sm:$0xff]  ;;  %v5522_v2 = vld [vmem:[%s8839_s1 + $0x28] sm:$0xff] }
   0x2   :  { %5765 = vmatpush.bf16.msra.mxu1 %v5524_v0  ;;  %241 = vmatpush.bf16.msra.mxu0 %v5524_v0  ;;  %v5521_v3 = vld [vmem:[%s8839_s1 + $0x20] sm:$0xff]  ;;  %v5520_v4 = vld [vmem:[%s8839_s1 + $0x18] sm:$0xff]  ;;  %v5519_v5 = vld [vmem:[%s8839_s1 + $0x10] sm:$0xff] }
   0x3   :  { %5766 = vmatpush.bf16.msra.mxu2 %v5524_v0  ;;  %5767 = vmatpush.bf16.msra.mxu3 %v5524_v0  ;;  %v5518_v6 = vld [vmem:[%s8839_s1 + $0x8] sm:$0xff]  ;;  %v5517_v7 = vld [vmem:[%s8839_s1] sm:$0xff]  ;;  %v35_v9 = vld [vmem:[%s8840_s0 + $0x90] sm:$0xff] }
   0x4   :  { %v33_v8 = vld [vmem:[%s8840_s0 + $0x80] sm:$0xff]  ;;  %v5532_v10 = vld [vmem:[%s8839_s1 + $0x78] sm:$0xff]  ;;  %v5531_v12 = vld [vmem:[%s8839_s1 + $0x70] sm:$0xff] }
   0x5   :  { %v89_v11 = vpack.c.bf16 %v35_v9, %v33_v8  ;;  %v5530_v13 = vld [vmem:[%s8839_s1 + $0x68] sm:$0xff]  ;;  %v5529_v14 = vld [vmem:[%s8839_s1 + $0x60] sm:$0xff]  ;;  %v39_v16 = vld [vmem:[%s8840_s0 + $0xb0] sm:$0xff] }
   0x6   :  { %5768 = vmatpush.bf16.msra.mxu1 %v5523_v1  ;;  %242 = vmatpush.bf16.msra.mxu0 %v5523_v1  ;;  %v37_v15 = vld [vmem:[%s8840_s0 + $0xa0] sm:$0xff]  ;;  %v5528_v17 = vld [vmem:[%s8839_s1 + $0x58] sm:$0xff]  ;;  %v5527_v19 = vld [vmem:[%s8839_s1 + $0x50] sm:$0xff] }
   0x7   :  { %5769 = vmatpush.bf16.msra.mxu2 %v5523_v1  ;;  %5770 = vmatpush.bf16.msra.mxu3 %v5523_v1  ;;  %v91_v18 = vpack.c.bf16 %v39_v16, %v37_v15  ;;  %v17_v20 = vld [vmem:[%s8840_s0] sm:$0xff]  ;;  %v19_v21 = vld [vmem:[%s8840_s0 + $0x10] sm:$0xff]  ;;  %v5526_v22 = vld [vmem:[%s8839_s1 + $0x48] sm:$0xff]  ;;  %v451_v1 = vlaneseq  ;;  %v8870_v16 = vmov 0 }
   0x8   :  { %v81_v23 = vpack.c.bf16 %v19_v21, %v17_v20  ;;  %v5525_v24 = vld [vmem:[%s8839_s1 + $0x40] sm:$0xff]  ;;  %v43_v26 = vld [vmem:[%s8840_s0 + $0xd0] sm:$0xff]  ;;  %v18_v37 = vld [vmem:[%s8840_s0 + $0x8] sm:$0xff] }
   0x9   :  { %v41_v25 = vld [vmem:[%s8840_s0 + $0xc0] sm:$0xff]  ;;  %v23_v29 = vld [vmem:[%s8840_s0 + $0x30] sm:$0xff]  ;;  %v20_v38 = vld [vmem:[%s8840_s0 + $0x18] sm:$0xff] }
   0xa   :  { %5771 = vmatpush.bf16.msra.mxu1 %v5522_v2  ;;  %243 = vmatpush.bf16.msra.mxu0 %v5522_v2  ;;  %v93_v27 = vpack.c.bf16 %v43_v26, %v41_v25  ;;  %v21_v28 = vld [vmem:[%s8840_s0 + $0x20] sm:$0xff]  ;;  %v47_v32 = vld [vmem:[%s8840_s0 + $0xf0] sm:$0xff]  ;;  %v82_v39 = vpack.c.bf16 %v20_v38, %v18_v37  ;;  %v22_v43 = vld [vmem:[%s8840_s0 + $0x28] sm:$0xff] }
   0xb   :  { %5772 = vmatpush.bf16.msra.mxu2 %v5522_v2  ;;  %5773 = vmatpush.bf16.msra.mxu3 %v5522_v2  ;;  %v83_v30 = vpack.c.bf16 %v23_v29, %v21_v28  ;;  %v45_v31 = vld [vmem:[%s8840_s0 + $0xe0] sm:$0xff]  ;;  %v27_v35 = vld [vmem:[%s8840_s0 + $0x50] sm:$0xff]  ;;  %v24_v44 = vld [vmem:[%s8840_s0 + $0x38] sm:$0xff] }
   0xc   :  { %v95_v33 = vpack.c.bf16 %v47_v32, %v45_v31  ;;  %v25_v34 = vld [vmem:[%s8840_s0 + $0x40] sm:$0xff]  ;;  %v31_v41 = vld [vmem:[%s8840_s0 + $0x70] sm:$0xff]  ;;  %v84_v45 = vpack.c.bf16 %v24_v44, %v22_v43  ;;  %v26_v46 = vld [vmem:[%s8840_s0 + $0x48] sm:$0xff] }
   0xd   :  { %v85_v36 = vpack.c.bf16 %v27_v35, %v25_v34  ;;  %v29_v40 = vld [vmem:[%s8840_s0 + $0x60] sm:$0xff]  ;;  %v28_v47 = vld [vmem:[%s8840_s0 + $0x58] sm:$0xff]  ;;  %v30_v49 = vld [vmem:[%s8840_s0 + $0x68] sm:$0xff] }
   0xe   :  { %5774 = vmatpush.bf16.msra.mxu1 %v5521_v3  ;;  %244 = vmatpush.bf16.msra.mxu0 %v5521_v3  ;;  %v87_v42 = vpack.c.bf16 %v31_v41, %v29_v40  ;;  %v86_v48 = vpack.c.bf16 %v28_v47, %v26_v46  ;;  %v32_v50 = vld [vmem:[%s8840_s0 + $0x78] sm:$0xff]  ;;  %v34_v52 = vld [vmem:[%s8840_s0 + $0x88] sm:$0xff]  ;;  %v49_v62 = vld [vmem:[%s8840_s0 + $0x100] sm:$0xff] }
   0xf   :  { %5775 = vmatpush.bf16.msra.mxu2 %v5521_v3  ;;  %5776 = vmatpush.bf16.msra.mxu3 %v5521_v3  ;;  %v88_v51 = vpack.c.bf16 %v32_v50, %v30_v49  ;;  %v36_v53 = vld [vmem:[%s8840_s0 + $0x98] sm:$0xff]  ;;  %v38_v57 = vld [vmem:[%s8840_s0 + $0xa8] sm:$0xff]  ;;  %v51_v63 = vld [vmem:[%s8840_s0 + $0x110] sm:$0xff] }
  0x10   :  { %v90_v54 = vpack.c.bf16 %v36_v53, %v34_v52  ;;  %v40_v58 = vld [vmem:[%s8840_s0 + $0xb8] sm:$0xff]  ;;  %v97_v0 = vpack.c.bf16 %v51_v63, %v49_v62  ;;  %v42_v2 = vld [vmem:[%s8840_s0 + $0xc8] sm:$0xff]  ;;  %v57_v41 = vld [vmem:[%s8840_s0 + $0x140] sm:$0xff] }
  0x11   :  { %v92_v59 = vpack.c.bf16 %v40_v58, %v38_v57  ;;  %v44_v3 = vld [vmem:[%s8840_s0 + $0xd8] sm:$0xff]  ;;  %v46_v20 = vld [vmem:[%s8840_s0 + $0xe8] sm:$0xff] }
  0x12   :  { %5777 = vmatpush.bf16.msra.mxu1 %v5520_v4  ;;  %245 = vmatpush.bf16.msra.mxu0 %v5520_v4  ;;  %v48_v21 = vld [vmem:[%s8840_s0 + $0xf8] sm:$0xff]  ;;  %v50_v29 = vld [vmem:[%s8840_s0 + $0x108] sm:$0xff] }
  0x13   :  { %5778 = vmatpush.bf16.msra.mxu2 %v5520_v4  ;;  %5779 = vmatpush.bf16.msra.mxu3 %v5520_v4  ;;  %v5966_v4 = vshrl.u32 %v451_v1, 7  ;;  %v54_v62 = vld [vmem:[%s8840_s0 + $0x128] sm:$0xff]  ;;  %v56_v63 = vld [vmem:[%s8840_s0 + $0x138] sm:$0xff] }
  0x15   :  { %v6027_v32 = vadd.s32 24, %v5966_v4  ;;  %v6037_v40 = vadd.s32 32, %v5966_v4  ;;  %vm8848_vm8 = vcmp.lt.s32.totalorder %v5966_v4, 1  ;;  %vm8844_vm9 = vcmp.lt.s32.totalorder %v5966_v4, 7 }
  0x16   :  { %5780 = vmatpush.bf16.msra.mxu1 %v5519_v5  ;;  %246 = vmatpush.bf16.msra.mxu0 %v5519_v5 }
  0x17   :  { %5781 = vmatpush.bf16.msra.mxu2 %v5519_v5  ;;  %5782 = vmatpush.bf16.msra.mxu3 %v5519_v5  ;;  %v454_v5 = vadd.s32 16, %v5966_v4  ;;  %v519_v37 = vshra.s32 %v6027_v32, 4  ;;  %v520_v53 = vshra.s32 %v6037_v40, 4  ;;  %v487_v57 = vand.u32 15, %v6027_v32 }
  0x19   :  { %v518_v9 = vshra.s32 %v454_v5, 4  ;;  %v6050_v46 = vand.u32 15, %v519_v37  ;;  %vm6112_vm10 = vcmp.lt.s32.totalorder %v487_v57, 15 }
  0x1a   :  { %5783 = vmatpush.bf16.msra.mxu1 %v5518_v6  ;;  %247 = vmatpush.bf16.msra.mxu0 %v5518_v6 }
  0x1b   :  { %5784 = vmatpush.bf16.msra.mxu2 %v5518_v6  ;;  %5785 = vmatpush.bf16.msra.mxu3 %v5518_v6  ;;  %v482_v6 = vadd.s32 240, %v5966_v4  ;;  %vm583_vm6 = vcmp.ge.s32.totalorder %v6050_v46, 1 }
  0x1e   :  { %5786 = vmatpush.bf16.msra.mxu1 %v5517_v7  ;;  %248 = vmatpush.bf16.msra.mxu0 %v5517_v7 }
  0x1f   :  { %5787 = vmatpush.bf16.msra.mxu2 %v5517_v7  ;;  %5788 = vmatpush.bf16.msra.mxu3 %v5517_v7  ;;  %v94_v7 = vpack.c.bf16 %v44_v3, %v42_v2  ;;  %v484_v3 = vand.u32 15, %v5966_v4 }
  0x21   :  { %269 = vmatmul.bf16.vlgmr.msra.gmra.mxu1 %v89_v11  ;;  %249 = vmatmul.bf16.vlgmr.msra.gmra.mxu0 %v81_v23  ;;  %v5972_v11 = vand.u32 15, %v518_v9  ;;  %v55_v23 = vld [vmem:[%s8840_s0 + $0x130] sm:$0xff]  ;;  %vm6131_vm15 = vcmp.ge.s32.totalorder %v484_v3, 1  ;;  %v6220_v3 = vadd.s32 56, %v5966_v4 }
  0x22   :  { %330 = vmatpush.bf16.msrb.mxu1 %v5532_v10  ;;  %289 = vmatmul.bf16.vlgmr.msra.gmra.mxu2 %v97_v0  ;;  %v546_v10 = vshra.s32 %v482_v6, 4  ;;  %v453_v0 = vadd.s32 8, %v5966_v4 }
  0x23   :  { %vm582_vm0 = vcmp.ge.s32.totalorder %v5972_v11, 1 }
  0x26   :  { %331 = vmatpush.bf16.msrb.mxu1 %v5531_v12  ;;  %v486_v12 = vand.u32 15, %v454_v5  ;;  %v6077_v5 = vand.u32 15, %v520_v53  ;;  %v6126_v53 = vadd.s32 48, %v5966_v4 }
  0x28   :  { %vm5977_vm1 = vcmp.ge.s32.totalorder %v486_v12, 1  ;;  %v100_v12 = vpack.c.bf16 %v56_v63, %v54_v62  ;;  %vm8845_vm12 = vcmp.ge.s32.totalorder %v6077_v5, 1  ;;  %v61_v63 = vld [vmem:[%s8840_s0 + $0x160] sm:$0xff] }
  0x29   :  { %vm5985_vm2 = vmand %vm582_vm0, %vm5977_vm1 }
  0x2a   :  { %332 = vmatpush.bf16.msrb.mxu1 %v5530_v13  ;;  %v514_v13 = vand.u32 15, %v482_v6  ;;  %v8871_v16 = vsel %vm5985_vm2, 4294967295, %v8870_v16  ;;  %v6080_v6 = vadd.s32 40, %v5966_v4 }
  0x2c   :  { %vm5990_vm4 = vcmp.ge.s32.totalorder %v514_v13, 1  ;;  %v521_v32 = vshra.s32 %v6080_v6, 4 }
  0x2e   :  { %333 = vmatpush.bf16.msrb.mxu1 %v5529_v14  ;;  %v5974_v14 = vand.u32 15, %v546_v10  ;;  %v488_v10 = vand.u32 15, %v6037_v40  ;;  %v6149_v62 = vand.u32 15, %v521_v32 }
  0x30   :  { %vm642_vm3 = vcmp.lt.s32.totalorder %v5974_v14, 15  ;;  %vm6121_vm13 = vcmp.ge.s32.totalorder %v488_v10, 1 }
  0x31   :  { %274 = vmatmul.bf16.gmra.mxu1 %v91_v18  ;;  %254 = vmatmul.bf16.gmra.mxu0 %v83_v30  ;;  %vm6000_vm5 = vmand %vm642_vm3, %vm5990_vm4  ;;  %v52_v30 = vld [vmem:[%s8840_s0 + $0x118] sm:$0xff] }
  0x32   :  { %334 = vmatpush.bf16.msrb.mxu1 %v5528_v17  ;;  %v98_v34 = vpack.c.bf16 %v52_v30, %v50_v29 }
  0x36   :  { %335 = vmatpush.bf16.msrb.mxu1 %v5527_v19  ;;  %v8874_v19 = vmov 0 }
  0x37   :  { %v8875_v19 = vsel %vm6000_vm5, 4294967295, %v8874_v19  ;;  %vm8908_vm5 = vcmp.lt.s32.totalorder %v5966_v4, 1 }
  0x3a   :  { %336 = vmatpush.bf16.msrb.mxu1 %v5526_v22  ;;  %v53_v22 = vld [vmem:[%s8840_s0 + $0x120] sm:$0xff] }
  0x3b   :  { %v99_v25 = vpack.c.bf16 %v55_v23, %v53_v22 }
  0x3d   :  { %294 = vmatmul.bf16.gmra.mxu2 %v99_v25  ;;  %v485_v25 = vand.u32 15, %v453_v0 }
  0x3e   :  { %337 = vmatpush.bf16.msrb.mxu1 %v5525_v24  ;;  %v96_v24 = vpack.c.bf16 %v48_v21, %v46_v20 }
  0x41   :  { %279 = vmatmul.bf16.gmra.mxu1 %v93_v27  ;;  %259 = vmatmul.bf16.gmra.mxu0 %v85_v36 }
  0x51   :  { %284 = vmatmul.bf16.gmra.mxu1 %v95_v33  ;;  %264 = vmatmul.bf16.gmra.mxu0 %v87_v42  ;;  %v6030_v33 = vadd.s32 248, %v5966_v4  ;;  %v59_v42 = vld [vmem:[%s8840_s0 + $0x150] sm:$0xff] }
  0x52   :  { %v101_v43 = vpack.c.bf16 %v59_v42, %v57_v41 }
  0x53   :  { %v547_v38 = vshra.s32 %v6030_v33, 4  ;;  %v515_v58 = vand.u32 15, %v6030_v33 }
  0x54   :  { %299 = vmatmul.bf16.gmra.mxu2 %v101_v43 }
  0x55   :  { %v6052_v47 = vand.u32 15, %v547_v38  ;;  %vm6116_vm11 = vcmp.lt.s32.totalorder %v515_v58, 15 }
  0x57   :  { %vm643_vm7 = vcmp.lt.s32.totalorder %v6052_v47, 15 }
  0x61   :  { %338 = vmatmul.bf16.vlgmr.msrb.gmra.mxu1 %v82_v39 }
  0x71   :  { %343 = vmatmul.bf16.gmra.mxu1 %v84_v45 }
  0x81   :  { %348 = vmatmul.bf16.gmra.mxu1 %v86_v48 }
  0x91   :  { %353 = vmatmul.bf16.gmra.mxu1 %v88_v51  ;;  %v516_v51 = vshra.s32 %v5966_v4, 4 }
  0x93   :  { %v6072_v1 = vand.u32 15, %v516_v51 }
  0x95   :  { %vm8846_vm14 = vcmp.lt.s32.totalorder %v6072_v1, 15 }
  0x9e   :  { %v5940_v55 = vpop.f32.mrf.mxu1  ;;  %v250_v27 = vpop.f32.mrf.mxu0 }
  0xa1   :  { %358 = vmatmul.bf16.gmra.mxu1 %v90_v54 }
  0xa6   :  { %v5942_v56 = vpop.f32.mrf.mxu1  ;;  %v252_v31 = vpop.f32.mrf.mxu0 }
  0xae   :  { %v5950_v60 = vpop.f32.mrf.mxu1  ;;  %v255_v50 = vpop.f32.mrf.mxu0 }
  0xb1   :  { %363 = vmatmul.bf16.gmra.mxu1 %v92_v59 }
  0xb6   :  { %v5952_v61 = vpop.f32.mrf.mxu1  ;;  %v257_v38 = vpop.f32.mrf.mxu0 }
  0xbe   :  { %v5970_v8 = vpop.f32.mrf.mxu1 }
  0xc1   :  { %368 = vmatmul.bf16.gmra.mxu1 %v94_v7 }
  0xc6   :  { %v5994_v18 = vpop.f32.mrf.mxu1 }
  0xce   :  { %v6016_v26 = vpop.f32.mrf.mxu1 }
  0xd1   :  { %373 = vmatmul.bf16.gmra.mxu1 %v96_v24 }
  0xd6   :  { %v6018_v28 = vpop.f32.mrf.mxu1 }
  0xde   :  { %v339_v35 = vpop.f32.mrf.mxu1 }
  0xdf   :  { %v340_v36 = vadd.f32 %v339_v35, %v250_v27  ;;  %v517_v27 = vshra.s32 %v453_v0, 4  ;;  %v63_v0 = vld [vmem:[%s8840_s0 + $0x170] sm:$0xff] }
  0xe1   :  { %v6034_v39 = vmax.f32 %v340_v36, 0.0  ;;  %378 = vmatmul.bf16.gmra.mxu1 %v98_v34 }
  0xe3   :  { %v903_v44 = vsel %vm582_vm0, %v6034_v39, 0.0  ;;  %v1286_v45 = vpack.c.bf16 %v6034_v39, %v6034_v39  ;;  %v1604_v49 = vsel %vm642_vm3, %v6034_v39, 0.0  ;;  %v708_v7 = vrot.slane %v6034_v39, 7 }
  0xe4   :  { %v935_v48 = vpack.c.bf16 %v903_v44, %v903_v44  ;;  %v1636_v52 = vpack.c.bf16 %v1604_v49, %v1604_v49  ;;  %v997_v9 = vrot.slane %v6034_v39, 1 }
  0xe5   :  { %1318 = vst [vmem:[#allocation2 + $0x10] sm:$0xf] %v1286_v45 }
  0xe6   :  { %967 = vst [vmem:[#allocation2 + $0x4c] sm:$0xf] %v935_v48  ;;  %v341_v54 = vpop.f32.mrf.mxu1 }
  0xe7   :  { %1668 = vst [vmem:[#allocation2 + $0x454] sm:$0xf] %v1636_v52  ;;  %v342_v59 = vadd.f32 %v341_v54, %v252_v31 }
  0xe9   :  { %v6074_v2 = vmax.f32 %v342_v59, 0.0  ;;  %v6147_v59 = vand.u32 15, %v517_v27  ;;  %v522_v27 = vshra.s32 %v6126_v53, 4 }
  0xeb   :  { %v709_v13 = vrot.slane %v6074_v2, 7  ;;  %v904_v20 = vsel %vm583_vm6, %v6074_v2, 0.0  ;;  %v998_v21 = vrot.slane %v6074_v2, 1  ;;  %v1287_v22 = vpack.c.bf16 %v6074_v2, %v6074_v2 }
  0xec   :  { %v936_v23 = vpack.c.bf16 %v904_v20, %v904_v20  ;;  %v1605_v24 = vsel %vm643_vm7, %v6074_v2, 0.0 }
  0xed   :  { %v771_v29 = vsel %vm8848_vm8, %v708_v7, %v709_v13  ;;  %v1060_v30 = vsel %vm8844_vm9, %v997_v9, %v998_v21  ;;  %1319 = vst [vmem:[#allocation2 + $0x34] sm:$0xf] %v1287_v22  ;;  %v1637_v31 = vpack.c.bf16 %v1605_v24, %v1605_v24  ;;  %vm6176_vm9 = vmand %vm643_vm7, %vm6116_vm11 }
  0xee   :  { %v808_v33 = vsel %vm583_vm6, %v771_v29, 0.0  ;;  %968 = vst [vmem:[#allocation2 + $0x70] sm:$0xf] %v936_v23  ;;  %v1096_v34 = vsel %vm582_vm0, %v1060_v30, 0.0  ;;  %v1223_v35 = vpack.c.bf16 %v771_v29, %v771_v29  ;;  %v1382_v36 = vpack.c.bf16 %v1060_v30, %v1060_v30  ;;  %v344_v37 = vpop.f32.mrf.mxu1 }
  0xef   :  { %v840_v40 = vpack.c.bf16 %v808_v33, %v808_v33  ;;  %v1128_v41 = vpack.c.bf16 %v1096_v34, %v1096_v34  ;;  %v1509_v42 = vsel %vm643_vm7, %v771_v29, 0.0  ;;  %1669 = vst [vmem:[#allocation2 + $0x478] sm:$0xf] %v1637_v31  ;;  %v1732_v43 = vsel %vm642_vm3, %v1060_v30, 0.0  ;;  %vm6143_vm3 = vmand %vm583_vm6, %vm6112_vm10 }
  0xf0   :  { %1255 = vst [vmem:[#allocation2 + $0x30] sm:$0xf] %v1223_v35  ;;  %v1541_v48 = vpack.c.bf16 %v1509_v42, %v1509_v42  ;;  %v345_v49 = vadd.f32 %v344_v37, %v255_v50  ;;  %v1764_v51 = vpack.c.bf16 %v1732_v43, %v1732_v43  ;;  %vm6135_vm0 = vcmp.lt.s32.totalorder %v485_v25, 15  ;;  %vm6162_vm6 = vmand %vm8845_vm12, %vm6121_vm13 }
  0xf1   :  { %872 = vst [vmem:[#allocation2 + $0x6c] sm:$0xf] %v840_v40  ;;  %383 = vmatmul.bf16.gmra.mxu1 %v100_v12  ;;  %v489_v25 = vand.u32 15, %v6080_v6  ;;  %vm6193_vm7 = vmand %vm8846_vm14, %vm6131_vm15  ;;  %v103_v6 = vpack.c.bf16 %v63_v0, %v61_v63  ;;  %v490_v63 = vand.u32 15, %v6126_v53  ;;  %v6217_v0 = vand.u32 15, %v522_v27 }
  0xf2   :  { %1160 = vst [vmem:[#allocation2 + $0x50] sm:$0xf] %v1128_v41  ;;  %v6128_v54 = vmax.f32 %v345_v49, 0.0  ;;  %v260_v41 = vpop.f32.mrf.mxu0 }
  0xf3   :  { %1414 = vst [vmem:[#allocation2 + $0x14] sm:$0xf] %v1382_v36  ;;  %304 = vmatmul.bf16.gmra.mxu2 %v103_v6 }
  0xf4   :  { %1573 = vst [vmem:[#allocation2 + $0x474] sm:$0xf] %v1541_v48  ;;  %v710_v2 = vrot.slane %v6128_v54, 7  ;;  %v905_v10 = vsel %vm8845_vm12, %v6128_v54, 0.0  ;;  %v999_v12 = vrot.slane %v6128_v54, 1  ;;  %v1288_v20 = vpack.c.bf16 %v6128_v54, %v6128_v54 }
  0xf5   :  { %1796 = vst [vmem:[#allocation2 + $0x458] sm:$0xf] %v1764_v51  ;;  %v937_v23 = vpack.c.bf16 %v905_v10, %v905_v10  ;;  %v1574_v24 = vsel %vm8846_vm14, %v6128_v54, 0.0  ;;  %vm8892_vm12 = vcmp.lt.s32.totalorder %v5966_v4, 7  ;;  %v58_v51 = vld [vmem:[%s8840_s0 + $0x148] sm:$0xff]  ;;  %v60_v54 = vld [vmem:[%s8840_s0 + $0x158] sm:$0xff] }
  0xf6   :  { %v770_v29 = vsel %vm8848_vm8, %v709_v13, %v710_v2  ;;  %v1059_v30 = vsel %vm8892_vm12, %v998_v21, %v999_v12  ;;  %1320 = vst [vmem:[#allocation2 + $0x58] sm:$0xf] %v1288_v20  ;;  %v1606_v32 = vpack.c.bf16 %v1574_v24, %v1574_v24  ;;  %v346_v33 = vpop.f32.mrf.mxu1  ;;  %vm585_vm12 = vcmp.ge.s32.totalorder %v6149_v62, 1 }
  0xf7   :  { %v809_v34 = vsel %vm6162_vm6, %v770_v29, 0.0  ;;  %969 = vst [vmem:[#allocation2 + $0x94] sm:$0xf] %v937_v23  ;;  %v1097_v13 = vsel %vm6143_vm3, %v1059_v30, 0.0  ;;  %v1192_v21 = vsel %vm5977_vm1, %v770_v29, 0.0  ;;  %v1351_v35 = vsel %vm6135_vm0, %v1059_v30, 0.0 }
  0xf8   :  { %v841_v36 = vpack.c.bf16 %v809_v34, %v809_v34  ;;  %v1129_v37 = vpack.c.bf16 %v1097_v13, %v1097_v13  ;;  %v1224_v40 = vpack.c.bf16 %v1192_v21, %v1192_v21  ;;  %1638 = vst [vmem:[#allocation2 + $0x1c] sm:$0xf] %v1606_v32  ;;  %v1383_v42 = vpack.c.bf16 %v1351_v35, %v1351_v35 }
  0xf9   :  { %v1478_v43 = vsel %vm6193_vm7, %v770_v29, 0.0  ;;  %v1733_v48 = vsel %vm6176_vm9, %v1059_v30, 0.0  ;;  %v347_v49 = vadd.f32 %v346_v33, %v257_v38  ;;  %vm8847_vm9 = vcmp.lt.s32.totalorder %v6147_v59, 15 }
  0xfa   :  { %873 = vst [vmem:[#allocation2 + $0x90] sm:$0xf] %v841_v36  ;;  %v1510_v58 = vpack.c.bf16 %v1478_v43, %v1478_v43  ;;  %v1765_v38 = vpack.c.bf16 %v1733_v48, %v1733_v48  ;;  %vm6223_vm3 = vcmp.lt.s32.totalorder %v489_v25, 15  ;;  %v102_v22 = vpack.c.bf16 %v60_v54, %v58_v51 }
  0xfb   :  { %1161 = vst [vmem:[#allocation2 + $0x74] sm:$0xf] %v1129_v37  ;;  %v422_v10 = vmax.f32 %v347_v49, 0.0  ;;  %vm6230_vm7 = vcmp.ge.s32.totalorder %v490_v63, 1  ;;  %v523_v25 = vshra.s32 %v6220_v3, 4  ;;  %vm8899_vm14 = vcmp.lt.s32.totalorder %v5966_v4, 7  ;;  %v262_v49 = vpop.f32.mrf.mxu0 }
  0xfc   :  { %1256 = vst [vmem:[#allocation2 + $0x54] sm:$0xf] %v1224_v40  ;;  %vm8900_vm6 = vcmp.ge.s32.totalorder %v6077_v5, 1 }
  0xfd   :  { %1415 = vst [vmem:[#allocation2 + $0x38] sm:$0xf] %v1383_v42  ;;  %v711_v23 = vrot.slane %v422_v10, 7  ;;  %v906_v53 = vsel %vm585_vm12, %v422_v10, 0.0  ;;  %v1000_v24 = vrot.slane %v422_v10, 1  ;;  %v1289_v27 = vpack.c.bf16 %v422_v10, %v422_v10 }
  0xfe   :  { %1542 = vst [vmem:[#allocation2 + $0x18] sm:$0xf] %v1510_v58  ;;  %v938_v29 = vpack.c.bf16 %v906_v53, %v906_v53  ;;  %v349_v30 = vpop.f32.mrf.mxu1  ;;  %v1575_v6 = vsel %vm8847_vm9, %v422_v10, 0.0  ;;  %v6265_v58 = vand.u32 15, %v523_v25 }
  0xff   :  { %1797 = vst [vmem:[#allocation2 + $0x47c] sm:$0xf] %v1765_v38  ;;  %v769_v32 = vsel %vm8848_vm8, %v710_v2, %v711_v23  ;;  %v1058_v33 = vsel %vm8899_vm14, %v999_v12, %v1000_v24  ;;  %v350_v34 = vadd.f32 %v349_v30, %v260_v41  ;;  %v65_v2 = vld [vmem:[%s8840_s0 + $0x180] sm:$0xff]  ;;  %v67_v12 = vld [vmem:[%s8840_s0 + $0x190] sm:$0xff]  ;;  %vm8901_vm14 = vcmp.lt.s32.totalorder %v6072_v1, 15 }
 0x100   :  { %v810_v13 = vsel %vm585_vm12, %v769_v32, 0.0  ;;  %970 = vst [vmem:[#allocation2 + $0xb8] sm:$0xf] %v938_v29  ;;  %v1098_v21 = vsel %vm8900_vm6, %v1058_v33, 0.0  ;;  %v1225_v35 = vpack.c.bf16 %v769_v32, %v769_v32  ;;  %v1384_v36 = vpack.c.bf16 %v1058_v33, %v1058_v33  ;;  %vm6261_vm6 = vmand %vm585_vm12, %vm6223_vm3 }
 0x101   :  { %v842_v37 = vpack.c.bf16 %v810_v13, %v810_v13  ;;  %v1130_v40 = vpack.c.bf16 %v1098_v21, %v1098_v21  ;;  %1321 = vst [vmem:[#allocation2 + $0x7c] sm:$0xf] %v1289_v27  ;;  %v1479_v41 = vsel %vm8847_vm9, %v769_v32, 0.0  ;;  %v1702_v42 = vsel %vm8901_vm14, %v1058_v33, 0.0  ;;  %388 = vmatmul.bf16.gmra.mxu1 %v102_v22 }
 0x102   :  { %1257 = vst [vmem:[#allocation2 + $0x78] sm:$0xf] %v1225_v35  ;;  %v1511_v43 = vpack.c.bf16 %v1479_v41, %v1479_v41  ;;  %v6255_v48 = vmax.f32 %v350_v34, 0.0  ;;  %v1607_v54 = vpack.c.bf16 %v1575_v6, %v1575_v6  ;;  %v105_v63 = vpack.c.bf16 %v67_v12, %v65_v2  ;;  %v62_v41 = vld [vmem:[%s8840_s0 + $0x168] sm:$0xff] }
 0x103   :  { %874 = vst [vmem:[#allocation2 + $0xb4] sm:$0xf] %v842_v37  ;;  %v1734_v38 = vpack.c.bf16 %v1702_v42, %v1702_v42  ;;  %vm8904_vm14 = vcmp.ge.s32.totalorder %v6217_v0, 1  ;;  %vm614_vm8 = vcmp.lt.s32.totalorder %v5972_v11, 15  ;;  %v491_v6 = vand.u32 15, %v6220_v3  ;;  %v64_v42 = vld [vmem:[%s8840_s0 + $0x178] sm:$0xff] }
 0x104   :  { %1162 = vst [vmem:[#allocation2 + $0x98] sm:$0xf] %v1130_v40  ;;  %v712_v10 = vrot.slane %v6255_v48, 7  ;;  %vm6272_vm9 = vmand %vm8904_vm14, %vm6230_vm7  ;;  %v1001_v27 = vrot.slane %v6255_v48, 1  ;;  %309 = vmatmul.bf16.vlgmr.msra.gmra.mxu3 %v105_v63  ;;  %v460_v34 = vadd.s32 64, %v5966_v4  ;;  %v1290_v2 = vpack.c.bf16 %v6255_v48, %v6255_v48 }
 0x105   :  { %vm8907_vm12 = vmmov %vm8904_vm14  ;;  %1416 = vst [vmem:[#allocation2 + $0x5c] sm:$0xf] %v1384_v36  ;;  %vm8909_vm14 = vcmp.lt.s32.totalorder %v5966_v4, 7  ;;  %v1576_v37 = vsel %vm614_vm8, %v6255_v48, 0.0 }
 0x106   :  { %v907_v53 = vsel %vm8907_vm12, %v6255_v48, 0.0  ;;  %1543 = vst [vmem:[#allocation2 + $0x3c] sm:$0xf] %v1511_v43  ;;  %v768_v30 = vsel %vm8908_vm5, %v711_v23, %v712_v10  ;;  %v1057_v25 = vsel %vm8909_vm14, %v1000_v24, %v1001_v27  ;;  %vm6289_vm2 = vmand %vm614_vm8, %vm5977_vm1  ;;  %v351_v33 = vpop.f32.mrf.mxu1  ;;  %vm8912_vm5 = vcmp.lt.s32.totalorder %v6147_v59, 15 }
 0x107   :  { %v939_v29 = vpack.c.bf16 %v907_v53, %v907_v53  ;;  %1639 = vst [vmem:[#allocation2 + $0x40] sm:$0xf] %v1607_v54  ;;  %vm6299_vm12 = vmand %vm8912_vm5, %vm6135_vm0  ;;  %v811_v15 = vsel %vm6272_vm9, %v768_v30, 0.0  ;;  %v1099_v24 = vsel %vm6261_vm6, %v1057_v25, 0.0  ;;  %v1194_v3 = vsel %vm6121_vm13, %v768_v30, 0.0 }
 0x108   :  { %v1353_v13 = vsel %vm6112_vm10, %v1057_v25, 0.0  ;;  %1766 = vst [vmem:[#allocation2 + $0x20] sm:$0xf] %v1734_v38  ;;  %v843_v21 = vpack.c.bf16 %v811_v15, %v811_v15  ;;  %v1131_v35 = vpack.c.bf16 %v1099_v24, %v1099_v24  ;;  %v1226_v36 = vpack.c.bf16 %v1194_v3, %v1194_v3 }
 0x109   :  { %vm587_vm1 = vcmp.ge.s32.totalorder %v6265_v58, 1  ;;  %971 = vst [vmem:[#allocation2 + $0xdc] sm:$0xf] %v939_v29  ;;  %v1480_v12 = vsel %vm6289_vm2, %v768_v30, 0.0  ;;  %v352_v40 = vadd.f32 %v351_v33, %v262_v49  ;;  %v1385_v43 = vpack.c.bf16 %v1353_v13, %v1353_v13  ;;  %v265_v49 = vpop.f32.mrf.mxu0 }
 0x10a   :  { %875 = vst [vmem:[#allocation2 + $0xd8] sm:$0xf] %v843_v21  ;;  %v1703_v51 = vsel %vm6299_vm12, %v1057_v25, 0.0  ;;  %v492_v54 = vand.u32 15, %v460_v34  ;;  %v524_v63 = vshra.s32 %v460_v34, 4  ;;  %v1512_v38 = vpack.c.bf16 %v1480_v12, %v1480_v12 }
 0x10b   :  { %1163 = vst [vmem:[#allocation2 + $0xbc] sm:$0xf] %v1131_v35  ;;  %v424_v22 = vmax.f32 %v352_v40, 0.0  ;;  %v1608_v48 = vpack.c.bf16 %v1576_v37, %v1576_v37  ;;  %vm8849_vm2 = vcmp.lt.s32.totalorder %v6050_v46, 15  ;;  %v104_v53 = vpack.c.bf16 %v64_v42, %v62_v41 }
 0x10c   :  { %1258 = vst [vmem:[#allocation2 + $0x9c] sm:$0xf] %v1226_v36  ;;  %v1735_v29 = vpack.c.bf16 %v1703_v51, %v1703_v51  ;;  %vm6330_vm9 = vcmp.lt.s32.totalorder %v491_v6, 15  ;;  %v6334_v15 = vand.u32 15, %v524_v63  ;;  %vm6336_vm6 = vcmp.ge.s32.totalorder %v492_v54, 1  ;;  %v66_v51 = vld [vmem:[%s8840_s0 + $0x188] sm:$0xff] }
 0x10d   :  { %1322 = vst [vmem:[#allocation2 + $0xa0] sm:$0xf] %v1290_v2  ;;  %v713_v30 = vrot.slane %v424_v22, 7  ;;  %v908_v32 = vsel %vm587_vm1, %v424_v22, 0.0  ;;  %v1002_v33 = vrot.slane %v424_v22, 1  ;;  %vm8919_vm14 = vcmp.lt.s32.totalorder %v5966_v4, 1 }
 0x10e   :  { %1417 = vst [vmem:[#allocation2 + $0x80] sm:$0xf] %v1385_v43  ;;  %v940_v34 = vpack.c.bf16 %v908_v32, %v908_v32  ;;  %v354_v23 = vpop.f32.mrf.mxu1  ;;  %vm8920_vm5 = vcmp.lt.s32.totalorder %v5966_v4, 7  ;;  %v6345_v6 = vadd.s32 72, %v5966_v4  ;;  %vm8921_vm12 = vcmp.ge.s32.totalorder %v6217_v0, 1  ;;  %v69_v2 = vld [vmem:[%s8840_s0 + $0x1a0] sm:$0xff] }
 0x10f   :  { %1544 = vst [vmem:[#allocation2 + $0x60] sm:$0xf] %v1512_v38  ;;  %v767_v3 = vsel %vm8919_vm14, %v712_v10, %v713_v30  ;;  %v1056_v13 = vsel %vm8920_vm5, %v1001_v27, %v1002_v33  ;;  %v355_v21 = vadd.f32 %v354_v23, %v265_v49  ;;  %v71_v10 = vld [vmem:[%s8840_s0 + $0x1b0] sm:$0xff]  ;;  %v1291_v41 = vpack.c.bf16 %v424_v22, %v424_v22  ;;  %vm6368_vm5 = vmand %vm587_vm1, %vm6330_vm9 }
 0x110   :  { %1640 = vst [vmem:[#allocation2 + $0x64] sm:$0xf] %v1608_v48  ;;  %v812_v35 = vsel %vm587_vm1, %v767_v3, 0.0  ;;  %v1100_v36 = vsel %vm8921_vm12, %v1056_v13, 0.0  ;;  %v1227_v37 = vpack.c.bf16 %v767_v3, %v767_v3  ;;  %v1481_v40 = vsel %vm8849_vm2, %v767_v3, 0.0 }
 0x111   :  { %1767 = vst [vmem:[#allocation2 + $0x44] sm:$0xf] %v1735_v29  ;;  %v844_v27 = vpack.c.bf16 %v812_v35, %v812_v35  ;;  %v1132_v12 = vpack.c.bf16 %v1100_v36, %v1100_v36  ;;  %393 = vmatmul.bf16.gmra.mxu1 %v104_v53  ;;  %v1577_v42 = vsel %vm8849_vm2, %v424_v22, 0.0  ;;  %v6361_v43 = vmax.f32 %v355_v21, 0.0  ;;  %v267_v3 = vpop.f32.mrf.mxu0 }
 0x112   :  { %972 = vst [vmem:[#allocation2 + $0x100] sm:$0xf] %v940_v34  ;;  %vm588_vm14 = vcmp.ge.s32.totalorder %v6334_v15, 1  ;;  %v1386_v54 = vpack.c.bf16 %v1056_v13, %v1056_v13  ;;  %v1704_v63 = vsel %vm614_vm8, %v1056_v13, 0.0  ;;  %v525_v38 = vshra.s32 %v6345_v6, 4 }
 0x113   :  { %876 = vst [vmem:[#allocation2 + $0xfc] sm:$0xf] %v844_v27  ;;  %v107_v22 = vpack.c.bf16 %v71_v10, %v69_v2  ;;  %v1513_v48 = vpack.c.bf16 %v1481_v40, %v1481_v40  ;;  %v714_v49 = vrot.slane %v6361_v43, 7  ;;  %vm781_vm12 = vmand %vm588_vm14, %vm6336_vm6  ;;  %v1003_v53 = vrot.slane %v6361_v43, 1 }
 0x114   :  { %1164 = vst [vmem:[#allocation2 + $0xe0] sm:$0xf] %v1132_v12  ;;  %v1609_v29 = vpack.c.bf16 %v1577_v42, %v1577_v42  ;;  %vm616_vm1 = vcmp.lt.s32.totalorder %v6077_v5, 15  ;;  %v909_v11 = vsel %vm588_vm14, %v6361_v43, 0.0  ;;  %v1736_v32 = vpack.c.bf16 %v1704_v63, %v1704_v63 }
 0x115   :  { %1259 = vst [vmem:[#allocation2 + $0xc0] sm:$0xf] %v1227_v37  ;;  %314 = vmatmul.bf16.gmra.mxu3 %v107_v22  ;;  %vm8924_vm8 = vcmp.lt.s32.totalorder %v5966_v4, 1  ;;  %vm8925_vm2 = vcmp.lt.s32.totalorder %v5966_v4, 7  ;;  %v462_v21 = vadd.s32 80, %v5966_v4  ;;  %v941_v10 = vpack.c.bf16 %v909_v11, %v909_v11 }
 0x116   :  { %1323 = vst [vmem:[#allocation2 + $0xc4] sm:$0xf] %v1291_v41  ;;  %v766_v34 = vsel %vm8924_vm8, %v713_v30, %v714_v49  ;;  %v1055_v23 = vsel %vm8925_vm2, %v1002_v33, %v1003_v53  ;;  %v356_v13 = vpop.f32.mrf.mxu1  ;;  %vm1450_vm8 = vmand %vm616_vm1, %vm6121_vm13  ;;  %v6398_v30 = vand.u32 15, %v525_v38  ;;  %vm8926_vm2 = vcmp.lt.s32.totalorder %v6050_v46, 15  ;;  %v68_v46 = vld [vmem:[%s8840_s0 + $0x198] sm:$0xff] }
 0x117   :  { %1418 = vst [vmem:[#allocation2 + $0xa4] sm:$0xf] %v1386_v54  ;;  %v813_v35 = vsel %vm781_vm12, %v766_v34, 0.0  ;;  %v1101_v36 = vsel %vm6368_vm5, %v1055_v23, 0.0  ;;  %v1196_v2 = vsel %vm6230_vm7, %v766_v34, 0.0  ;;  %vm6404_vm12 = vmand %vm8926_vm2, %vm6112_vm10  ;;  %v1355_v52 = vsel %vm6223_vm3, %v1055_v23, 0.0 }
 0x118   :  { %1545 = vst [vmem:[#allocation2 + $0x84] sm:$0xf] %v1513_v48  ;;  %v845_v33 = vpack.c.bf16 %v813_v35, %v813_v35  ;;  %v1133_v12 = vpack.c.bf16 %v1101_v36, %v1101_v36  ;;  %v357_v37 = vadd.f32 %v356_v13, %v267_v3  ;;  %v1228_v40 = vpack.c.bf16 %v1196_v2, %v1196_v2 }
 0x119   :  { %1641 = vst [vmem:[#allocation2 + $0x88] sm:$0xf] %v1609_v29  ;;  %v1482_v41 = vsel %vm1450_vm8, %v766_v34, 0.0  ;;  %v526_v42 = vshra.s32 %v462_v21, 4  ;;  %v1292_v44 = vpack.c.bf16 %v6361_v43, %v6361_v43  ;;  %v1578_v54 = vsel %vm616_vm1, %v6361_v43, 0.0 }
 0x11a   :  { %1768 = vst [vmem:[#allocation2 + $0x68] sm:$0xf] %v1736_v32  ;;  %v6421_v63 = vmax.f32 %v357_v37, 0.0  ;;  %vm589_vm10 = vcmp.ge.s32.totalorder %v6398_v30, 1  ;;  %v1387_v38 = vpack.c.bf16 %v1355_v52, %v1355_v52  ;;  %v1705_v22 = vsel %vm6404_vm12, %v1055_v23, 0.0 }
 0x11b   :  { %877 = vst [vmem:[#allocation2 + $0x120] sm:$0xf] %v845_v33  ;;  %v493_v48 = vand.u32 15, %v6345_v6  ;;  %v494_v29 = vand.u32 15, %v462_v21  ;;  %v1514_v11 = vpack.c.bf16 %v1482_v41, %v1482_v41  ;;  %v106_v3 = vpack.c.bf16 %v68_v46, %v66_v51 }
 0x11c   :  { %973 = vst [vmem:[#allocation2 + $0x124] sm:$0xf] %v941_v10  ;;  %v715_v32 = vrot.slane %v6421_v63, 7  ;;  %v1004_v34 = vrot.slane %v6421_v63, 1  ;;  %v1610_v43 = vpack.c.bf16 %v1578_v54, %v1578_v54  ;;  %v910_v13 = vsel %vm589_vm10, %v6421_v63, 0.0 }
 0x11d   :  { %1165 = vst [vmem:[#allocation2 + $0x104] sm:$0xf] %v1133_v12  ;;  %v6432_v36 = vand.u32 15, %v526_v42  ;;  %v6435_v23 = vadd.s32 88, %v5966_v4  ;;  %v1737_v6 = vpack.c.bf16 %v1705_v22, %v1705_v22  ;;  %vm8929_vm13 = vcmp.lt.s32.totalorder %v5966_v4, 1  ;;  %v73_v12 = vld [vmem:[%s8840_s0 + $0x1c0] sm:$0xff] }
 0x11e   :  { %1260 = vst [vmem:[#allocation2 + $0xe4] sm:$0xf] %v1228_v40  ;;  %v359_v35 = vpop.f32.mrf.mxu1  ;;  %v765_v21 = vsel %vm8929_vm13, %v714_v49, %v715_v32  ;;  %vm8930_vm5 = vcmp.lt.s32.totalorder %v5966_v4, 7  ;;  %v75_v49 = vld [vmem:[%s8840_s0 + $0x1d0] sm:$0xff]  ;;  %vm8850_vm8 = vcmp.lt.s32.totalorder %v6149_v62, 15  ;;  %vm6453_vm2 = vcmp.ge.s32.totalorder %v494_v29, 1 }
 0x11f   :  { %1324 = vst [vmem:[#allocation2 + $0xe8] sm:$0xf] %v1292_v44  ;;  %v1054_v2 = vsel %vm8930_vm5, %v1003_v53, %v1004_v34  ;;  %v360_v33 = vadd.f32 %v359_v35, %v5940_v55  ;;  %v814_v10 = vsel %vm589_vm10, %v765_v21, 0.0  ;;  %v942_v55 = vpack.c.bf16 %v910_v13, %v910_v13 }
 0x120   :  { %1419 = vst [vmem:[#allocation2 + $0xc8] sm:$0xf] %v1387_v38  ;;  %v1102_v27 = vsel %vm588_vm14, %v1054_v2, 0.0  ;;  %v846_v53 = vpack.c.bf16 %v814_v10, %v814_v10  ;;  %vm6457_vm14 = vcmp.lt.s32.totalorder %v493_v48, 15  ;;  %v527_v42 = vshra.s32 %v6435_v23, 4 }
 0x121   :  { %1546 = vst [vmem:[#allocation2 + $0xa8] sm:$0xf] %v1514_v11  ;;  %398 = vmatmul.bf16.gmra.mxu1 %v106_v3  ;;  %v1134_v40 = vpack.c.bf16 %v1102_v27, %v1102_v27  ;;  %v6461_v41 = vmax.f32 %v360_v33, 0.0  ;;  %v1229_v51 = vpack.c.bf16 %v765_v21, %v765_v21  ;;  %v1483_v46 = vsel %vm8850_vm8, %v765_v21, 0.0  ;;  %vm6482_vm5 = vmand %vm589_vm10, %vm6457_vm14 }
 0x122   :  { %1642 = vst [vmem:[#allocation2 + $0xac] sm:$0xf] %v1610_v43  ;;  %vm8851_vm12 = vcmp.ge.s32.totalorder %v6432_v36, 1  ;;  %v109_v44 = vpack.c.bf16 %v75_v49, %v73_v12  ;;  %v1293_v54 = vpack.c.bf16 %v6421_v63, %v6421_v63  ;;  %v1579_v38 = vsel %vm8850_vm8, %v6421_v63, 0.0  ;;  %v70_v49 = vld [vmem:[%s8840_s0 + $0x1a8] sm:$0xff] }
 0x123   :  { %1769 = vst [vmem:[#allocation2 + $0x8c] sm:$0xf] %v1737_v6  ;;  %v716_v22 = vrot.slane %v6461_v41, 7  ;;  %vm783_vm13 = vmand %vm8851_vm12, %vm6453_vm2  ;;  %v1005_v48 = vrot.slane %v6461_v41, 1  ;;  %v1388_v11 = vpack.c.bf16 %v1054_v2, %v1054_v2  ;;  %v1706_v63 = vsel %vm616_vm1, %v1054_v2, 0.0 }
 0x124   :  { %878 = vst [vmem:[#allocation2 + $0x144] sm:$0xf] %v846_v53  ;;  %v1515_v3 = vpack.c.bf16 %v1483_v46, %v1483_v46  ;;  %vm8937_vm8 = vcmp.lt.s32.totalorder %v5966_v4, 1  ;;  %vm8938_vm12 = vcmp.lt.s32.totalorder %v5966_v4, 7  ;;  %v6492_v6 = vand.u32 15, %v527_v42  ;;  %v72_v53 = vld [vmem:[%s8840_s0 + $0x1b8] sm:$0xff] }
 0x125   :  { %974 = vst [vmem:[#allocation2 + $0x148] sm:$0xf] %v942_v55  ;;  %319 = vmatmul.bf16.gmra.mxu3 %v109_v44  ;;  %v764_v43 = vsel %vm8937_vm8, %v715_v32, %v716_v22  ;;  %v1053_v13 = vsel %vm8938_vm12, %v1004_v34, %v1005_v48  ;;  %v1611_v21 = vpack.c.bf16 %v1579_v38, %v1579_v38  ;;  %vm8939_vm10 = vcmp.ge.s32.totalorder %v6432_v36, 1 }
 0x126   :  { %1166 = vst [vmem:[#allocation2 + $0x128] sm:$0xf] %v1134_v40  ;;  %v361_v35 = vpop.f32.mrf.mxu1  ;;  %v815_v33 = vsel %vm783_vm13, %v764_v43, 0.0  ;;  %v911_v5 = vsel %vm8939_vm10, %v6461_v41, 0.0  ;;  %v1738_v2 = vpack.c.bf16 %v1706_v63, %v1706_v63  ;;  %vm618_vm1 = vcmp.lt.s32.totalorder %v6217_v0, 15  ;;  %v74_v0 = vld [vmem:[%s8840_s0 + $0x1c8] sm:$0xff] }
 0x127   :  { %1261 = vst [vmem:[#allocation2 + $0x108] sm:$0xf] %v1229_v51  ;;  %v1103_v32 = vsel %vm6482_vm5, %v1053_v13, 0.0  ;;  %v464_v10 = vadd.s32 96, %v5966_v4  ;;  %v847_v34 = vpack.c.bf16 %v815_v33, %v815_v33  ;;  %v1198_v27 = vsel %vm6336_vm6, %v764_v43, 0.0  ;;  %vm1452_vm8 = vmand %vm618_vm1, %vm6230_vm7 }
 0x128   :  { %1325 = vst [vmem:[#allocation2 + $0x10c] sm:$0xf] %v1293_v54  ;;  %v362_v12 = vadd.f32 %v361_v35, %v5942_v56  ;;  %v943_v55 = vpack.c.bf16 %v911_v5, %v911_v5  ;;  %vm591_vm12 = vcmp.ge.s32.totalorder %v6492_v6, 1  ;;  %vm8940_vm13 = vcmp.lt.s32.totalorder %v6149_v62, 15 }
 0x129   :  { %1420 = vst [vmem:[#allocation2 + $0xec] sm:$0xf] %v1388_v11  ;;  %vm6519_vm7 = vmand %vm8940_vm13, %vm6223_vm3  ;;  %v1135_v56 = vpack.c.bf16 %v1103_v32, %v1103_v32  ;;  %v1357_v40 = vsel %vm6330_vm9, %v1053_v13, 0.0  ;;  %v496_v51 = vand.u32 15, %v464_v10  ;;  %v1230_v46 = vpack.c.bf16 %v1198_v27, %v1198_v27 }
 0x12a   :  { %1547 = vst [vmem:[#allocation2 + $0xcc] sm:$0xf] %v1515_v3  ;;  %v6525_v42 = vmax.f32 %v362_v12, 0.0  ;;  %v1484_v44 = vsel %vm1452_vm8, %v764_v43, 0.0  ;;  %v528_v54 = vshra.s32 %v464_v10, 4  ;;  %v108_v38 = vpack.c.bf16 %v72_v53, %v70_v49  ;;  %v77_v12 = vld [vmem:[%s8840_s0 + $0x1e0] sm:$0xff] }
 0x12b   :  { %1643 = vst [vmem:[#allocation2 + $0xd0] sm:$0xf] %v1611_v21  ;;  %v1294_v62 = vpack.c.bf16 %v6461_v41, %v6461_v41  ;;  %v1580_v20 = vsel %vm618_vm1, %v6461_v41, 0.0  ;;  %v1389_v63 = vpack.c.bf16 %v1357_v40, %v1357_v40  ;;  %v1707_v3 = vsel %vm6519_vm7, %v1053_v13, 0.0  ;;  %v79_v49 = vld [vmem:[%s8840_s0 + $0x1f0] sm:$0xff] }
 0x12c   :  { %1770 = vst [vmem:[#allocation2 + $0xb0] sm:$0xf] %v1738_v2  ;;  %v717_v29 = vrot.slane %v6525_v42, 7  ;;  %v1006_v11 = vrot.slane %v6525_v42, 1  ;;  %v495_v43 = vand.u32 15, %v6435_v23  ;;  %v1516_v21 = vpack.c.bf16 %v1484_v44, %v1484_v44 }
 0x12d   :  { %879 = vst [vmem:[#allocation2 + $0x168] sm:$0xf] %v847_v34  ;;  %vm8943_vm3 = vcmp.lt.s32.totalorder %v5966_v4, 1  ;;  %vm8944_vm5 = vcmp.lt.s32.totalorder %v5966_v4, 7  ;;  %v1612_v2 = vpack.c.bf16 %v1580_v20, %v1580_v20  ;;  %v912_v23 = vsel %vm591_vm12, %v6525_v42, 0.0 }
 0x12e   :  { %975 = vst [vmem:[#allocation2 + $0x16c] sm:$0xf] %v943_v55  ;;  %v364_v35 = vpop.f32.mrf.mxu1  ;;  %v763_v33 = vsel %vm8943_vm3, %v716_v22, %v717_v29  ;;  %v1052_v41 = vsel %vm8944_vm5, %v1005_v48, %v1006_v11  ;;  %v6547_v13 = vand.u32 15, %v528_v54  ;;  %v1739_v10 = vpack.c.bf16 %v1707_v3, %v1707_v3 }
 0x12f   :  { %1167 = vst [vmem:[#allocation2 + $0x14c] sm:$0xf] %v1135_v56  ;;  %v365_v5 = vadd.f32 %v364_v35, %v5950_v60  ;;  %v816_v32 = vsel %vm591_vm12, %v763_v33, 0.0  ;;  %v1104_v22 = vsel %vm8939_vm10, %v1052_v41, 0.0  ;;  %vm6551_vm8 = vcmp.ge.s32.totalorder %v496_v51, 1 }
 0x130   :  { %1262 = vst [vmem:[#allocation2 + $0x12c] sm:$0xf] %v1230_v46  ;;  %v848_v60 = vpack.c.bf16 %v816_v32, %v816_v32  ;;  %v6558_v27 = vadd.s32 104, %v5966_v4  ;;  %vm8853_vm13 = vcmp.lt.s32.totalorder %v6265_v58, 15  ;;  %vm6567_vm7 = vcmp.lt.s32.totalorder %v495_v43, 15 }
 0x131   :  { %1326 = vst [vmem:[#allocation2 + $0x130] sm:$0xf] %v1294_v62  ;;  %403 = vmatmul.bf16.gmra.mxu1 %v108_v38  ;;  %v6555_v34 = vmax.f32 %v365_v5, 0.0  ;;  %v944_v55 = vpack.c.bf16 %v912_v23, %v912_v23  ;;  %v111_v31 = vpack.c.bf16 %v79_v49, %v77_v12  ;;  %v1136_v56 = vpack.c.bf16 %v1104_v22, %v1104_v22 }
 0x132   :  { %1421 = vst [vmem:[#allocation2 + $0x110] sm:$0xf] %v1389_v63  ;;  %vm8852_vm3 = vcmp.ge.s32.totalorder %v6547_v13, 1  ;;  %v1231_v46 = vpack.c.bf16 %v763_v33, %v763_v33  ;;  %v1485_v44 = vsel %vm8853_vm13, %v763_v33, 0.0  ;;  %v1295_v54 = vpack.c.bf16 %v6525_v42, %v6525_v42 }
 0x133   :  { %1548 = vst [vmem:[#allocation2 + $0xf0] sm:$0xf] %v1516_v21  ;;  %v718_v40 = vrot.slane %v6555_v34, 7  ;;  %v1007_v51 = vrot.slane %v6555_v34, 1  ;;  %vm785_vm5 = vmand %vm8852_vm3, %vm6551_vm8  ;;  %v1581_v38 = vsel %vm8853_vm13, %v6525_v42, 0.0  ;;  %vm8949_vm10 = vcmp.lt.s32.totalorder %v5966_v4, 1 }
 0x134   :  { %1644 = vst [vmem:[#allocation2 + $0xf4] sm:$0xf] %v1612_v2  ;;  %v529_v63 = vshra.s32 %v6558_v27, 4  ;;  %vm6592_vm3 = vmand %vm591_vm12, %vm6567_vm7  ;;  %v1390_v43 = vpack.c.bf16 %v1052_v41, %v1052_v41  ;;  %v1708_v35 = vsel %vm618_vm1, %v1052_v41, 0.0  ;;  %vm8952_vm13 = vcmp.lt.s32.totalorder %v5966_v4, 7 }
 0x135   :  { %1771 = vst [vmem:[#allocation2 + $0xd4] sm:$0xf] %v1739_v10  ;;  %324 = vmatmul.bf16.gmra.mxu3 %v111_v31  ;;  %v762_v62 = vsel %vm8949_vm10, %v717_v29, %v718_v40  ;;  %v1051_v42 = vsel %vm8952_vm13, %v1006_v11, %v1007_v51  ;;  %v1517_v29 = vpack.c.bf16 %v1485_v44, %v1485_v44  ;;  %vm620_vm10 = vcmp.lt.s32.totalorder %v6334_v15, 15  ;;  %v76_v11 = vld [vmem:[%s8840_s0 + $0x1d8] sm:$0xff] }
 0x136   :  { %880 = vst [vmem:[#allocation2 + $0x18c] sm:$0xf] %v848_v60  ;;  %v366_v20 = vpop.f32.mrf.mxu1  ;;  %v817_v21 = vsel %vm785_vm5, %v762_v62, 0.0  ;;  %v1613_v33 = vpack.c.bf16 %v1581_v38, %v1581_v38  ;;  %vm8953_vm12 = vcmp.ge.s32.totalorder %v6547_v13, 1  ;;  %v1740_v41 = vpack.c.bf16 %v1708_v35, %v1708_v35  ;;  %vm1454_vm1 = vmand %vm620_vm10, %vm6336_vm6 }
 0x137   :  { %976 = vst [vmem:[#allocation2 + $0x190] sm:$0xf] %v944_v55  ;;  %v913_v5 = vsel %vm8953_vm12, %v6555_v34, 0.0  ;;  %v367_v2 = vadd.f32 %v366_v20, %v5952_v61  ;;  %v1105_v32 = vsel %vm6592_vm3, %v1051_v42, 0.0  ;;  %v6613_v23 = vand.u32 15, %v529_v63 }
 0x138   :  { %1168 = vst [vmem:[#allocation2 + $0x170] sm:$0xf] %v1136_v56  ;;  %v466_v10 = vadd.s32 112, %v5966_v4  ;;  %v849_v22 = vpack.c.bf16 %v817_v21, %v817_v21  ;;  %v1200_v61 = vsel %vm6453_vm2, %v762_v62, 0.0  ;;  %v945_v12 = vpack.c.bf16 %v913_v5, %v913_v5 }
 0x139   :  { %1263 = vst [vmem:[#allocation2 + $0x150] sm:$0xf] %v1231_v46  ;;  %v6622_v60 = vmax.f32 %v367_v2, 0.0  ;;  %v110_v49 = vpack.c.bf16 %v76_v11, %v74_v0  ;;  %vm8954_vm13 = vcmp.lt.s32.totalorder %v6265_v58, 15  ;;  %v1137_v31 = vpack.c.bf16 %v1105_v32, %v1105_v32 }
 0x13a   :  { %1327 = vst [vmem:[#allocation2 + $0x154] sm:$0xf] %v1295_v54  ;;  %vm6628_vm3 = vmand %vm8954_vm13, %vm6330_vm9  ;;  %v1359_v24 = vsel %vm6457_vm14, %v1051_v42, 0.0  ;;  %v1232_v44 = vpack.c.bf16 %v1200_v61, %v1200_v61  ;;  %v1486_v54 = vsel %vm1454_vm1, %v762_v62, 0.0  ;;  %vm593_vm6 = vcmp.ge.s32.totalorder %v6613_v23, 1 }
 0x13b   :  { %1422 = vst [vmem:[#allocation2 + $0x134] sm:$0xf] %v1390_v43  ;;  %v719_v56 = vrot.slane %v6622_v60, 7  ;;  %v1008_v46 = vrot.slane %v6622_v60, 1  ;;  %v530_v38 = vshra.s32 %v466_v10, 4  ;;  %v1296_v58 = vpack.c.bf16 %v6555_v34, %v6555_v34 }
 0x13c   :  { %1549 = vst [vmem:[#allocation2 + $0x114] sm:$0xf] %v1517_v29  ;;  %v1582_v20 = vsel %vm620_vm10, %v6555_v34, 0.0  ;;  %vm8957_vm9 = vcmp.lt.s32.totalorder %v5966_v4, 1  ;;  %v1391_v43 = vpack.c.bf16 %v1359_v24, %v1359_v24  ;;  %v1709_v62 = vsel %vm6628_vm3, %v1051_v42, 0.0 }
 0x13d   :  { %1645 = vst [vmem:[#allocation2 + $0x118] sm:$0xf] %v1613_v33  ;;  %v761_v63 = vsel %vm8957_vm9, %v718_v40, %v719_v56  ;;  %vm8958_vm5 = vcmp.lt.s32.totalorder %v5966_v4, 7  ;;  %v498_v29 = vand.u32 15, %v466_v10  ;;  %v1518_v21 = vpack.c.bf16 %v1486_v54, %v1486_v54 }
 0x13e   :  { %1772 = vst [vmem:[#allocation2 + $0xf8] sm:$0xf] %v1740_v41  ;;  %v369_v25 = vpop.f32.mrf.mxu1  ;;  %v1050_v35 = vsel %vm8958_vm5, %v1007_v51, %v1008_v46  ;;  %v497_v33 = vand.u32 15, %v6558_v27  ;;  %v818_v34 = vsel %vm593_vm6, %v761_v63, 0.0  ;;  %v1614_v40 = vpack.c.bf16 %v1582_v20, %v1582_v20 }
 0x13f   :  { %881 = vst [vmem:[#allocation2 + $0x1b0] sm:$0xf] %v849_v22  ;;  %v370_v3 = vadd.f32 %v369_v25, %v5970_v8  ;;  %v914_v8 = vsel %vm593_vm6, %v6622_v60, 0.0  ;;  %v6657_v42 = vand.u32 15, %v530_v38  ;;  %v1741_v51 = vpack.c.bf16 %v1709_v62, %v1709_v62 }
 0x140   :  { %977 = vst [vmem:[#allocation2 + $0x1b4] sm:$0xf] %v945_v12  ;;  %v1106_v2 = vsel %vm8953_vm12, %v1050_v35, 0.0  ;;  %v850_v27 = vpack.c.bf16 %v818_v34, %v818_v34  ;;  %vm6661_vm1 = vcmp.ge.s32.totalorder %v498_v29, 1  ;;  %v6667_v41 = vadd.s32 120, %v5966_v4 }
 0x141   :  { %1169 = vst [vmem:[#allocation2 + $0x194] sm:$0xf] %v1137_v31  ;;  %408 = vmatmul.bf16.gmra.mxu1 %v110_v49  ;;  %v6655_v5 = vmax.f32 %v370_v3, 0.0  ;;  %vm621_vm13 = vcmp.lt.s32.totalorder %v6398_v30, 15  ;;  %v946_v32 = vpack.c.bf16 %v914_v8, %v914_v8  ;;  %vm6671_vm3 = vcmp.lt.s32.totalorder %v497_v33, 15  ;;  %v78_v3 = vld [vmem:[%s8840_s0 + $0x1e8] sm:$0xff] }
 0x142   :  { %1264 = vst [vmem:[#allocation2 + $0x174] sm:$0xf] %v1232_v44  ;;  %v1138_v61 = vpack.c.bf16 %v1106_v2, %v1106_v2  ;;  %vm8854_vm9 = vcmp.ge.s32.totalorder %v6657_v42, 1  ;;  %v1233_v49 = vpack.c.bf16 %v761_v63, %v761_v63  ;;  %v1487_v55 = vsel %vm621_vm13, %v761_v63, 0.0 }
 0x143   :  { %1328 = vst [vmem:[#allocation2 + $0x178] sm:$0xf] %v1296_v58  ;;  %v720_v11 = vrot.slane %v6655_v5, 7  ;;  %v1009_v10 = vrot.slane %v6655_v5, 1  ;;  %vm8963_vm5 = vcmp.lt.s32.totalorder %v5966_v4, 1  ;;  %vm787_vm12 = vmand %vm8854_vm9, %vm6661_vm1  ;;  %v1297_v24 = vpack.c.bf16 %v6622_v60, %v6622_v60 }
 0x144   :  { %1423 = vst [vmem:[#allocation2 + $0x158] sm:$0xf] %v1391_v43  ;;  %v1583_v44 = vsel %vm621_vm13, %v6622_v60, 0.0  ;;  %v531_v54 = vshra.s32 %v6667_v41, 4  ;;  %v1392_v25 = vpack.c.bf16 %v1050_v35, %v1050_v35  ;;  %v1710_v38 = vsel %vm620_vm10, %v1050_v35, 0.0  ;;  %v80_v43 = vld [vmem:[%s8840_s0 + $0x1f8] sm:$0xff] }
 0x145   :  { %1550 = vst [vmem:[#allocation2 + $0x138] sm:$0xf] %v1518_v21  ;;  %v760_v31 = vsel %vm8963_vm5, %v719_v56, %v720_v11  ;;  %vm6694_vm5 = vmand %vm593_vm6, %vm6671_vm3  ;;  %vm8966_vm9 = vcmp.lt.s32.totalorder %v5966_v4, 7  ;;  %v1519_v20 = vpack.c.bf16 %v1487_v55, %v1487_v55  ;;  %v1615_v15 = vpack.c.bf16 %v1583_v44, %v1583_v44 }
 0x146   :  { %1646 = vst [vmem:[#allocation2 + $0x13c] sm:$0xf] %v1614_v40  ;;  %v371_v12 = vpop.f32.mrf.mxu1  ;;  %v1049_v60 = vsel %vm8966_vm9, %v1008_v46, %v1009_v10  ;;  %v819_v63 = vsel %vm787_vm12, %v760_v31, 0.0  ;;  %vm622_vm10 = vcmp.lt.s32.totalorder %v6432_v36, 15  ;;  %vm8967_vm6 = vcmp.ge.s32.totalorder %v6657_v42, 1  ;;  %vm6734_vm12 = vmand %vm621_vm13, %vm6457_vm14 }
 0x147   :  { %1773 = vst [vmem:[#allocation2 + $0x11c] sm:$0xf] %v1741_v51  ;;  %v372_v58 = vadd.f32 %v371_v12, %v5994_v18  ;;  %v915_v46 = vsel %vm8967_vm6, %v6655_v5, 0.0  ;;  %v1742_v62 = vpack.c.bf16 %v1710_v38, %v1710_v38  ;;  %v1107_v35 = vsel %vm6694_vm5, %v1049_v60, 0.0  ;;  %vm1456_vm9 = vmand %vm622_vm10, %vm6453_vm2 }
 0x148   :  { %882 = vst [vmem:[#allocation2 + $0x1d4] sm:$0xf] %v850_v27  ;;  %v6719_v29 = vand.u32 15, %v531_v54  ;;  %v468_v21 = vadd.s32 128, %v5966_v4  ;;  %v851_v33 = vpack.c.bf16 %v819_v63, %v819_v63  ;;  %v1202_v34 = vsel %vm6551_vm8, %v760_v31, 0.0  ;;  %vm8972_vm5 = vmmov %vm8967_vm6 }
 0x149   :  { %978 = vst [vmem:[#allocation2 + $0x1d8] sm:$0xf] %v946_v32  ;;  %v6715_v18 = vmax.f32 %v372_v58, 0.0  ;;  %v112_v8 = vpack.c.bf16 %v80_v43, %v78_v3  ;;  %v947_v51 = vpack.c.bf16 %v915_v46, %v915_v46  ;;  %v1139_v52 = vpack.c.bf16 %v1107_v35, %v1107_v35  ;;  %v290_v43 = vpop.f32.mrf.mxu2 }
 0x14a   :  { %1170 = vst [vmem:[#allocation2 + $0x1b8] sm:$0xf] %v1138_v61  ;;  %v1361_v61 = vsel %vm6567_vm7, %v1049_v60, 0.0  ;;  %v1488_v55 = vsel %vm1456_vm9, %v760_v31, 0.0  ;;  %vm8970_vm2 = vcmp.lt.s32.totalorder %v5966_v4, 1  ;;  %v532_v44 = vshra.s32 %v468_v21, 4 }
 0x14b   :  { %1265 = vst [vmem:[#allocation2 + $0x198] sm:$0xf] %v1233_v49  ;;  %v721_v40 = vrot.slane %v6715_v18, 7  ;;  %v1010_v2 = vrot.slane %v6715_v18, 1  ;;  %v1234_v49 = vpack.c.bf16 %v1202_v34, %v1202_v34  ;;  %v1298_v30 = vpack.c.bf16 %v6655_v5, %v6655_v5 }
 0x14c   :  { %1329 = vst [vmem:[#allocation2 + $0x19c] sm:$0xf] %v1297_v24  ;;  %v1584_v37 = vsel %vm622_vm10, %v6655_v5, 0.0  ;;  %vm595_vm14 = vcmp.ge.s32.totalorder %v6719_v29, 1  ;;  %v500_v54 = vand.u32 15, %v468_v21  ;;  %v1711_v31 = vsel %vm6734_vm12, %v1049_v60, 0.0 }
 0x14d   :  { %1424 = vst [vmem:[#allocation2 + $0x17c] sm:$0xf] %v1392_v25  ;;  %v759_v24 = vsel %vm8970_vm2, %v720_v11, %v721_v40  ;;  %vm8971_vm13 = vcmp.lt.s32.totalorder %v5966_v4, 7  ;;  %v1520_v25 = vpack.c.bf16 %v1488_v55, %v1488_v55  ;;  %v1616_v58 = vpack.c.bf16 %v1584_v37, %v1584_v37 }
 0x14e   :  { %1551 = vst [vmem:[#allocation2 + $0x15c] sm:$0xf] %v1519_v20  ;;  %v374_v27 = vpop.f32.mrf.mxu1  ;;  %v1048_v11 = vsel %vm8971_vm13, %v1009_v10, %v1010_v2  ;;  %v820_v38 = vsel %vm595_vm14, %v759_v24, 0.0  ;;  %v499_v20 = vand.u32 15, %v6667_v41  ;;  %v916_v60 = vsel %vm595_vm14, %v6715_v18, 0.0 }
 0x14f   :  { %1647 = vst [vmem:[#allocation2 + $0x160] sm:$0xf] %v1615_v15  ;;  %v375_v12 = vadd.f32 %v374_v27, %v6016_v26  ;;  %v1393_v26 = vpack.c.bf16 %v1361_v61, %v1361_v61  ;;  %v6765_v63 = vand.u32 15, %v532_v44  ;;  %v1743_v5 = vpack.c.bf16 %v1711_v31, %v1711_v31 }
 0x150   :  { %1774 = vst [vmem:[#allocation2 + $0x140] sm:$0xf] %v1742_v62  ;;  %v1108_v10 = vsel %vm8972_vm5, %v1048_v11, 0.0  ;;  %v852_v15 = vpack.c.bf16 %v820_v38, %v820_v38  ;;  %vm6770_vm6 = vcmp.ge.s32.totalorder %v500_v54, 1  ;;  %v6775_v62 = vadd.s32 136, %v5966_v4 }
 0x151   :  { %883 = vst [vmem:[#allocation2 + $0x1f8] sm:$0xf] %v851_v33  ;;  %413 = vmatmul.bf16.gmra.mxu1 %v112_v8  ;;  %v6757_v56 = vmax.f32 %v375_v12, 0.0  ;;  %vm8856_vm9 = vcmp.lt.s32.totalorder %v6492_v6, 15  ;;  %v948_v35 = vpack.c.bf16 %v916_v60, %v916_v60  ;;  %vm6779_vm12 = vcmp.lt.s32.totalorder %v499_v20, 15 }
 0x152   :  { %979 = vst [vmem:[#allocation2 + $0x1fc] sm:$0xf] %v947_v51  ;;  %v1140_v34 = vpack.c.bf16 %v1108_v10, %v1108_v10  ;;  %vm8855_vm2 = vcmp.ge.s32.totalorder %v6765_v63, 1  ;;  %v1235_v8 = vpack.c.bf16 %v759_v24, %v759_v24  ;;  %v1489_v51 = vsel %vm8856_vm9, %v759_v24, 0.0 }
 0x153   :  { %1171 = vst [vmem:[#allocation2 + $0x1dc] sm:$0xf] %v1139_v52  ;;  %v722_v3 = vrot.slane %v6757_v56, 7  ;;  %v1011_v21 = vrot.slane %v6757_v56, 1  ;;  %vm8977_vm13 = vcmp.lt.s32.totalorder %v5966_v4, 1  ;;  %vm789_vm5 = vmand %vm8855_vm2, %vm6770_vm6  ;;  %v1299_v52 = vpack.c.bf16 %v6715_v18, %v6715_v18 }
 0x154   :  { %1266 = vst [vmem:[#allocation2 + $0x1bc] sm:$0xf] %v1234_v49  ;;  %v1585_v61 = vsel %vm8856_vm9, %v6715_v18, 0.0  ;;  %v533_v12 = vshra.s32 %v6775_v62, 4  ;;  %vm8978_vm2 = vcmp.lt.s32.totalorder %v5966_v4, 7  ;;  %v1521_v24 = vpack.c.bf16 %v1489_v51, %v1489_v51 }
 0x155   :  { %1330 = vst [vmem:[#allocation2 + $0x1c0] sm:$0xf] %v1298_v30  ;;  %v758_v27 = vsel %vm8977_vm13, %v721_v40, %v722_v3  ;;  %vm1077_vm13 = vmand %vm595_vm14, %vm6779_vm12  ;;  %v1394_v40 = vpack.c.bf16 %v1048_v11, %v1048_v11  ;;  %v1047_v49 = vsel %vm8978_vm2, %v1010_v2, %v1011_v21  ;;  %v1617_v30 = vpack.c.bf16 %v1585_v61, %v1585_v61 }
 0x156   :  { %1425 = vst [vmem:[#allocation2 + $0x1a0] sm:$0xf] %v1393_v26  ;;  %v376_v41 = vpop.f32.mrf.mxu1  ;;  %v821_v44 = vsel %vm789_vm5, %v758_v27, 0.0  ;;  %vm624_vm9 = vcmp.lt.s32.totalorder %v6547_v13, 15  ;;  %vm8979_vm14 = vcmp.ge.s32.totalorder %v6765_v63, 1  ;;  %v1109_v54 = vsel %vm1077_vm13, %v1047_v49, 0.0 }
 0x157   :  { %1552 = vst [vmem:[#allocation2 + $0x180] sm:$0xf] %v1520_v25  ;;  %v377_v32 = vadd.f32 %v376_v41, %v6018_v28  ;;  %v1712_v28 = vsel %vm622_vm10, %v1048_v11, 0.0  ;;  %v917_v37 = vsel %vm8979_vm14, %v6757_v56, 0.0  ;;  %v470_v2 = vadd.s32 144, %v5966_v4  ;;  %vm1458_vm10 = vmand %vm624_vm9, %vm6551_vm8 }
 0x158   :  { %1648 = vst [vmem:[#allocation2 + $0x184] sm:$0xf] %v1616_v58  ;;  %v1744_v36 = vpack.c.bf16 %v1712_v28, %v1712_v28  ;;  %v853_v31 = vpack.c.bf16 %v821_v44, %v821_v44  ;;  %v1204_v11 = vsel %vm6661_vm1, %v758_v27, 0.0  ;;  %v6823_v25 = vand.u32 15, %v533_v12  ;;  %v292_v58 = vpop.f32.mrf.mxu2 }
 0x159   :  { %1775 = vst [vmem:[#allocation2 + $0x164] sm:$0xf] %v1743_v5  ;;  %v6809_v55 = vmax.f32 %v377_v32, 0.0  ;;  %v949_v20 = vpack.c.bf16 %v917_v37, %v917_v37  ;;  %vm8980_vm2 = vcmp.lt.s32.totalorder %v6492_v6, 15  ;;  %v1141_v5 = vpack.c.bf16 %v1109_v54, %v1109_v54 }
 0x15a   :  { %884 = vst [vmem:[#allocation2 + $0x21c] sm:$0xf] %v852_v15  ;;  %vm1681_vm5 = vmand %vm8980_vm2, %vm6567_vm7  ;;  %v1363_v48 = vsel %vm6671_vm3, %v1047_v49, 0.0  ;;  %v1236_v10 = vpack.c.bf16 %v1204_v11, %v1204_v11  ;;  %v1490_v15 = vsel %vm1458_vm10, %v758_v27, 0.0  ;;  %vm8981_vm8 = vcmp.lt.s32.totalorder %v5966_v4, 1 }
 0x15b   :  { %980 = vst [vmem:[#allocation2 + $0x220] sm:$0xf] %v948_v35  ;;  %v723_v18 = vrot.slane %v6809_v55, 7  ;;  %v1012_v60 = vrot.slane %v6809_v55, 1  ;;  %v534_v41 = vshra.s32 %v470_v2, 4  ;;  %v1300_v53 = vpack.c.bf16 %v6757_v56, %v6757_v56 }
 0x15c   :  { %1172 = vst [vmem:[#allocation2 + $0x200] sm:$0xf] %v1140_v34  ;;  %v1586_v6 = vsel %vm624_vm9, %v6757_v56, 0.0  ;;  %vm597_vm7 = vcmp.ge.s32.totalorder %v6823_v25, 1  ;;  %v1395_v34 = vpack.c.bf16 %v1363_v48, %v1363_v48  ;;  %vm8982_vm13 = vcmp.lt.s32.totalorder %v5966_v4, 7 }
 0x15d   :  { %1267 = vst [vmem:[#allocation2 + $0x1e0] sm:$0xf] %v1235_v8  ;;  %v1713_v8 = vsel %vm1681_vm5, %v1047_v49, 0.0  ;;  %v1046_v51 = vsel %vm8982_vm13, %v1011_v21, %v1012_v60  ;;  %v1522_v27 = vpack.c.bf16 %v1490_v15, %v1490_v15  ;;  %v501_v56 = vand.u32 15, %v6775_v62 }
 0x15e   :  { %1331 = vst [vmem:[#allocation2 + $0x1e4] sm:$0xf] %v1299_v52  ;;  %v379_v26 = vpop.f32.mrf.mxu1  ;;  %v1618_v52 = vpack.c.bf16 %v1586_v6, %v1586_v6  ;;  %v918_v61 = vsel %vm597_vm7, %v6809_v55, 0.0  ;;  %v6852_v12 = vand.u32 15, %v534_v41  ;;  %v1745_v28 = vpack.c.bf16 %v1713_v8, %v1713_v8 }
 0x15f   :  { %1426 = vst [vmem:[#allocation2 + $0x1c4] sm:$0xf] %v1394_v40  ;;  %v380_v38 = vadd.f32 %v379_v26, %v290_v43  ;;  %v757_v43 = vsel %vm8981_vm8, %v722_v3, %v723_v18  ;;  %v502_v3 = vand.u32 15, %v470_v2  ;;  %v1110_v21 = vsel %vm8979_vm14, %v1046_v51, 0.0 }
 0x160   :  { %1553 = vst [vmem:[#allocation2 + $0x1a4] sm:$0xf] %v1521_v24  ;;  %v822_v32 = vsel %vm597_vm7, %v757_v43, 0.0  ;;  %vm8858_vm10 = vcmp.lt.s32.totalorder %v6613_v23, 15  ;;  %v950_v44 = vpack.c.bf16 %v918_v61, %v918_v61  ;;  %v295_v54 = vpop.f32.mrf.mxu2  ;;  %vm6866_vm5 = vcmp.lt.s32.totalorder %v501_v56, 15 }
 0x161   :  { %1649 = vst [vmem:[#allocation2 + $0x1a8] sm:$0xf] %v1617_v30  ;;  %v6842_v35 = vmax.f32 %v380_v38, 0.0  ;;  %v854_v24 = vpack.c.bf16 %v822_v32, %v822_v32  ;;  %vm6858_vm2 = vcmp.ge.s32.totalorder %v502_v3, 1  ;;  %v1142_v2 = vpack.c.bf16 %v1110_v21, %v1110_v21 }
 0x162   :  { %1776 = vst [vmem:[#allocation2 + $0x188] sm:$0xf] %v1744_v36  ;;  %v6864_v36 = vadd.s32 152, %v5966_v4  ;;  %vm8857_vm8 = vcmp.ge.s32.totalorder %v6852_v12, 1  ;;  %v1491_v11 = vsel %vm8858_vm10, %v757_v43, 0.0  ;;  %vm8987_vm13 = vcmp.lt.s32.totalorder %v5966_v4, 1 }
 0x163   :  { %885 = vst [vmem:[#allocation2 + $0x240] sm:$0xf] %v853_v31  ;;  %v724_v49 = vrot.slane %v6842_v35, 7  ;;  %v1013_v30 = vrot.slane %v6842_v35, 1  ;;  %v1237_v31 = vpack.c.bf16 %v757_v43, %v757_v43  ;;  %vm791_vm14 = vmand %vm8857_vm8, %vm6858_vm2  ;;  %v1714_v48 = vsel %vm624_vm9, %v1046_v51, 0.0 }
 0x164   :  { %981 = vst [vmem:[#allocation2 + $0x244] sm:$0xf] %v949_v20  ;;  %v1587_v20 = vsel %vm8858_vm10, %v6809_v55, 0.0  ;;  %vm8988_vm8 = vcmp.lt.s32.totalorder %v5966_v4, 7  ;;  %v535_v15 = vshra.s32 %v6864_v36, 4  ;;  %vm626_vm10 = vcmp.lt.s32.totalorder %v6657_v42, 15 }
 0x165   :  { %1173 = vst [vmem:[#allocation2 + $0x224] sm:$0xf] %v1141_v5  ;;  %v756_v38 = vsel %vm8987_vm13, %v723_v18, %v724_v49  ;;  %vm1079_vm13 = vmand %vm597_vm7, %vm6866_vm5  ;;  %v1396_v18 = vpack.c.bf16 %v1046_v51, %v1046_v51  ;;  %vm8989_vm7 = vcmp.ge.s32.totalorder %v6852_v12, 1  ;;  %v1746_v6 = vpack.c.bf16 %v1714_v48, %v1714_v48 }
 0x166   :  { %1268 = vst [vmem:[#allocation2 + $0x204] sm:$0xf] %v1236_v10  ;;  %v381_v40 = vpop.f32.mrf.mxu1  ;;  %v1045_v10 = vsel %vm8988_vm8, %v1012_v60, %v1013_v30  ;;  %v823_v43 = vsel %vm791_vm14, %v756_v38, 0.0  ;;  %v919_v13 = vsel %vm8989_vm7, %v6842_v35, 0.0  ;;  %v472_v60 = vadd.s32 160, %v5966_v4  ;;  %vm1460_vm9 = vmand %vm626_vm10, %vm6661_vm1 }
 0x167   :  { %1332 = vst [vmem:[#allocation2 + $0x208] sm:$0xf] %v1300_v53  ;;  %v382_v37 = vadd.f32 %v381_v40, %v292_v58  ;;  %v1301_v58 = vpack.c.bf16 %v6809_v55, %v6809_v55  ;;  %v1523_v55 = vpack.c.bf16 %v1491_v11, %v1491_v11  ;;  %v1619_v53 = vpack.c.bf16 %v1587_v20, %v1587_v20 }
 0x168   :  { %1427 = vst [vmem:[#allocation2 + $0x1e8] sm:$0xf] %v1395_v34  ;;  %v1111_v34 = vsel %vm1079_vm13, %v1045_v10, 0.0  ;;  %v855_v51 = vpack.c.bf16 %v823_v43, %v823_v43  ;;  %v1206_v3 = vsel %vm6770_vm6, %v756_v38, 0.0  ;;  %vm8990_vm8 = vcmp.lt.s32.totalorder %v6613_v23, 15 }
 0x169   :  { %1554 = vst [vmem:[#allocation2 + $0x1c8] sm:$0xf] %v1522_v27  ;;  %v6886_v5 = vmax.f32 %v382_v37, 0.0  ;;  %v6911_v27 = vand.u32 15, %v535_v15  ;;  %vm6918_vm14 = vmand %vm8990_vm8, %vm6671_vm3  ;;  %v1143_v0 = vpack.c.bf16 %v1111_v34, %v1111_v34  ;;  %v1365_v40 = vsel %vm6779_vm12, %v1045_v10, 0.0 }
 0x16a   :  { %1650 = vst [vmem:[#allocation2 + $0x1cc] sm:$0xf] %v1618_v52  ;;  %v951_v52 = vpack.c.bf16 %v919_v13, %v919_v13  ;;  %v1238_v21 = vpack.c.bf16 %v1206_v3, %v1206_v3  ;;  %vm8993_vm1 = vcmp.lt.s32.totalorder %v5966_v4, 1  ;;  %v536_v37 = vshra.s32 %v472_v60, 4 }
 0x16b   :  { %1777 = vst [vmem:[#allocation2 + $0x1ac] sm:$0xf] %v1745_v28  ;;  %v725_v8 = vrot.slane %v6886_v5, 7  ;;  %v1014_v56 = vrot.slane %v6886_v5, 1  ;;  %v297_v28 = vpop.f32.mrf.mxu2  ;;  %v1302_v23 = vpack.c.bf16 %v6842_v35, %v6842_v35  ;;  %v1588_v22 = vsel %vm626_vm10, %v6842_v35, 0.0 }
 0x16c   :  { %886 = vst [vmem:[#allocation2 + $0x264] sm:$0xf] %v854_v24  ;;  %v1492_v24 = vsel %vm1460_vm9, %v756_v38, 0.0  ;;  %vm599_vm3 = vcmp.ge.s32.totalorder %v6911_v27, 1  ;;  %vm8994_vm13 = vcmp.lt.s32.totalorder %v5966_v4, 7  ;;  %v504_v11 = vand.u32 15, %v472_v60 }
 0x16d   :  { %982 = vst [vmem:[#allocation2 + $0x268] sm:$0xf] %v950_v44  ;;  %v755_v44 = vsel %vm8993_vm1, %v724_v49, %v725_v8  ;;  %v1044_v49 = vsel %vm8994_vm13, %v1013_v30, %v1014_v56  ;;  %v503_v48 = vand.u32 15, %v6864_v36  ;;  %v6948_v15 = vand.u32 15, %v536_v37 }
 0x16e   :  { %1174 = vst [vmem:[#allocation2 + $0x248] sm:$0xf] %v1142_v2  ;;  %v384_v41 = vpop.f32.mrf.mxu1  ;;  %v1397_v2 = vpack.c.bf16 %v1365_v40, %v1365_v40  ;;  %v824_v20 = vsel %vm599_vm3, %v755_v44, 0.0  ;;  %v1112_v30 = vsel %vm8989_vm7, %v1044_v49, 0.0  ;;  %vm6953_vm9 = vcmp.ge.s32.totalorder %v504_v11, 1 }
 0x16f   :  { %1269 = vst [vmem:[#allocation2 + $0x228] sm:$0xf] %v1237_v31  ;;  %v385_v32 = vadd.f32 %v384_v41, %v295_v54  ;;  %v1715_v31 = vsel %vm6918_vm14, %v1045_v10, 0.0  ;;  %v920_v10 = vsel %vm599_vm3, %v6886_v5, 0.0  ;;  %v856_v43 = vpack.c.bf16 %v824_v20, %v824_v20 }
 0x170   :  { %1333 = vst [vmem:[#allocation2 + $0x22c] sm:$0xf] %v1301_v58  ;;  %v1524_v58 = vpack.c.bf16 %v1492_v24, %v1492_v24  ;;  %v1747_v35 = vpack.c.bf16 %v1715_v31, %v1715_v31  ;;  %vm8860_vm8 = vcmp.lt.s32.totalorder %v6719_v29, 15  ;;  %vm6962_vm14 = vcmp.lt.s32.totalorder %v503_v48, 15 }
 0x171   :  { %1428 = vst [vmem:[#allocation2 + $0x20c] sm:$0xf] %v1396_v18  ;;  %v6932_v54 = vmax.f32 %v385_v32, 0.0  ;;  %v1620_v18 = vpack.c.bf16 %v1588_v22, %v1588_v22  ;;  %v1144_v60 = vpack.c.bf16 %v1112_v30, %v1112_v30  ;;  %vm8859_vm1 = vcmp.ge.s32.totalorder %v6948_v15, 1 }
 0x172   :  { %1555 = vst [vmem:[#allocation2 + $0x1ec] sm:$0xf] %v1523_v55  ;;  %v1493_v3 = vsel %vm8860_vm8, %v755_v44, 0.0  ;;  %vm8999_vm13 = vcmp.lt.s32.totalorder %v5966_v4, 1  ;;  %vm793_vm7 = vmand %vm8859_vm1, %vm6953_vm9  ;;  %v1303_v61 = vpack.c.bf16 %v6886_v5, %v6886_v5  ;;  %vm9000_vm1 = vcmp.lt.s32.totalorder %v5966_v4, 7 }
 0x173   :  { %1651 = vst [vmem:[#allocation2 + $0x1f0] sm:$0xf] %v1619_v53  ;;  %v726_v55 = vrot.slane %v6932_v54, 7  ;;  %v952_v53 = vpack.c.bf16 %v920_v10, %v920_v10  ;;  %v1015_v13 = vrot.slane %v6932_v54, 1  ;;  %v1525_v37 = vpack.c.bf16 %v1493_v3, %v1493_v3 }
 0x174   :  { %1778 = vst [vmem:[#allocation2 + $0x1d0] sm:$0xf] %v1746_v6  ;;  %v6960_v6 = vadd.s32 168, %v5966_v4 }
 0x175   :  { %887 = vst [vmem:[#allocation2 + $0x288] sm:$0xf] %v855_v51  ;;  %v1239_v51 = vpack.c.bf16 %v755_v44, %v755_v44  ;;  %v754_v32 = vsel %vm8999_vm13, %v725_v8, %v726_v55  ;;  %vm1081_vm13 = vmand %vm599_vm3, %vm6962_vm14  ;;  %v1398_v8 = vpack.c.bf16 %v1044_v49, %v1044_v49  ;;  %v1043_v24 = vsel %vm9000_vm1, %v1014_v56, %v1015_v13 }
 0x176   :  { %983 = vst [vmem:[#allocation2 + $0x28c] sm:$0xf] %v951_v52  ;;  %v386_v38 = vpop.f32.mrf.mxu1  ;;  %v300_v52 = vpop.f32.mrf.mxu2  ;;  %v537_v44 = vshra.s32 %v6960_v6, 4  ;;  %vm628_vm3 = vcmp.lt.s32.totalorder %v6765_v63, 15  ;;  %v1113_v31 = vsel %vm1081_vm13, %v1043_v24, 0.0  ;;  %v474_v56 = vadd.s32 176, %v5966_v4 }
 0x177   :  { %1175 = vst [vmem:[#allocation2 + $0x26c] sm:$0xf] %v1143_v0  ;;  %v387_v36 = vadd.f32 %v386_v38, %v297_v28  ;;  %v1589_v0 = vsel %vm8860_vm8, %v6886_v5, 0.0  ;;  %vm9001_vm8 = vcmp.ge.s32.totalorder %v6948_v15, 1  ;;  %v1208_v11 = vsel %vm6858_vm2, %v754_v32, 0.0 }
 0x178   :  { %1270 = vst [vmem:[#allocation2 + $0x24c] sm:$0xf] %v1238_v21  ;;  %v1716_v21 = vsel %vm626_vm10, %v1044_v49, 0.0  ;;  %v1621_v22 = vpack.c.bf16 %v1589_v0, %v1589_v0  ;;  %v921_v42 = vsel %vm9001_vm8, %v6932_v54, 0.0  ;;  %vm1462_vm10 = vmand %vm628_vm3, %vm6770_vm6  ;;  %v7007_v38 = vand.u32 15, %v537_v44 }
 0x179   :  { %1334 = vst [vmem:[#allocation2 + $0x250] sm:$0xf] %v1302_v23  ;;  %v6980_v40 = vmax.f32 %v387_v36, 0.0  ;;  %v825_v23 = vsel %vm793_vm7, %v754_v32, 0.0  ;;  %v953_v20 = vpack.c.bf16 %v921_v42, %v921_v42  ;;  %vm9002_vm8 = vcmp.lt.s32.totalorder %v6719_v29, 15 }
 0x17a   :  { %1429 = vst [vmem:[#allocation2 + $0x230] sm:$0xf] %v1397_v2  ;;  %v1748_v2 = vpack.c.bf16 %v1716_v21, %v1716_v21  ;;  %v857_v49 = vpack.c.bf16 %v825_v23, %v825_v23  ;;  %vm7014_vm1 = vmand %vm9002_vm8, %vm6779_vm12  ;;  %v1145_v46 = vpack.c.bf16 %v1113_v31, %v1113_v31  ;;  %v1367_v10 = vsel %vm6866_vm5, %v1043_v24, 0.0 }
 0x17b   :  { %1556 = vst [vmem:[#allocation2 + $0x210] sm:$0xf] %v1524_v58  ;;  %v727_v5 = vrot.slane %v6980_v40, 7  ;;  %v1494_v30 = vsel %vm1462_vm10, %v754_v32, 0.0  ;;  %vm9005_vm6 = vcmp.lt.s32.totalorder %v5966_v4, 1  ;;  %v538_v36 = vshra.s32 %v474_v56, 4 }
 0x17c   :  { %1652 = vst [vmem:[#allocation2 + $0x214] sm:$0xf] %v1620_v18  ;;  %v1016_v18 = vrot.slane %v6980_v40, 1  ;;  %v1304_v29 = vpack.c.bf16 %v6932_v54, %v6932_v54  ;;  %v1590_v33 = vsel %vm628_vm3, %v6932_v54, 0.0  ;;  %vm601_vm12 = vcmp.ge.s32.totalorder %v7007_v38, 1 }
 0x17d   :  { %1779 = vst [vmem:[#allocation2 + $0x1f4] sm:$0xf] %v1747_v35  ;;  %v1240_v35 = vpack.c.bf16 %v1208_v11, %v1208_v11  ;;  %v1399_v3 = vpack.c.bf16 %v1367_v10, %v1367_v10  ;;  %vm9006_vm7 = vcmp.lt.s32.totalorder %v5966_v4, 7  ;;  %v922_v21 = vsel %vm601_vm12, %v6980_v40, 0.0 }
 0x17e   :  { %888 = vst [vmem:[#allocation2 + $0x2ac] sm:$0xf] %v856_v43  ;;  %v389_v28 = vpop.f32.mrf.mxu1  ;;  %v753_v43 = vsel %vm9005_vm6, %v726_v55, %v727_v5  ;;  %v1717_v55 = vsel %vm7014_vm1, %v1043_v24, 0.0  ;;  %v1042_v32 = vsel %vm9006_vm7, %v1015_v13, %v1016_v18  ;;  %v7042_v24 = vand.u32 15, %v538_v36 }
 0x17f   :  { %984 = vst [vmem:[#allocation2 + $0x2b0] sm:$0xf] %v952_v53  ;;  %v390_v58 = vadd.f32 %v389_v28, %v300_v52  ;;  %v506_v52 = vand.u32 15, %v474_v56  ;;  %v826_v0 = vsel %vm601_vm12, %v753_v43, 0.0  ;;  %v1622_v28 = vpack.c.bf16 %v1590_v33, %v1590_v33 }
 0x180   :  { %1176 = vst [vmem:[#allocation2 + $0x290] sm:$0xf] %v1144_v60  ;;  %v1749_v54 = vpack.c.bf16 %v1717_v55, %v1717_v55  ;;  %vm9007_vm13 = vcmp.ge.s32.totalorder %v6948_v15, 1  ;;  %vm8862_vm8 = vcmp.lt.s32.totalorder %v6823_v25, 15  ;;  %vm8861_vm6 = vcmp.ge.s32.totalorder %v7042_v24, 1 }
 0x181   :  { %1271 = vst [vmem:[#allocation2 + $0x270] sm:$0xf] %v1239_v51  ;;  %v7028_v60 = vmax.f32 %v390_v58, 0.0  ;;  %v302_v51 = vpop.f32.mrf.mxu2  ;;  %v1114_v13 = vsel %vm9007_vm13, %v1042_v32, 0.0  ;;  %vm7047_vm10 = vcmp.ge.s32.totalorder %v506_v52, 1  ;;  %v1241_v11 = vpack.c.bf16 %v753_v43, %v753_v43 }
 0x182   :  { %1335 = vst [vmem:[#allocation2 + $0x274] sm:$0xf] %v1303_v61  ;;  %v1526_v61 = vpack.c.bf16 %v1494_v30, %v1494_v30  ;;  %v1146_v56 = vpack.c.bf16 %v1114_v13, %v1114_v13  ;;  %v1495_v58 = vsel %vm8862_vm8, %v753_v43, 0.0  ;;  %vm9012_vm7 = vcmp.lt.s32.totalorder %v5966_v4, 1  ;;  %vm795_vm13 = vmand %vm8861_vm6, %vm7047_vm10 }
 0x183   :  { %1430 = vst [vmem:[#allocation2 + $0x254] sm:$0xf] %v1398_v8  ;;  %v505_v8 = vand.u32 15, %v6960_v6  ;;  %v728_v44 = vrot.slane %v7028_v60, 7  ;;  %v1017_v42 = vrot.slane %v7028_v60, 1  ;;  %v1305_v48 = vpack.c.bf16 %v6980_v40, %v6980_v40 }
 0x184   :  { %1557 = vst [vmem:[#allocation2 + $0x234] sm:$0xf] %v1525_v37  ;;  %v858_v37 = vpack.c.bf16 %v826_v0, %v826_v0  ;;  %vm9013_vm6 = vcmp.lt.s32.totalorder %v5966_v4, 7  ;;  %v1527_v36 = vpack.c.bf16 %v1495_v58, %v1495_v58  ;;  %v1306_v26 = vpack.c.bf16 %v7028_v60, %v7028_v60 }
 0x185   :  { %1653 = vst [vmem:[#allocation2 + $0x238] sm:$0xf] %v1621_v22  ;;  %v954_v22 = vpack.c.bf16 %v922_v21, %v922_v21  ;;  %vm7056_vm1 = vcmp.lt.s32.totalorder %v505_v8, 15  ;;  %v1041_v30 = vsel %vm9013_vm6, %v1016_v18, %v1017_v42  ;;  %v476_v18 = vadd.s32 192, %v5966_v4 }
 0x186   :  { %1780 = vst [vmem:[#allocation2 + $0x218] sm:$0xf] %v1748_v2  ;;  %v391_v53 = vpop.f32.mrf.mxu1  ;;  %v7054_v2 = vadd.s32 184, %v5966_v4  ;;  %vm9015_vm6 = vcmp.lt.s32.totalorder %v6823_v25, 15  ;;  %v1369_v62 = vsel %vm6962_vm14, %v1041_v30, 0.0 }
 0x187   :  { %889 = vst [vmem:[#allocation2 + $0x2d0] sm:$0xf] %v857_v49  ;;  %v392_v6 = vadd.f32 %v391_v53, %v302_v51 }
 0x188   :  { %985 = vst [vmem:[#allocation2 + $0x2d4] sm:$0xf] %v953_v20  ;;  %v752_v20 = vsel %vm9012_vm7, %v727_v5, %v728_v44  ;;  %vm1083_vm7 = vmand %vm601_vm12, %vm7056_vm1  ;;  %v1400_v5 = vpack.c.bf16 %v1042_v32, %v1042_v32  ;;  %v539_v43 = vshra.s32 %v7054_v2, 4  ;;  %vm9014_vm12 = vcmp.ge.s32.totalorder %v7042_v24, 1 }
 0x189   :  { %1177 = vst [vmem:[#allocation2 + $0x2b4] sm:$0xf] %v1145_v46  ;;  %v1591_v46 = vsel %vm8862_vm8, %v6980_v40, 0.0  ;;  %v7074_v10 = vmax.f32 %v392_v6, 0.0  ;;  %v305_v40 = vpop.f32.mrf.mxu2  ;;  %v827_v53 = vsel %vm795_vm13, %v752_v20, 0.0  ;;  %vm630_vm8 = vcmp.lt.s32.totalorder %v6852_v12, 15  ;;  %vm1687_vm13 = vmand %vm9015_vm6, %vm6866_vm5 }
 0x18a   :  { %1272 = vst [vmem:[#allocation2 + $0x294] sm:$0xf] %v1240_v35  ;;  %v1718_v35 = vsel %vm628_vm3, %v1042_v32, 0.0  ;;  %v923_v63 = vsel %vm9014_vm12, %v7028_v60, 0.0  ;;  %v1115_v51 = vsel %vm1083_vm7, %v1041_v30, 0.0  ;;  %v859_v55 = vpack.c.bf16 %v827_v53, %v827_v53  ;;  %vm1464_vm3 = vmand %vm630_vm8, %vm6858_vm2 }
 0x18b   :  { %1336 = vst [vmem:[#allocation2 + $0x298] sm:$0xf] %v1304_v29  ;;  %v1623_v29 = vpack.c.bf16 %v1591_v46, %v1591_v46  ;;  %v1750_v33 = vpack.c.bf16 %v1718_v35, %v1718_v35  ;;  %v1210_v32 = vsel %vm6953_vm9, %v752_v20, 0.0  ;;  %v7099_v52 = vand.u32 15, %v539_v43 }
 0x18c   :  { %1431 = vst [vmem:[#allocation2 + $0x278] sm:$0xf] %v1399_v3  ;;  %v729_v3 = vrot.slane %v7074_v10, 7  ;;  %v955_v0 = vpack.c.bf16 %v923_v63, %v923_v63  ;;  %v1147_v21 = vpack.c.bf16 %v1115_v51, %v1115_v51  ;;  %v1496_v13 = vsel %vm1464_vm3, %v752_v20, 0.0 }
 0x18d   :  { %1558 = vst [vmem:[#allocation2 + $0x258] sm:$0xf] %v1526_v61  ;;  %vm9016_vm2 = vcmp.lt.s32.totalorder %v5966_v4, 1  ;;  %v540_v6 = vshra.s32 %v476_v18, 4  ;;  %v1592_v25 = vsel %vm630_vm8, %v7028_v60, 0.0  ;;  %vm603_vm5 = vcmp.ge.s32.totalorder %v7099_v52, 1 }
 0x18e   :  { %1654 = vst [vmem:[#allocation2 + $0x25c] sm:$0xf] %v1622_v28  ;;  %v394_v49 = vpop.f32.mrf.mxu1  ;;  %v1018_v28 = vrot.slane %v7074_v10, 1  ;;  %vm9017_vm7 = vcmp.lt.s32.totalorder %v5966_v4, 7  ;;  %v1528_v58 = vpack.c.bf16 %v1496_v13, %v1496_v13  ;;  %v1624_v46 = vpack.c.bf16 %v1592_v25, %v1592_v25 }
 0x18f   :  { %1781 = vst [vmem:[#allocation2 + $0x23c] sm:$0xf] %v1749_v54  ;;  %v395_v61 = vadd.f32 %v394_v49, %v305_v40  ;;  %v1242_v54 = vpack.c.bf16 %v1210_v32, %v1210_v32  ;;  %v1719_v49 = vsel %vm1687_vm13, %v1041_v30, 0.0  ;;  %v924_v35 = vsel %vm603_vm5, %v7074_v10, 0.0 }
 0x190   :  { %890 = vst [vmem:[#allocation2 + $0x2f4] sm:$0xf] %v858_v37  ;;  %v751_v37 = vsel %vm9016_vm2, %v728_v44, %v729_v3  ;;  %v1040_v44 = vsel %vm9017_vm7, %v1017_v42, %v1018_v28  ;;  %v7132_v30 = vand.u32 15, %v540_v6  ;;  %v1751_v60 = vpack.c.bf16 %v1719_v49, %v1719_v49 }
 0x191   :  { %986 = vst [vmem:[#allocation2 + $0x2f8] sm:$0xf] %v954_v22  ;;  %v7118_v22 = vmax.f32 %v395_v61, 0.0  ;;  %v828_v20 = vsel %vm603_vm5, %v751_v37, 0.0  ;;  %v1116_v42 = vsel %vm9014_vm12, %v1040_v44, 0.0  ;;  %vm8864_vm6 = vcmp.lt.s32.totalorder %v6911_v27, 15 }
 0x192   :  { %1178 = vst [vmem:[#allocation2 + $0x2d8] sm:$0xf] %v1146_v56  ;;  %v1401_v56 = vpack.c.bf16 %v1369_v62, %v1369_v62  ;;  %v860_v40 = vpack.c.bf16 %v828_v20, %v828_v20  ;;  %v7144_v51 = vadd.s32 200, %v5966_v4  ;;  %vm8863_vm2 = vcmp.ge.s32.totalorder %v7132_v30, 1 }
 0x193   :  { %1273 = vst [vmem:[#allocation2 + $0x2b8] sm:$0xf] %v1241_v11  ;;  %v508_v11 = vand.u32 15, %v476_v18  ;;  %v730_v43 = vrot.slane %v7118_v22, 7  ;;  %v1019_v63 = vrot.slane %v7118_v22, 1  ;;  %v1243_v32 = vpack.c.bf16 %v751_v37, %v751_v37 }
 0x194   :  { %1337 = vst [vmem:[#allocation2 + $0x2bc] sm:$0xf] %v1305_v48  ;;  %v307_v48 = vpop.f32.mrf.mxu2  ;;  %v1497_v61 = vsel %vm8864_vm6, %v751_v37, 0.0  ;;  %vm9022_vm7 = vcmp.lt.s32.totalorder %v5966_v4, 1  ;;  %v541_v37 = vshra.s32 %v7144_v51, 4 }
 0x195   :  { %1432 = vst [vmem:[#allocation2 + $0x29c] sm:$0xf] %v1400_v5  ;;  %v507_v5 = vand.u32 15, %v7054_v2  ;;  %vm7137_vm3 = vcmp.ge.s32.totalorder %v508_v11, 1  ;;  %v1529_v6 = vpack.c.bf16 %v1497_v61, %v1497_v61 }
 0x196   :  { %1559 = vst [vmem:[#allocation2 + $0x27c] sm:$0xf] %v1527_v36  ;;  %v396_v8 = vpop.f32.mrf.mxu1  ;;  %vm797_vm12 = vmand %vm8863_vm2, %vm7137_vm3  ;;  %vm9023_vm2 = vcmp.lt.s32.totalorder %v5966_v4, 7 }
 0x197   :  { %1655 = vst [vmem:[#allocation2 + $0x280] sm:$0xf] %v1623_v29  ;;  %v397_v2 = vadd.f32 %v396_v8, %v307_v48  ;;  %v956_v29 = vpack.c.bf16 %v924_v35, %v924_v35  ;;  %vm7146_vm13 = vcmp.lt.s32.totalorder %v507_v5, 15  ;;  %v1307_v8 = vpack.c.bf16 %v7074_v10, %v7074_v10 }
 0x198   :  { %1782 = vst [vmem:[#allocation2 + $0x260] sm:$0xf] %v1750_v33  ;;  %v310_v33 = vpop.f32.mrf.mxu3  ;;  %v1039_v13 = vsel %vm9023_vm2, %v1018_v28, %v1019_v63  ;;  %v478_v28 = vadd.s32 208, %v5966_v4 }
 0x199   :  { %891 = vst [vmem:[#allocation2 + $0x318] sm:$0xf] %v859_v55  ;;  %v1148_v55 = vpack.c.bf16 %v1116_v42, %v1116_v42  ;;  %v7166_v62 = vmax.f32 %v397_v2, 0.0 }
 0x19a   :  { %987 = vst [vmem:[#allocation2 + $0x31c] sm:$0xf] %v955_v0  ;;  %v750_v0 = vsel %vm9022_vm7, %v729_v3, %v730_v43  ;;  %vm1085_vm7 = vmand %vm603_vm5, %vm7146_vm13  ;;  %v1402_v3 = vpack.c.bf16 %v1040_v44, %v1040_v44  ;;  %vm632_vm5 = vcmp.lt.s32.totalorder %v6948_v15, 15  ;;  %v542_v34 = vshra.s32 %v478_v28, 4 }
 0x19b   :  { %1179 = vst [vmem:[#allocation2 + $0x2fc] sm:$0xf] %v1147_v21  ;;  %v1593_v21 = vsel %vm8864_vm6, %v7074_v10, 0.0  ;;  %vm9024_vm6 = vcmp.ge.s32.totalorder %v7132_v30, 1  ;;  %v1117_v49 = vsel %vm1085_vm7, %v1039_v13, 0.0  ;;  %v731_v10 = vrot.slane %v7166_v62, 7 }
 0x19c   :  { %1274 = vst [vmem:[#allocation2 + $0x2dc] sm:$0xf] %v1242_v54  ;;  %v1720_v54 = vsel %vm630_vm8, %v1040_v44, 0.0  ;;  %v1625_v25 = vpack.c.bf16 %v1593_v21, %v1593_v21  ;;  %v925_v12 = vsel %vm9024_vm6, %v7118_v22, 0.0  ;;  %v1212_v11 = vsel %vm7047_vm10, %v750_v0, 0.0  ;;  %vm1466_vm8 = vmand %vm632_vm5, %vm6953_vm9 }
 0x19d   :  { %1338 = vst [vmem:[#allocation2 + $0x2e0] sm:$0xf] %v1306_v26  ;;  %v829_v26 = vsel %vm797_vm12, %v750_v0, 0.0  ;;  %v1020_v5 = vrot.slane %v7166_v62, 1  ;;  %vm9025_vm6 = vcmp.lt.s32.totalorder %v6911_v27, 15  ;;  %v1149_v41 = vpack.c.bf16 %v1117_v49, %v1117_v49 }
 0x19e   :  { %1433 = vst [vmem:[#allocation2 + $0x2c0] sm:$0xf] %v1401_v56  ;;  %v399_v53 = vpop.f32.mrf.mxu1  ;;  %v1752_v56 = vpack.c.bf16 %v1720_v54, %v1720_v54  ;;  %v861_v44 = vpack.c.bf16 %v829_v26, %v829_v26  ;;  %vm7200_vm2 = vmand %vm9025_vm6, %vm6962_vm14  ;;  %v1498_v2 = vsel %vm1466_vm8, %v750_v0, 0.0  ;;  %vm9028_vm9 = vcmp.lt.s32.totalorder %v5966_v4, 1 }
 0x19f   :  { %1560 = vst [vmem:[#allocation2 + $0x2a0] sm:$0xf] %v1528_v58  ;;  %v7193_v58 = vand.u32 15, %v541_v37  ;;  %v400_v20 = vadd.f32 %v399_v53, %v310_v33  ;;  %v749_v53 = vsel %vm9028_vm9, %v730_v43, %v731_v10  ;;  %v1308_v27 = vpack.c.bf16 %v7118_v22, %v7118_v22 }
 0x1a0   :  { %1656 = vst [vmem:[#allocation2 + $0x2a4] sm:$0xf] %v1624_v46  ;;  %v957_v46 = vpack.c.bf16 %v925_v12, %v925_v12  ;;  %v312_v42 = vpop.f32.mrf.mxu3  ;;  %vm9029_vm12 = vcmp.lt.s32.totalorder %v5966_v4, 7  ;;  %v510_v61 = vand.u32 15, %v478_v28  ;;  %v1530_v0 = vpack.c.bf16 %v1498_v2, %v1498_v2 }
 0x1a1   :  { %1783 = vst [vmem:[#allocation2 + $0x284] sm:$0xf] %v1751_v60  ;;  %v1371_v60 = vsel %vm7056_vm1, %v1039_v13, 0.0  ;;  %vm605_vm14 = vcmp.ge.s32.totalorder %v7193_v58, 1  ;;  %v7216_v33 = vmax.f32 %v400_v20, 0.0  ;;  %v1038_v43 = vsel %vm9029_vm12, %v1019_v63, %v1020_v5 }
 0x1a2   :  { %892 = vst [vmem:[#allocation2 + $0x33c] sm:$0xf] %v860_v40  ;;  %v1244_v40 = vpack.c.bf16 %v1212_v11, %v1212_v11  ;;  %v926_v54 = vsel %vm605_vm14, %v7166_v62, 0.0  ;;  %vm9030_vm7 = vcmp.ge.s32.totalorder %v7132_v30, 1  ;;  %vm7240_vm8 = vcmp.ge.s32.totalorder %v510_v61, 1 }
 0x1a3   :  { %988 = vst [vmem:[#allocation2 + $0x340] sm:$0xf] %v956_v29  ;;  %v1594_v29 = vsel %vm632_vm5, %v7118_v22, 0.0  ;;  %v5684_v22 = vld [vmem:[%s8841_s2 + $0x38] sm:$0xff]  ;;  %v1118_v37 = vsel %vm9030_vm7, %v1038_v43, 0.0  ;;  %vm8866_vm6 = vcmp.lt.s32.totalorder %v7007_v38, 15  ;;  %v958_v12 = vpack.c.bf16 %v926_v54, %v926_v54 }
 0x1a4   :  { %1180 = vst [vmem:[#allocation2 + $0x320] sm:$0xf] %v1148_v55  ;;  %v1403_v55 = vpack.c.bf16 %v1371_v60, %v1371_v60  ;;  %v1626_v21 = vpack.c.bf16 %v1594_v29, %v1594_v29  ;;  %3270 = vmatpush.bf16.msrb.mxu2 %v5684_v22  ;;  %v7247_v49 = vadd.s32 216, %v5966_v4  ;;  %v1150_v11 = vpack.c.bf16 %v1118_v37, %v1118_v37 }
 0x1a5   :  { %1275 = vst [vmem:[#allocation2 + $0x300] sm:$0xf] %v1243_v32  ;;  %v1721_v32 = vsel %vm7200_vm2, %v1039_v13, 0.0  ;;  %v7232_v13 = vand.u32 15, %v542_v34  ;;  %v1245_v20 = vpack.c.bf16 %v749_v53, %v749_v53  ;;  %vm9035_vm12 = vcmp.lt.s32.totalorder %v5966_v4, 1 }
 0x1a6   :  { %1339 = vst [vmem:[#allocation2 + $0x304] sm:$0xf] %v1307_v8  ;;  %v401_v48 = vpop.f32.mrf.mxu1  ;;  %v830_v8 = vsel %vm605_vm14, %v749_v53, 0.0  ;;  %v1753_v63 = vpack.c.bf16 %v1721_v32, %v1721_v32  ;;  %v1595_v60 = vsel %vm8866_vm6, %v7166_v62, 0.0 }
 0x1a7   :  { %1434 = vst [vmem:[#allocation2 + $0x2e4] sm:$0xf] %v1402_v3  ;;  %v509_v3 = vand.u32 15, %v7144_v51  ;;  %v862_v26 = vpack.c.bf16 %v830_v8, %v830_v8  ;;  %vm8865_vm9 = vcmp.ge.s32.totalorder %v7232_v13, 1  ;;  %v1627_v29 = vpack.c.bf16 %v1595_v60, %v1595_v60 }
 0x1a8   :  { %1561 = vst [vmem:[#allocation2 + $0x2c4] sm:$0xf] %v1529_v6  ;;  %v732_v6 = vrot.slane %v7216_v33, 7  ;;  %vm799_vm7 = vmand %vm8865_vm9, %vm7240_vm8  ;;  %v315_v35 = vpop.f32.mrf.mxu3  ;;  %vm9036_vm9 = vcmp.lt.s32.totalorder %v5966_v4, 7 }
 0x1a9   :  { %1657 = vst [vmem:[#allocation2 + $0x2c8] sm:$0xf] %v1625_v25  ;;  %v402_v25 = vadd.f32 %v401_v48, %v312_v42  ;;  %vm7249_vm2 = vcmp.lt.s32.totalorder %v509_v3, 15  ;;  %v1499_v48 = vsel %vm8866_vm6, %v749_v53, 0.0  ;;  %v543_v53 = vshra.s32 %v7247_v49, 4 }
 0x1aa   :  { %1784 = vst [vmem:[#allocation2 + $0x2a8] sm:$0xf] %v1752_v56  ;;  %v1021_v56 = vrot.slane %v7216_v33, 1  ;;  %v1531_v34 = vpack.c.bf16 %v1499_v48, %v1499_v48  ;;  %vm9037_vm6 = vcmp.ge.s32.totalorder %v7232_v13, 1 }
 0x1ab   :  { %893 = vst [vmem:[#allocation2 + $0x360] sm:$0xf] %v861_v44  ;;  %v7271_v42 = vmax.f32 %v402_v25, 0.0  ;;  %v927_v15 = vsel %vm9037_vm6, %v7216_v33, 0.0  ;;  %v7301_v8 = vand.u32 15, %v543_v53  ;;  %vm9038_vm6 = vcmp.lt.s32.totalorder %v7007_v38, 15 }
 0x1ac   :  { %989 = vst [vmem:[#allocation2 + $0x364] sm:$0xf] %v957_v46  ;;  %v748_v46 = vsel %vm9035_vm12, %v731_v10, %v732_v6  ;;  %vm1087_vm12 = vmand %vm605_vm14, %vm7249_vm2  ;;  %v1404_v10 = vpack.c.bf16 %v1038_v43, %v1038_v43  ;;  %v1037_v2 = vsel %vm9036_vm9, %v1020_v5, %v1021_v56  ;;  %vm634_vm14 = vcmp.lt.s32.totalorder %v7042_v24, 15  ;;  %v5697_v44 = vld [vmem:[%s8841_s2 + $0xa0] sm:$0xff] }
 0x1ad   :  { %1181 = vst [vmem:[#allocation2 + $0x344] sm:$0xf] %v1149_v41  ;;  %v1309_v41 = vpack.c.bf16 %v7166_v62, %v7166_v62  ;;  %v1119_v32 = vsel %vm1087_vm12, %v1037_v2, 0.0  ;;  %v733_v62 = vrot.slane %v7271_v42, 7  ;;  %v480_v5 = vadd.s32 224, %v5966_v4  ;;  %vm7308_vm9 = vmand %vm9038_vm6, %vm7056_vm1 }
 0x1ae   :  { %1276 = vst [vmem:[#allocation2 + $0x324] sm:$0xf] %v1244_v40  ;;  %v404_v28 = vpop.f32.mrf.mxu1  ;;  %v1722_v40 = vsel %vm632_vm5, %v1038_v43, 0.0  ;;  %v5683_v43 = vld [vmem:[%s8841_s2 + $0x30] sm:$0xff]  ;;  %vm1468_vm5 = vmand %vm634_vm14, %vm7047_vm10  ;;  %v959_v3 = vpack.c.bf16 %v927_v15, %v927_v15  ;;  %v1022_v54 = vrot.slane %v7271_v42, 1  ;;  %v1151_v23 = vpack.c.bf16 %v1119_v32, %v1119_v32 }
 0x1af   :  { %1340 = vst [vmem:[#allocation2 + $0x328] sm:$0xf] %v1308_v27  ;;  %v831_v27 = vsel %vm799_vm7, %v748_v46, 0.0  ;;  %3271 = vmatpush.bf16.msrb.mxu2 %v5683_v43  ;;  %v1500_v25 = vsel %vm1468_vm5, %v748_v46, 0.0  ;;  %vm9041_vm10 = vcmp.lt.s32.totalorder %v5966_v4, 1  ;;  %v544_v38 = vshra.s32 %v480_v5, 4 }
 0x1b0   :  { %1435 = vst [vmem:[#allocation2 + $0x308] sm:$0xf] %v1403_v55  ;;  %v1754_v55 = vpack.c.bf16 %v1722_v40, %v1722_v40  ;;  %v863_v61 = vpack.c.bf16 %v831_v27, %v831_v27  ;;  %v747_v31 = vsel %vm9041_vm10, %v732_v6, %v733_v62  ;;  %vm607_vm1 = vcmp.ge.s32.totalorder %v7301_v8, 1 }
 0x1b1   :  { %1562 = vst [vmem:[#allocation2 + $0x2e8] sm:$0xf] %v1530_v0  ;;  %v1214_v0 = vsel %vm7137_vm3, %v748_v46, 0.0  ;;  %v1723_v46 = vsel %vm7308_vm9, %v1037_v2, 0.0  ;;  %vm9042_vm7 = vcmp.lt.s32.totalorder %v5966_v4, 7  ;;  %v832_v60 = vsel %vm607_vm1, %v747_v31, 0.0 }
 0x1b2   :  { %1658 = vst [vmem:[#allocation2 + $0x2ec] sm:$0xf] %v1626_v21  ;;  %v405_v21 = vadd.f32 %v404_v28, %v315_v35  ;;  %v1596_v28 = vsel %vm634_vm14, %v7216_v33, 0.0  ;;  %v1036_v6 = vsel %vm9042_vm7, %v1021_v56, %v1022_v54  ;;  %v512_v35 = vand.u32 15, %v480_v5 }
 0x1b3   :  { %1785 = vst [vmem:[#allocation2 + $0x2cc] sm:$0xf] %v1753_v63  ;;  %v1373_v63 = vsel %vm7146_vm13, %v1037_v2, 0.0  ;;  %v511_v40 = vand.u32 15, %v7247_v49  ;;  %v928_v2 = vsel %vm607_vm1, %v7271_v42, 0.0  ;;  %v7342_v53 = vand.u32 15, %v544_v38 }
 0x1b4   :  { %894 = vst [vmem:[#allocation2 + $0x384] sm:$0xf] %v862_v26  ;;  %v1246_v26 = vpack.c.bf16 %v1214_v0, %v1214_v0  ;;  %v1405_v48 = vpack.c.bf16 %v1373_v63, %v1373_v63  ;;  %v1755_v56 = vpack.c.bf16 %v1723_v46, %v1723_v46  ;;  %vm9043_vm12 = vcmp.ge.s32.totalorder %v7232_v13, 1  ;;  %v4637_v49 = vld [vmem:[#allocation2 + $0x74] sm:$0xf0] }
 0x1b5   :  { %990 = vst [vmem:[#allocation2 + $0x388] sm:$0xf] %v958_v12  ;;  %v1310_v12 = vpack.c.bf16 %v7216_v33, %v7216_v33  ;;  %v5682_v33 = vld [vmem:[%s8841_s2 + $0x28] sm:$0xff]  ;;  %vm7350_vm5 = vcmp.ge.s32.totalorder %v512_v35, 1  ;;  %vm635_vm6 = vcmp.lt.s32.totalorder %v7099_v52, 15  ;;  %v7357_v5 = vadd.s32 232, %v5966_v4 }
 0x1b6   :  { %1182 = vst [vmem:[#allocation2 + $0x368] sm:$0xf] %v1150_v11  ;;  %v406_v37 = vpop.f32.mrf.mxu1  ;;  %v317_v11 = vpop.f32.mrf.mxu3  ;;  %3272 = vmatpush.bf16.msrb.mxu2 %v5682_v33  ;;  %vm7359_vm9 = vcmp.lt.s32.totalorder %v511_v40, 15  ;;  %vm8867_vm10 = vcmp.ge.s32.totalorder %v7342_v53, 1  ;;  %v1247_v0 = vpack.c.bf16 %v747_v31, %v747_v31  ;;  %vm9048_vm7 = vcmp.lt.s32.totalorder %v5966_v4, 1 }
 0x1b7   :  { %1277 = vst [vmem:[#allocation2 + $0x348] sm:$0xf] %v1245_v20  ;;  %v7326_v20 = vmax.f32 %v405_v21, 0.0  ;;  %v407_v15 = vadd.f32 %v406_v37, %v317_v11  ;;  %v1501_v21 = vsel %vm635_vm6, %v747_v31, 0.0  ;;  %v1597_v63 = vsel %vm635_vm6, %v7271_v42, 0.0 }
 0x1b8   :  { %1341 = vst [vmem:[#allocation2 + $0x34c] sm:$0xf] %v1309_v41  ;;  %v1532_v41 = vpack.c.bf16 %v1500_v25, %v1500_v25  ;;  %v545_v38 = vshra.s32 %v7357_v5, 4  ;;  %v1629_v11 = vpack.c.bf16 %v1597_v63, %v1597_v63 }
 0x1b9   :  { %1436 = vst [vmem:[#allocation2 + $0x32c] sm:$0xf] %v1404_v10  ;;  %v1628_v10 = vpack.c.bf16 %v1596_v28, %v1596_v28  ;;  %v734_v27 = vrot.slane %v7326_v20, 7  ;;  %v1023_v32 = vrot.slane %v7326_v20, 1  ;;  %v7381_v37 = vmax.f32 %v407_v15, 0.0  ;;  %v5708_v15 = vld [vmem:[%s8841_s2 + $0xf8] sm:$0xff] }
 0x1ba   :  { %1563 = vst [vmem:[#allocation2 + $0x30c] sm:$0xf] %v1531_v34  ;;  %v1120_v34 = vsel %vm9043_vm12, %v1036_v6, 0.0  ;;  %vm801_vm12 = vmand %vm8867_vm10, %vm7350_vm5  ;;  %vm9049_vm10 = vcmp.lt.s32.totalorder %v5966_v4, 7  ;;  %3537 = vmatpush.bf16.msra.mxu1 %v5708_v15  ;;  %v5689_v15 = vld [vmem:[%s8841_s2 + $0x60] sm:$0xff] }
 0x1bb   :  { %1659 = vst [vmem:[#allocation2 + $0x310] sm:$0xf] %v1627_v29  ;;  %v864_v29 = vpack.c.bf16 %v832_v60, %v832_v60  ;;  %v1035_v25 = vsel %vm9049_vm10, %v1022_v54, %v1023_v32  ;;  %v735_v46 = vrot.slane %v7381_v37, 7  ;;  %v5681_v54 = vld [vmem:[%s8841_s2 + $0x20] sm:$0xff]  ;;  %v1024_v33 = vrot.slane %v7381_v37, 1 }
 0x1bc   :  { %1786 = vst [vmem:[#allocation2 + $0x2f0] sm:$0xf] %v1754_v55  ;;  %v960_v55 = vpack.c.bf16 %v928_v2, %v928_v2  ;;  %3273 = vmatpush.bf16.msrb.mxu2 %v5681_v54 }
 0x1bd   :  { %895 = vst [vmem:[#allocation2 + $0x3a8] sm:$0xf] %v863_v61  ;;  %v1152_v61 = vpack.c.bf16 %v1120_v34, %v1120_v34  ;;  %v1375_v34 = vsel %vm7249_vm2, %v1035_v25, 0.0 }
 0x1be   :  { %991 = vst [vmem:[#allocation2 + $0x3ac] sm:$0xf] %v959_v3  ;;  %v746_v3 = vsel %vm9048_vm7, %v733_v62, %v734_v27  ;;  %v409_v22 = vpop.f32.mrf.mxu1  ;;  %vm1089_vm7 = vmand %vm607_vm1, %vm7359_vm9  ;;  %v1406_v62 = vpack.c.bf16 %v1036_v6, %v1036_v6  ;;  %v320_v31 = vpop.f32.mrf.mxu3  ;;  %vm636_vm1 = vcmp.lt.s32.totalorder %v7132_v30, 15 }
 0x1bf   :  { %1183 = vst [vmem:[#allocation2 + $0x38c] sm:$0xf] %v1151_v23  ;;  %v1311_v23 = vpack.c.bf16 %v7271_v42, %v7271_v42  ;;  %v833_v28 = vsel %vm801_vm12, %v746_v3, 0.0  ;;  %v1121_v42 = vsel %vm1089_vm7, %v1035_v25, 0.0  ;;  %vm7413_vm10 = vmand %vm636_vm1, %vm7137_vm3  ;;  %v410_v40 = vadd.f32 %v409_v22, %v320_v31 }
 0x1c0   :  { %1278 = vst [vmem:[#allocation2 + $0x36c] sm:$0xf] %v1246_v26  ;;  %v1724_v26 = vsel %vm634_vm14, %v1036_v6, 0.0  ;;  %vm9050_vm14 = vcmp.ge.s32.totalorder %v7342_v53, 1  ;;  %v5692_v6 = vld [vmem:[%s8841_s2 + $0x78] sm:$0xff]  ;;  %v865_v35 = vpack.c.bf16 %v833_v28, %v833_v28  ;;  %vm7424_vm12 = vmand %vm635_vm6, %vm7146_vm13  ;;  %v1502_v52 = vsel %vm7413_vm10, %v746_v3, 0.0 }
 0x1c1   :  { %1342 = vst [vmem:[#allocation2 + $0x370] sm:$0xf] %v1310_v12  ;;  %v1533_v12 = vpack.c.bf16 %v1501_v21, %v1501_v21  ;;  %v929_v24 = vsel %vm9050_vm14, %v7326_v20, 0.0  ;;  %3359 = vmatpush.bf16.msrb.mxu3 %v5692_v6  ;;  %vm9055_vm3 = vcmp.lt.s32.totalorder %v5966_v4, 1  ;;  %v1598_v21 = vsel %vm636_vm1, %v7326_v20, 0.0  ;;  %vm9057_vm7 = vmmov %vm9050_vm14 }
 0x1c2   :  { %1437 = vst [vmem:[#allocation2 + $0x350] sm:$0xf] %v1405_v48  ;;  %v1756_v48 = vpack.c.bf16 %v1724_v26, %v1724_v26  ;;  %v961_v2 = vpack.c.bf16 %v929_v24, %v929_v24  ;;  %vm9056_vm6 = vcmp.lt.s32.totalorder %v5966_v4, 7  ;;  %v5707_v24 = vld [vmem:[%s8841_s2 + $0xf0] sm:$0xff]  ;;  %vm637_vm14 = vcmp.lt.s32.totalorder %v7193_v58, 15 }
 0x1c3   :  { %1564 = vst [vmem:[#allocation2 + $0x330] sm:$0xf] %v1532_v41  ;;  %v1216_v41 = vsel %vm7240_vm8, %v746_v3, 0.0  ;;  %v7455_v3 = vmax.f32 %v410_v40, 0.0  ;;  %v7465_v63 = vsel %vm9056_vm6, %v1023_v32, %v1024_v33  ;;  %v5680_v32 = vld [vmem:[%s8841_s2 + $0x18] sm:$0xff]  ;;  %3538 = vmatpush.bf16.msra.mxu1 %v5707_v24  ;;  %v5698_v40 = vld [vmem:[%s8841_s2 + $0xa8] sm:$0xff] }
 0x1c4   :  { %1660 = vst [vmem:[#allocation2 + $0x334] sm:$0xf] %v1628_v10  ;;  %v7417_v10 = vand.u32 15, %v545_v38  ;;  %v1248_v18 = vpack.c.bf16 %v1216_v41, %v1216_v41  ;;  %v1630_v38 = vpack.c.bf16 %v1598_v21, %v1598_v21  ;;  %3274 = vmatpush.bf16.msrb.mxu2 %v5680_v32 }
 0x1c5   :  { %1787 = vst [vmem:[#allocation2 + $0x314] sm:$0xf] %v1755_v56  ;;  %v1153_v56 = vpack.c.bf16 %v1121_v42, %v1121_v42 }
 0x1c6   :  { %896 = vst [vmem:[#allocation2 + $0x3cc] sm:$0xf] %v864_v29  ;;  %v5700_v29 = vld [vmem:[%s8841_s2 + $0xb8] sm:$0xff]  ;;  %vm609_vm13 = vcmp.ge.s32.totalorder %v7417_v10, 1  ;;  %v411_v22 = vpop.f32.mrf.mxu1  ;;  %v322_v31 = vpop.f32.mrf.mxu3 }
 0x1c7   :  { %992 = vst [vmem:[#allocation2 + $0x3d0] sm:$0xf] %v960_v55  ;;  %v7444_v55 = vsel %vm9055_vm3, %v734_v27, %v735_v46  ;;  %3448 = vmatpush.bf16.msrb.mxu0 %v5700_v29  ;;  %v1407_v27 = vpack.c.bf16 %v1375_v34, %v1375_v34  ;;  %v412_v54 = vadd.f32 %v411_v22, %v322_v31  ;;  %v5679_v31 = vld [vmem:[%s8841_s2 + $0x10] sm:$0xff] }
 0x1c8   :  { %1184 = vst [vmem:[#allocation2 + $0x3b0] sm:$0xf] %v1152_v61  ;;  %v5691_v61 = vld [vmem:[%s8841_s2 + $0x70] sm:$0xff]  ;;  %v834_v26 = vsel %vm609_vm13, %v7444_v55, 0.0  ;;  %v1249_v36 = vpack.c.bf16 %v7444_v55, %v7444_v55  ;;  %3275 = vmatpush.bf16.msrb.mxu2 %v5679_v31 }
 0x1c9   :  { %1279 = vst [vmem:[#allocation2 + $0x390] sm:$0xf] %v1247_v0  ;;  %v1312_v0 = vpack.c.bf16 %v7326_v20, %v7326_v20  ;;  %3360 = vmatpush.bf16.msrb.mxu3 %v5691_v61  ;;  %v930_v20 = vsel %vm609_vm13, %v7381_v37, 0.0  ;;  %v866_v42 = vpack.c.bf16 %v834_v26, %v834_v26  ;;  %v1408_v61 = vpack.c.bf16 %v7465_v63, %v7465_v63 }
 0x1ca   :  { %1343 = vst [vmem:[#allocation2 + $0x394] sm:$0xf] %v1311_v23  ;;  %v1725_v23 = vsel %vm7424_vm12, %v1035_v25, 0.0  ;;  %v513_v25 = vand.u32 15, %v7357_v5  ;;  %v736_v5 = vrot.slane %v7455_v3, 7  ;;  %v962_v6 = vpack.c.bf16 %v930_v20, %v930_v20 }
 0x1cb   :  { %1438 = vst [vmem:[#allocation2 + $0x374] sm:$0xf] %v1406_v62  ;;  %v1534_v62 = vpack.c.bf16 %v1502_v52, %v1502_v52  ;;  %v1757_v28 = vpack.c.bf16 %v1725_v23, %v1725_v23  ;;  %vm610_vm12 = vcmp.ge.s32.totalorder %v5974_v14, 1  ;;  %v7530_v52 = vmax.f32 %v412_v54, 0.0  ;;  %v5705_v54 = vld [vmem:[%s8841_s2 + $0xe0] sm:$0xff] }
 0x1cc   :  { %1565 = vst [vmem:[#allocation2 + $0x354] sm:$0xf] %v1533_v12  ;;  %v5699_v12 = vld [vmem:[%s8841_s2 + $0xb0] sm:$0xff]  ;;  %vm7492_vm10 = vcmp.lt.s32.totalorder %v513_v25, 15  ;;  %v744_v34 = vsel %vm9055_vm3, %v735_v46, %v736_v5  ;;  %vm7518_vm6 = vmand %vm610_vm12, %vm5990_vm4  ;;  %v1599_v46 = vsel %vm637_vm14, %v7381_v37, 0.0  ;;  %vm9064_vm3 = vcmp.lt.s32.totalorder %v5966_v4, 7 }
 0x1cd   :  { %1661 = vst [vmem:[#allocation2 + $0x358] sm:$0xf] %v1629_v11  ;;  %v1122_v11 = vsel %vm9057_vm7, %v7465_v63, 0.0  ;;  %3449 = vmatpush.bf16.msrb.mxu0 %v5699_v12  ;;  %vm7536_vm7 = vmand %vm609_vm13, %vm7492_vm10  ;;  %v835_v23 = vsel %vm7518_vm6, %v744_v34, 0.0  ;;  %v931_v30 = vsel %vm610_vm12, %v7455_v3, 0.0  ;;  %v737_v26 = vrot.slane %v7530_v52, 7 }
 0x1ce   :  { %1788 = vst [vmem:[#allocation2 + $0x338] sm:$0xf] %v1756_v48  ;;  %v5690_v48 = vld [vmem:[%s8841_s2 + $0x68] sm:$0xff]  ;;  %v1154_v60 = vpack.c.bf16 %v1122_v11, %v1122_v11  ;;  %v414_v22 = vpop.f32.mrf.mxu1  ;;  %v1218_v25 = vsel %vm7350_vm5, %v744_v34, 0.0  ;;  %v1026_v20 = vrot.slane %v7530_v52, 1  ;;  %v963_v12 = vpack.c.bf16 %v931_v30, %v931_v30  ;;  %vm7574_vm6 = vmand %vm637_vm14, %vm7249_vm2  ;;  %v5695_v30 = vld [vmem:[%s8841_s2 + $0x90] sm:$0xff] }
 0x1cf   :  { %897 = vst [vmem:[#allocation2 + $0x3f0] sm:$0xf] %v865_v35  ;;  %v1025_v35 = vrot.slane %v7455_v3, 1  ;;  %3361 = vmatpush.bf16.msrb.mxu3 %v5690_v48  ;;  %v1250_v24 = vpack.c.bf16 %v1218_v25, %v1218_v25  ;;  %v1314_v48 = vpack.c.bf16 %v7455_v3, %v7455_v3  ;;  %vm611_vm2 = vcmp.ge.s32.totalorder %v6052_v47, 1  ;;  %v5686_v25 = vld [vmem:[%s8841_s2 + $0x48] sm:$0xff] }
 0x1d0   :  { %993 = vst [vmem:[#allocation2 + $0x3f4] sm:$0xf] %v961_v2  ;;  %v5706_v2 = vld [vmem:[%s8841_s2 + $0xe8] sm:$0xff]  ;;  %v932_v29 = vsel %vm611_vm2, %v7530_v52, 0.0 }
 0x1d1   :  { %1185 = vst [vmem:[#allocation2 + $0x3d4] sm:$0xf] %v1153_v56  ;;  %v1503_v56 = vsel %vm637_vm14, %v7444_v55, 0.0  ;;  %v1033_v21 = vsel %vm9064_vm3, %v1024_v33, %v1025_v35  ;;  %3450 = vmatpush.bf16.msrb.mxu0 %v5698_v40  ;;  %3539 = vmatpush.bf16.msra.mxu1 %v5706_v2  ;;  %vm9068_vm14 = vmmov %vm9064_vm3  ;;  %v5688_v40 = vld [vmem:[%s8841_s2 + $0x58] sm:$0xff]  ;;  %v5694_v47 = vld [vmem:[%s8841_s2 + $0x88] sm:$0xff] }
 0x1d2   :  { %1280 = vst [vmem:[#allocation2 + $0x3b4] sm:$0xf] %v1248_v18  ;;  %v1313_v18 = vpack.c.bf16 %v7381_v37, %v7381_v37  ;;  %v1123_v33 = vsel %vm7536_vm7, %v1033_v21, 0.0  ;;  %v1377_v51 = vsel %vm7359_vm9, %v1033_v21, 0.0  ;;  %vm580_vm7 = vcmp.ge.s32.totalorder %v6072_v1, 1 }
 0x1d3   :  { %1344 = vst [vmem:[#allocation2 + $0x3b8] sm:$0xf] %v1312_v0  ;;  %v1726_v0 = vsel %vm636_vm1, %v7465_v63, 0.0  ;;  %3362 = vmatpush.bf16.msrb.mxu3 %v5689_v15  ;;  %v325_v63 = vpop.f32.mrf.mxu3  ;;  %vm638_vm1 = vcmp.lt.s32.totalorder %v7232_v13, 15  ;;  %v1155_v11 = vpack.c.bf16 %v1123_v33, %v1123_v33  ;;  %v1409_v2 = vpack.c.bf16 %v1377_v51, %v1377_v51 }
 0x1d4   :  { %1439 = vst [vmem:[#allocation2 + $0x398] sm:$0xf] %v1407_v27  ;;  %v1535_v27 = vpack.c.bf16 %v1503_v56, %v1503_v56  ;;  %v1758_v37 = vpack.c.bf16 %v1726_v0, %v1726_v0  ;;  %vm1472_vm13 = vmand %vm638_vm1, %vm7240_vm8  ;;  %v415_v32 = vadd.f32 %v414_v22, %v325_v63  ;;  %vm9067_vm8 = vcmp.lt.s32.totalorder %v5966_v4, 1  ;;  %v5704_v0 = vld [vmem:[%s8841_s2 + $0xd8] sm:$0xff]  ;;  %v5703_v63 = vld [vmem:[%s8841_s2 + $0xd0] sm:$0xff] }
 0x1d5   :  { %1566 = vst [vmem:[#allocation2 + $0x378] sm:$0xf] %v1534_v62  ;;  %v1631_v62 = vpack.c.bf16 %v1599_v46, %v1599_v46  ;;  %v7588_v58 = vsel %vm9067_vm8, %v736_v5, %v737_v26  ;;  %v7606_v5 = vsel %vm9068_vm14, %v1025_v35, %v1026_v20  ;;  %3451 = vmatpush.bf16.msrb.mxu0 %v5697_v44  ;;  %vm9069_vm3 = vmmov %vm9067_vm8 }
 0x1d6   :  { %1662 = vst [vmem:[#allocation2 + $0x37c] sm:$0xf] %v1630_v38  ;;  %v867_v38 = vpack.c.bf16 %v835_v23, %v835_v23  ;;  %3540 = vmatpush.bf16.msra.mxu1 %v5705_v54  ;;  %v416_v35 = vpop.f32.mrf.mxu1  ;;  %v1124_v15 = vsel %vm610_vm12, %v7606_v5, 0.0  ;;  %vm639_vm12 = vcmp.lt.s32.totalorder %v7301_v8, 15  ;;  %v1410_v51 = vpack.c.bf16 %v7606_v5, %v7606_v5  ;;  %vm9074_vm8 = vmmov %vm9068_vm14 }
 0x1d7   :  { %1789 = vst [vmem:[#allocation2 + $0x35c] sm:$0xf] %v1757_v28  ;;  %3363 = vmatpush.bf16.msrb.mxu3 %v5688_v40  ;;  %v1505_v33 = vsel %vm639_vm12, %v7588_v58, 0.0  ;;  %v5678_v28 = vld [vmem:[%s8841_s2 + $0x8] sm:$0xff]  ;;  %vm581_vm14 = vcmp.ge.s32.totalorder %v6147_v59, 1 }
 0x1d8   :  { %898 = vst [vmem:[#allocation2 + $0x414] sm:$0xf] %v866_v42  ;;  %v1504_v42 = vsel %vm1472_vm13, %v744_v34, 0.0  ;;  %vm7658_vm13 = vmand %vm580_vm7, %vm6131_vm15  ;;  %v1537_v13 = vpack.c.bf16 %v1505_v33, %v1505_v33  ;;  %3276 = vmatpush.bf16.msrb.mxu2 %v5678_v28 }
 0x1d9   :  { %994 = vst [vmem:[#allocation2 + $0x418] sm:$0xf] %v962_v6  ;;  %v1600_v6 = vsel %vm638_vm1, %v7455_v3, 0.0  ;;  %v1536_v56 = vpack.c.bf16 %v1504_v42, %v1504_v42  ;;  %v836_v3 = vsel %vm611_vm2, %v7588_v58, 0.0  ;;  %v5702_v42 = vld [vmem:[%s8841_s2 + $0xc8] sm:$0xff] }
 0x1da   :  { %1186 = vst [vmem:[#allocation2 + $0x3f8] sm:$0xf] %v1154_v60  ;;  %v7608_v60 = vmax.f32 %v415_v32, 0.0  ;;  %v1632_v34 = vpack.c.bf16 %v1600_v6, %v1600_v6  ;;  %v868_v14 = vpack.c.bf16 %v836_v3, %v836_v3  ;;  %3541 = vmatpush.bf16.msra.mxu1 %v5704_v0  ;;  %v1315_v32 = vpack.c.bf16 %v7530_v52, %v7530_v52  ;;  %v5716_v6 = vld [vmem:[%s8841_s2 + $0x138] sm:$0xff] }
 0x1db   :  { %1281 = vst [vmem:[#allocation2 + $0x3d8] sm:$0xf] %v1249_v36  ;;  %v1727_v36 = vsel %vm7574_vm6, %v1033_v21, 0.0  ;;  %v327_v46 = vpop.f32.mrf.mxu3  ;;  %v5687_v21 = vld [vmem:[%s8841_s2 + $0x50] sm:$0xff]  ;;  %vm7679_vm6 = vmand %vm611_vm2, %vm6116_vm11 }
 0x1dc   :  { %1345 = vst [vmem:[#allocation2 + $0x3dc] sm:$0xf] %v1313_v18  ;;  %v1759_v18 = vpack.c.bf16 %v1727_v36, %v1727_v36  ;;  %v738_v55 = vrot.slane %v7608_v60, 7  ;;  %v417_v22 = vadd.f32 %v416_v35, %v327_v46  ;;  %v1027_v23 = vrot.slane %v7608_v60, 1  ;;  %3364 = vmatpush.bf16.msrb.mxu3 %v5687_v21  ;;  %v5693_v35 = vld [vmem:[%s8841_s2 + $0x80] sm:$0xff] }
 0x1dd   :  { %1440 = vst [vmem:[#allocation2 + $0x3bc] sm:$0xf] %v1408_v61  ;;  %v5696_v61 = vld [vmem:[%s8841_s2 + $0x98] sm:$0xff]  ;;  %v901_v54 = vsel %vm580_vm7, %v7608_v60, 0.0  ;;  %v1316_v43 = vpack.c.bf16 %v7608_v60, %v7608_v60 }
 0x1de   :  { %1567 = vst [vmem:[#allocation2 + $0x39c] sm:$0xf] %v1535_v27  ;;  %v964_v27 = vpack.c.bf16 %v932_v29, %v932_v29  ;;  %3452 = vmatpush.bf16.msrb.mxu0 %v5696_v61  ;;  %v742_v31 = vsel %vm9069_vm3, %v737_v26, %v738_v55  ;;  %v1601_v26 = vsel %vm639_vm12, %v7530_v52, 0.0  ;;  %3542 = vmatpush.bf16.msra.mxu1 %v5703_v63  ;;  %v5677_v52 = vld [vmem:[%s8841_s2] sm:$0xff] }
 0x1df   :  { %1663 = vst [vmem:[#allocation2 + $0x3a0] sm:$0xf] %v1631_v62  ;;  %v1156_v62 = vpack.c.bf16 %v1124_v15, %v1124_v15  ;;  %v1633_v44 = vpack.c.bf16 %v1601_v26, %v1601_v26  ;;  %v933_v17 = vpack.c.bf16 %v901_v54, %v901_v54  ;;  %3277 = vmatpush.bf16.msrb.mxu2 %v5677_v52 }
 0x1e0   :  { %1790 = vst [vmem:[#allocation2 + $0x380] sm:$0xf] %v1758_v37  ;;  %v1251_v37 = vpack.c.bf16 %v7588_v58, %v7588_v58  ;;  %v805_v58 = vsel %vm7658_vm13, %v742_v31, 0.0  ;;  %3365 = vmatpush.bf16.msrb.mxu3 %v5686_v25  ;;  %vm9083_vm13 = vmmov %vm9074_vm8 }
 0x1e1   :  { %899 = vst [vmem:[#allocation2 + $0x438] sm:$0xf] %v867_v38  ;;  %v837_v36 = vpack.c.bf16 %v805_v58, %v805_v58 }
 0x1e2   :  { %995 = vst [vmem:[#allocation2 + $0x43c] sm:$0xf] %v963_v12  ;;  %v7670_v12 = vmax.f32 %v417_v22, 0.0  ;;  %3453 = vmatpush.bf16.msrb.mxu0 %v5695_v30  ;;  %3543 = vmatpush.bf16.msra.mxu1 %v5702_v42 }
 0x1e3   :  { %1187 = vst [vmem:[#allocation2 + $0x41c] sm:$0xf] %v1155_v11  ;;  %3626 = vmatpush.bf16.msra.mxu2 %v5716_v6  ;;  %v4601_v6 = vld [vmem:[#allocation2 + $0x2c] sm:$0xf0] }
 0x1e4   :  { %1282 = vst [vmem:[#allocation2 + $0x3fc] sm:$0xf] %v1250_v24  ;;  %v1728_v24 = vsel %vm638_vm1, %v7606_v5, 0.0  ;;  %vm640_vm1 = vcmp.lt.s32.totalorder %v7342_v53, 15  ;;  %v1317_v25 = vpack.c.bf16 %v7670_v12, %v7670_v12 }
 0x1e5   :  { %1346 = vst [vmem:[#allocation2 + $0x400] sm:$0xf] %v1314_v48  ;;  %v1031_v48 = vsel %vm9074_vm8, %v1026_v20, %v1027_v23  ;;  %v5685_v20 = vld [vmem:[%s8841_s2 + $0x40] sm:$0xff]  ;;  %v1760_v5 = vpack.c.bf16 %v1728_v24, %v1728_v24  ;;  %vm7724_vm2 = vmand %vm640_vm1, %vm7350_vm5  ;;  %v1602_v0 = vsel %vm640_vm1, %v7608_v60, 0.0  ;;  %v902_v60 = vsel %vm581_vm14, %v7670_v12, 0.0 }
 0x1e6   :  { %1441 = vst [vmem:[#allocation2 + $0x3e0] sm:$0xf] %v1409_v2  ;;  %v1125_v40 = vsel %vm7679_vm6, %v1031_v48, 0.0  ;;  %v739_v2 = vrot.slane %v7670_v12, 7  ;;  %3454 = vmatpush.bf16.msrb.mxu0 %v5694_v47  ;;  %3366 = vmatpush.bf16.msrb.mxu3 %v5685_v20  ;;  %v1379_v15 = vsel %vm7492_vm10, %v1031_v48, 0.0  ;;  %v1506_v61 = vsel %vm7724_vm2, %v742_v31, 0.0  ;;  %vm9079_vm5 = vmmov %vm9069_vm3 }
 0x1e7   :  { %1568 = vst [vmem:[#allocation2 + $0x3c0] sm:$0xf] %v1536_v56  ;;  %v1220_v56 = vsel %vm5990_vm4, %v742_v31, 0.0  ;;  %vm7738_vm4 = vmand %vm639_vm12, %vm7359_vm9  ;;  %v1157_v29 = vpack.c.bf16 %v1125_v40, %v1125_v40  ;;  %v1538_v22 = vpack.c.bf16 %v1506_v61, %v1506_v61  ;;  %v1634_v30 = vpack.c.bf16 %v1602_v0, %v1602_v0  ;;  %v5715_v40 = vld [vmem:[%s8841_s2 + $0x130] sm:$0xff] }
 0x1e8   :  { %1664 = vst [vmem:[#allocation2 + $0x3c4] sm:$0xf] %v1632_v34  ;;  %v5701_v34 = vld [vmem:[%s8841_s2 + $0xc0] sm:$0xff]  ;;  %v1252_v46 = vpack.c.bf16 %v1220_v56, %v1220_v56  ;;  %v741_v8 = vsel %vm9079_vm5, %v738_v55, %v739_v2  ;;  %vm9080_vm9 = vmmov %vm9069_vm3  ;;  %v1729_v55 = vsel %vm7738_vm4, %v1031_v48, 0.0  ;;  %vm9082_vm3 = vnez %v8871_v16  ;;  %3627 = vmatpush.bf16.msra.mxu2 %v5715_v40  ;;  %v5546_v56 = vld [vmem:[#allocation2 + $0x68] sm:$0xf0] }
 0x1e9   :  { %1791 = vst [vmem:[#allocation2 + $0x3a4] sm:$0xf] %v1759_v18  ;;  %v1028_v18 = vrot.slane %v7670_v12, 1  ;;  %v772_v21 = vsel %vm9080_vm9, %v739_v2, %v708_v7  ;;  %3544 = vmatpush.bf16.msra.mxu1 %v5701_v34  ;;  %vm9081_vm12 = vmmov %vm9074_vm8  ;;  %v1761_v59 = vpack.c.bf16 %v1729_v55, %v1729_v55  ;;  %v934_v39 = vpack.c.bf16 %v902_v60, %v902_v60  ;;  %v5547_v34 = vld [vmem:[#allocation2 + $0x70] sm:$0xf0] }
 0x1ea   :  { %900 = vst [vmem:[#allocation2 + $0x45c] sm:$0xf] %v868_v14  ;;  %3455 = vmatpush.bf16.msrb.mxu0 %v5693_v35  ;;  %v1411_v14 = vpack.c.bf16 %v1379_v15, %v1379_v15  ;;  %v807_v7 = vsel %vm9082_vm3, %v772_v21, 0.0  ;;  %vm1063_vm6 = vmand %vm581_vm14, %vm6135_vm0  ;;  %v1190_v4 = vsel %vm6131_vm15, %v772_v21, 0.0  ;;  %vm641_vm0 = vcmp.lt.s32.totalorder %v7417_v10, 15 }
 0x1eb   :  { %996 = vst [vmem:[#allocation2 + $0x460] sm:$0xf] %v964_v27  ;;  %v806_v27 = vsel %vm581_vm14, %v741_v8, 0.0  ;;  %v1061_v63 = vsel %vm9083_vm13, %v1028_v18, %v997_v9  ;;  %v839_v16 = vpack.c.bf16 %v807_v7, %v807_v7  ;;  %v1222_v31 = vpack.c.bf16 %v1190_v4, %v1190_v4  ;;  %vm1699_vm15 = vmand %vm641_vm0, %vm7492_vm10  ;;  %v5542_v35 = vld [vmem:[#allocation2 + $0x4c] sm:$0xf] }
 0x1ec   :  { %1188 = vst [vmem:[#allocation2 + $0x440] sm:$0xf] %v1156_v62  ;;  %v1030_v62 = vsel %vm9081_vm12, %v1027_v23, %v1028_v18  ;;  %v1095_v33 = vsel %vm1063_vm6, %v1061_v63, 0.0  ;;  %v1253_v38 = vpack.c.bf16 %v741_v8, %v741_v8  ;;  %v1381_v1 = vsel %vm6116_vm11, %v1061_v63, 0.0  ;;  %v5543_v18 = vld [vmem:[#allocation2 + $0x54] sm:$0xf] }
 0x1ed   :  { %1283 = vst [vmem:[#allocation2 + $0x420] sm:$0xf] %v1251_v37  ;;  %v838_v37 = vpack.c.bf16 %v806_v27, %v806_v27  ;;  %v1094_v23 = vsel %vm580_vm7, %v1030_v62, 0.0  ;;  %v1127_v50 = vpack.c.bf16 %v1095_v33, %v1095_v33  ;;  %v1412_v57 = vpack.c.bf16 %v1030_v62, %v1030_v62  ;;  %v5555_v61 = vld [vmem:[#allocation2 + $0xb0] sm:$0xf0] }
 0x1ee   :  { %1347 = vst [vmem:[#allocation2 + $0x424] sm:$0xf] %v1315_v32  ;;  %v1126_v9 = vpack.c.bf16 %v1094_v23, %v1094_v23  ;;  %v1507_v32 = vsel %vm641_vm0, %v741_v8, 0.0  ;;  %vm9084_vm7 = vnez %v8875_v19  ;;  %v1413_v10 = vpack.c.bf16 %v1381_v1, %v1381_v1  ;;  %v4665_v8 = vld [vmem:[#allocation2 + $0xb4] sm:$0xf0] }
 0x1ef   :  { %1442 = vst [vmem:[#allocation2 + $0x404] sm:$0xf] %v1410_v51  ;;  %v1508_v26 = vsel %vm9084_vm7, %v772_v21, 0.0  ;;  %v1603_v28 = vsel %vm641_vm0, %v7670_v12, 0.0  ;;  %v1539_v45 = vpack.c.bf16 %v1507_v32, %v1507_v32  ;;  %v1730_v11 = vsel %vm640_vm1, %v1030_v62, 0.0 }
 0x1f0   :  { %1569 = vst [vmem:[#allocation2 + $0x3e4] sm:$0xf] %v1537_v13  ;;  %v1731_v51 = vsel %vm1699_vm15, %v1061_v63, 0.0  ;;  %v1540_v24 = vpack.c.bf16 %v1508_v26, %v1508_v26  ;;  %v1635_v47 = vpack.c.bf16 %v1603_v28, %v1603_v28  ;;  %v1762_v19 = vpack.c.bf16 %v1730_v11, %v1730_v11  ;;  %v5551_v21 = vld [vmem:[#allocation2 + $0x94] sm:$0xf]  ;;  %v5714_v63 = vld [vmem:[%s8841_s2 + $0x128] sm:$0xff] }
 0x1f1   :  { %1665 = vst [vmem:[#allocation2 + $0x3e8] sm:$0xf] %v1633_v44  ;;  %v1763_v52 = vpack.c.bf16 %v1731_v51, %v1731_v51  ;;  %v4668_v55 = vor.u32 %v5551_v21, %v4665_v8  ;;  %v4671_v27 = vld [vmem:[#allocation2 + $0x98] sm:$0xf]  ;;  %3628 = vmatpush.bf16.msra.mxu2 %v5714_v63  ;;  %v4701_v60 = vld [vmem:[#allocation2 + $0xfc] sm:$0xf0] }
 0x1f2   :  { %1792 = vst [vmem:[#allocation2 + $0x3c8] sm:$0xf] %v1760_v5  ;;  %v5565_v33 = vld [vmem:[#allocation2 + $0x100] sm:$0xf0]  ;;  %v4709_v4 = vld [vmem:[#allocation2 + $0x104] sm:$0xf0] }
 0x1f3   :  { %869 = vst [vmem:[#allocation2] sm:$0xf] %v837_v36  ;;  %v4629_v36 = vld [vmem:[#allocation2 + $0x6c] sm:$0xf0]  ;;  %v5573_v1 = vld [vmem:[#allocation2 + $0x140] sm:$0xf0] }
 0x1f4   :  { %965 = vst [vmem:[#allocation2 + $0x4] sm:$0xf] %v933_v17  ;;  %v4632_v17 = vor.u32 %v5542_v35, %v4629_v36  ;;  %v4735_v32 = vld [vmem:[#allocation2 + $0x120] sm:$0xf]  ;;  %v5569_v26 = vld [vmem:[#allocation2 + $0x124] sm:$0xf] }
 0x1f5   :  { %1189 = vst [vmem:[#allocation2 + $0x464] sm:$0xf] %v1157_v29  ;;  %v4635_v29 = vld [vmem:[#allocation2 + $0x50] sm:$0xf]  ;;  %v4743_v11 = vld [vmem:[#allocation2 + $0x128] sm:$0xf] }
 0x1f6   :  { %1284 = vst [vmem:[#allocation2 + $0x444] sm:$0xf] %v1252_v46  ;;  %v4636_v15 = vor.u32 %v5547_v34, %v4635_v29  ;;  %v4640_v46 = vor.u32 %v5543_v18, %v4637_v49  ;;  %v4809_v40 = vld [vmem:[#allocation2 + $0x1d4] sm:$0xf0]  ;;  %v4817_v34 = vld [vmem:[#allocation2 + $0x1dc] sm:$0xf0] }
 0x1f7   :  { %1348 = vst [vmem:[#allocation2 + $0x448] sm:$0xf] %v1316_v43  ;;  %v4663_v43 = vld [vmem:[#allocation2 + $0x90] sm:$0xf]  ;;  %v5588_v29 = vld [vmem:[#allocation2 + $0x1bc] sm:$0xf] }
 0x1f8   :  { %1443 = vst [vmem:[#allocation2 + $0x428] sm:$0xf] %v1411_v14  ;;  %v4664_v0 = vor.u32 %v5555_v61, %v4663_v43  ;;  %v5556_v14 = vld [vmem:[#allocation2 + $0xb8] sm:$0xf0]  ;;  %v4845_v61 = vld [vmem:[#allocation2 + $0x21c] sm:$0xf0] }
 0x1f9   :  { %1570 = vst [vmem:[#allocation2 + $0x408] sm:$0xf] %v1538_v22  ;;  %v4673_v22 = vld [vmem:[#allocation2 + $0xbc] sm:$0xf0]  ;;  %v4672_v62 = vor.u32 %v5556_v14, %v4671_v27  ;;  %v5712_v18 = vld [vmem:[%s8841_s2 + $0x118] sm:$0xff] }
 0x1fa   :  { %1666 = vst [vmem:[#allocation2 + $0x40c] sm:$0xf] %v1634_v30  ;;  %v4591_v48 = vld [vmem:[#allocation2] sm:$0xf]  ;;  %v5552_v30 = vld [vmem:[#allocation2 + $0x9c] sm:$0xf] }
 0x1fb   :  { %1793 = vst [vmem:[#allocation2 + $0x3ec] sm:$0xf] %v1761_v59  ;;  %v5533_v13 = vld [vmem:[#allocation2 + $0x4] sm:$0xf]  ;;  %v4676_v7 = vor.u32 %v5552_v30, %v4673_v22  ;;  %v5564_v59 = vld [vmem:[#allocation2 + $0xf8] sm:$0xf0] }
 0x1fc   :  { %870 = vst [vmem:[#allocation2 + $0x24] sm:$0xf] %v838_v37  ;;  %v4699_v37 = vld [vmem:[#allocation2 + $0xd8] sm:$0xf]  ;;  %v5601_v21 = vld [vmem:[#allocation2 + $0x220] sm:$0xf0] }
 0x1fd   :  { %871 = vst [vmem:[#allocation2 + $0x48] sm:$0xf] %v839_v16  ;;  %v4700_v23 = vor.u32 %v5564_v59, %v4699_v37  ;;  %v5560_v16 = vld [vmem:[#allocation2 + $0xdc] sm:$0xf]  ;;  %v4843_v8 = vld [vmem:[#allocation2 + $0x1f8] sm:$0xf] }
 0x1fe   :  { %966 = vst [vmem:[#allocation2 + $0x28] sm:$0xf] %v934_v39  ;;  %v4704_v39 = vor.u32 %v5560_v16, %v4701_v60  ;;  %v4851_v22 = vld [vmem:[#allocation2 + $0x200] sm:$0xf]  ;;  %v5609_v63 = vld [vmem:[#allocation2 + $0x260] sm:$0xf0] }
 0x1ff   :  { %1158 = vst [vmem:[#allocation2 + $0x8] sm:$0xf] %v1126_v9  ;;  %v4707_v9 = vld [vmem:[#allocation2 + $0xe0] sm:$0xf]  ;;  %v4852_v27 = vor.u32 %v5601_v21, %v4851_v22  ;;  %v4881_v59 = vld [vmem:[#allocation2 + $0x264] sm:$0xf0] }
 0x200   :  { %1159 = vst [vmem:[#allocation2 + $0x2c] sm:$0xf] %v1127_v50  ;;  %v4708_v50 = vor.u32 %v5565_v33, %v4707_v9  ;;  %v4879_v60 = vld [vmem:[#allocation2 + $0x240] sm:$0xf]  ;;  %v5732_v37 = vld [vmem:[%s8841_s2 + $0x1b8] sm:$0xff] }
 0x201   :  { %1254 = vst [vmem:[#allocation2 + $0xc] sm:$0xf] %v1222_v31  ;;  %v5561_v31 = vld [vmem:[#allocation2 + $0xe4] sm:$0xf]  ;;  %v5610_v33 = vld [vmem:[#allocation2 + $0x268] sm:$0xf0]  ;;  %3804 = vmatpush.bf16.msra.mxu0 %v5732_v37 }
 0x202   :  { %1285 = vst [vmem:[#allocation2 + $0x468] sm:$0xf] %v1253_v38  ;;  %v4712_v38 = vor.u32 %v5561_v31, %v4709_v4  ;;  %v5605_v16 = vld [vmem:[#allocation2 + $0x244] sm:$0xf]  ;;  %v4889_v4 = vld [vmem:[#allocation2 + $0x26c] sm:$0xf0] }
 0x203   :  { %1349 = vst [vmem:[#allocation2 + $0x46c] sm:$0xf] %v1317_v25  ;;  %v5537_v41 = vld [vmem:[#allocation2 + $0x20] sm:$0xf0]  ;;  %v4737_v25 = vld [vmem:[#allocation2 + $0x144] sm:$0xf0] }
 0x204   :  { %1444 = vst [vmem:[#allocation2 + $0x44c] sm:$0xf] %v1412_v57  ;;  %v4592_v42 = vor.u32 %v5537_v41, %v4591_v48  ;;  %v4627_v2 = vld [vmem:[#allocation2 + $0x48] sm:$0xf]  ;;  %v4736_v57 = vor.u32 %v5573_v1, %v4735_v32  ;;  %v4740_v28 = vor.u32 %v5569_v26, %v4737_v25  ;;  %v5713_v41 = vld [vmem:[%s8841_s2 + $0x120] sm:$0xff]  ;;  %v5711_v26 = vld [vmem:[%s8841_s2 + $0x110] sm:$0xff] }
 0x205   :  { %1445 = vst [vmem:[#allocation2 + $0x470] sm:$0xf] %v1413_v10  ;;  %v4593_v58 = vld [vmem:[#allocation2 + $0x24] sm:$0xf0]  ;;  %v4628_v3 = vor.u32 %v5546_v56, %v4627_v2  ;;  %v5574_v10 = vld [vmem:[#allocation2 + $0x148] sm:$0xf0]  ;;  %3629 = vmatpush.bf16.msra.mxu2 %v5713_v41 }
 0x206   :  { %1571 = vst [vmem:[#allocation2 + $0x42c] sm:$0xf] %v1539_v45  ;;  %v4596_v12 = vor.u32 %v5533_v13, %v4593_v58  ;;  %3278 = vmatmul.bf16.vlgmr.msrb.gmra.mxu2 %v4592_v42  ;;  %v4599_v20 = vld [vmem:[#allocation2 + $0x8] sm:$0xf]  ;;  %v4745_v45 = vld [vmem:[#allocation2 + $0x14c] sm:$0xf0]  ;;  %v4744_v51 = vor.u32 %v5574_v10, %v4743_v11 }
 0x207   :  { %1572 = vst [vmem:[#allocation2 + $0x450] sm:$0xf] %v1540_v24  ;;  %v5538_v53 = vld [vmem:[#allocation2 + $0x28] sm:$0xf0]  ;;  %v4773_v42 = vld [vmem:[#allocation2 + $0x18c] sm:$0xf0] }
 0x208   :  { %1667 = vst [vmem:[#allocation2 + $0x430] sm:$0xf] %v1635_v47  ;;  %3367 = vmatmul.bf16.vlgmr.msrb.gmra.mxu3 %v4596_v12  ;;  %v4600_v44 = vor.u32 %v5538_v53, %v4599_v20  ;;  %v5534_v54 = vld [vmem:[#allocation2 + $0xc] sm:$0xf]  ;;  %v4781_v20 = vld [vmem:[#allocation2 + $0x194] sm:$0xf0] }
 0x209   :  { %1794 = vst [vmem:[#allocation2 + $0x410] sm:$0xf] %v1762_v19  ;;  %v4604_v5 = vor.u32 %v5534_v54, %v4601_v6  ;;  %v5570_v24 = vld [vmem:[#allocation2 + $0x12c] sm:$0xf]  ;;  %v4771_v19 = vld [vmem:[#allocation2 + $0x168] sm:$0xf]  ;;  %3630 = vmatpush.bf16.msra.mxu2 %v5712_v18 }
 0x20a   :  { %1795 = vst [vmem:[#allocation2 + $0x434] sm:$0xf] %v1763_v52  ;;  %3456 = vmatmul.bf16.vlgmr.msrb.gmra.mxu0 %v4600_v44  ;;  %v4748_v48 = vor.u32 %v5570_v24, %v4745_v45  ;;  %v5582_v47 = vld [vmem:[#allocation2 + $0x188] sm:$0xf0]  ;;  %v5583_v52 = vld [vmem:[#allocation2 + $0x190] sm:$0xf0] }
 0x20b   :  { %3545 = vmatmul.bf16.vlgmr.msra.gmra.mxu1 %v4604_v5  ;;  %v4772_v13 = vor.u32 %v5582_v47, %v4771_v19  ;;  %v5578_v58 = vld [vmem:[#allocation2 + $0x16c] sm:$0xf]  ;;  %v4779_v53 = vld [vmem:[#allocation2 + $0x170] sm:$0xf]  ;;  %v5579_v54 = vld [vmem:[#allocation2 + $0x174] sm:$0xf] }
 0x20c   :  { %v4776_v12 = vor.u32 %v5578_v58, %v4773_v42  ;;  %v4780_v44 = vor.u32 %v5583_v52, %v4779_v53  ;;  %v4784_v6 = vor.u32 %v5579_v54, %v4781_v20  ;;  %v5591_v5 = vld [vmem:[#allocation2 + $0x1d0] sm:$0xf0]  ;;  %v4807_v2 = vld [vmem:[#allocation2 + $0x1b0] sm:$0xf]  ;;  %v5606_v1 = vld [vmem:[#allocation2 + $0x24c] sm:$0xf] }
 0x20d   :  { %v4808_v36 = vor.u32 %v5591_v5, %v4807_v2  ;;  %v5587_v56 = vld [vmem:[#allocation2 + $0x1b4] sm:$0xf]  ;;  %v4892_v25 = vor.u32 %v5606_v1, %v4889_v4  ;;  %3631 = vmatpush.bf16.msra.mxu2 %v5711_v26  ;;  %v5618_v24 = vld [vmem:[#allocation2 + $0x2a8] sm:$0xf0]  ;;  %v4917_v41 = vld [vmem:[#allocation2 + $0x2ac] sm:$0xf0] }
 0x20e   :  { %v4812_v35 = vor.u32 %v5587_v56, %v4809_v40  ;;  %v4915_v47 = vld [vmem:[#allocation2 + $0x288] sm:$0xf]  ;;  %v5619_v58 = vld [vmem:[#allocation2 + $0x2b0] sm:$0xf0]  ;;  %v4925_v20 = vld [vmem:[#allocation2 + $0x2b4] sm:$0xf0] }
 0x20f   :  { %v4916_v19 = vor.u32 %v5618_v24, %v4915_v47  ;;  %v5615_v5 = vld [vmem:[#allocation2 + $0x294] sm:$0xf]  ;;  %v4953_v18 = vld [vmem:[#allocation2 + $0x2f4] sm:$0xf0]  ;;  %v5628_v21 = vld [vmem:[#allocation2 + $0x2f8] sm:$0xf0] }
 0x210   :  { %v4928_v40 = vor.u32 %v5615_v5, %v4925_v20  ;;  %v5723_v56 = vld [vmem:[%s8841_s2 + $0x170] sm:$0xff]  ;;  %v4961_v22 = vld [vmem:[#allocation2 + $0x2fc] sm:$0xf0]  ;;  %v5632_v26 = vld [vmem:[#allocation2 + $0x31c] sm:$0xf] }
 0x211   :  { %v4989_v1 = vld [vmem:[#allocation2 + $0x33c] sm:$0xf0]  ;;  %v4997_v24 = vld [vmem:[#allocation2 + $0x344] sm:$0xf0] }
 0x212   :  { %v5722_v20 = vld [vmem:[%s8841_s2 + $0x168] sm:$0xff] }
 0x216   :  { %3283 = vmatmul.bf16.gmra.mxu2 %v4628_v3  ;;  %v5592_v3 = vld [vmem:[#allocation2 + $0x1d8] sm:$0xf0] }
 0x218   :  { %3372 = vmatmul.bf16.gmra.mxu3 %v4632_v17  ;;  %v4815_v17 = vld [vmem:[#allocation2 + $0x1b8] sm:$0xf] }
 0x219   :  { %v4816_v49 = vor.u32 %v5592_v3, %v4815_v17 }
 0x21a   :  { %3461 = vmatmul.bf16.gmra.mxu0 %v4636_v15  ;;  %v4820_v15 = vor.u32 %v5588_v29, %v4817_v34  ;;  %v5627_v29 = vld [vmem:[#allocation2 + $0x2f0] sm:$0xf0] }
 0x21b   :  { %3550 = vmatmul.bf16.gmra.mxu1 %v4640_v46  ;;  %v5600_v46 = vld [vmem:[#allocation2 + $0x218] sm:$0xf0] }
 0x21c   :  { %v4844_v43 = vor.u32 %v5600_v46, %v4843_v8  ;;  %v4951_v46 = vld [vmem:[#allocation2 + $0x2d0] sm:$0xf] }
 0x226   :  { %3288 = vmatmul.bf16.gmra.mxu2 %v4664_v0  ;;  %v5596_v0 = vld [vmem:[#allocation2 + $0x1fc] sm:$0xf] }
 0x227   :  { %v4848_v14 = vor.u32 %v5596_v0, %v4845_v61  ;;  %v5731_v61 = vld [vmem:[%s8841_s2 + $0x1b0] sm:$0xff] }
 0x228   :  { %3377 = vmatmul.bf16.gmra.mxu3 %v4668_v55  ;;  %v4853_v55 = vld [vmem:[#allocation2 + $0x224] sm:$0xf0]  ;;  %v5623_v0 = vld [vmem:[#allocation2 + $0x2d4] sm:$0xf]  ;;  %3805 = vmatpush.bf16.msra.mxu0 %v5731_v61 }
 0x22a   :  { %3466 = vmatmul.bf16.gmra.mxu0 %v4672_v62  ;;  %v5597_v62 = vld [vmem:[#allocation2 + $0x204] sm:$0xf] }
 0x22b   :  { %3555 = vmatmul.bf16.gmra.mxu1 %v4676_v7  ;;  %v4856_v30 = vor.u32 %v5597_v62, %v4853_v55  ;;  %v5724_v7 = vld [vmem:[%s8841_s2 + $0x178] sm:$0xff]  ;;  %v4956_v55 = vor.u32 %v5623_v0, %v4953_v18  ;;  %v5646_v18 = vld [vmem:[#allocation2 + $0x388] sm:$0xf0]  ;;  %v5031_v0 = vld [vmem:[#allocation2 + $0x368] sm:$0xf] }
 0x22c   :  { %3715 = vmatpush.bf16.msra.mxu3 %v5724_v7  ;;  %v4959_v62 = vld [vmem:[#allocation2 + $0x2d8] sm:$0xf] }
 0x22d   :  { %v4960_v7 = vor.u32 %v5628_v21, %v4959_v62 }
 0x230   :  { %3716 = vmatpush.bf16.msra.mxu3 %v5723_v56  ;;  %v5025_v56 = vld [vmem:[#allocation2 + $0x384] sm:$0xf0] }
 0x234   :  { %3717 = vmatpush.bf16.msra.mxu3 %v5722_v20  ;;  %v5729_v20 = vld [vmem:[%s8841_s2 + $0x1a0] sm:$0xff] }
 0x236   :  { %3293 = vmatmul.bf16.gmra.mxu2 %v4700_v23  ;;  %v4880_v23 = vor.u32 %v5609_v63, %v4879_v60  ;;  %v5624_v63 = vld [vmem:[#allocation2 + $0x2dc] sm:$0xf] }
 0x238   :  { %3382 = vmatmul.bf16.gmra.mxu3 %v4704_v39  ;;  %v4884_v39 = vor.u32 %v5605_v16, %v4881_v59  ;;  %v4964_v59 = vor.u32 %v5624_v63, %v4961_v22  ;;  %v5642_v22 = vld [vmem:[#allocation2 + $0x36c] sm:$0xf]  ;;  %v5709_v63 = vld [vmem:[%s8841_s2 + $0x100] sm:$0xff] }
 0x23a   :  { %3471 = vmatmul.bf16.gmra.mxu0 %v4708_v50  ;;  %v4887_v50 = vld [vmem:[#allocation2 + $0x248] sm:$0xf] }
 0x23b   :  { %3560 = vmatmul.bf16.gmra.mxu1 %v4712_v38  ;;  %v4888_v38 = vor.u32 %v5610_v33, %v4887_v50  ;;  %v5636_v50 = vld [vmem:[#allocation2 + $0x338] sm:$0xf0] }
 0x246   :  { %3298 = vmatmul.bf16.gmra.mxu2 %v4736_v57 }
 0x248   :  { %3387 = vmatmul.bf16.gmra.mxu3 %v4740_v28 }
 0x24a   :  { %3476 = vmatmul.bf16.gmra.mxu0 %v4744_v51 }
 0x24b   :  { %3565 = vmatmul.bf16.gmra.mxu1 %v4748_v48 }
 0x256   :  { %3303 = vmatmul.bf16.gmra.mxu2 %v4772_v13  ;;  %v5614_v13 = vld [vmem:[#allocation2 + $0x28c] sm:$0xf] }
 0x258   :  { %3392 = vmatmul.bf16.gmra.mxu3 %v4776_v12  ;;  %v4920_v12 = vor.u32 %v5614_v13, %v4917_v41  ;;  %v4995_v41 = vld [vmem:[#allocation2 + $0x320] sm:$0xf] }
 0x25a   :  { %3481 = vmatmul.bf16.gmra.mxu0 %v4780_v44  ;;  %v4923_v44 = vld [vmem:[#allocation2 + $0x290] sm:$0xf] }
 0x25b   :  { %3570 = vmatmul.bf16.gmra.mxu1 %v4784_v6  ;;  %v4924_v6 = vor.u32 %v5619_v58, %v4923_v44 }
 0x266   :  { %3308 = vmatmul.bf16.gmra.mxu2 %v4808_v36 }
 0x268   :  { %3397 = vmatmul.bf16.gmra.mxu3 %v4812_v35 }
 0x26a   :  { %3486 = vmatmul.bf16.gmra.mxu0 %v4816_v49 }
 0x26b   :  { %3575 = vmatmul.bf16.gmra.mxu1 %v4820_v15 }
 0x276   :  { %3313 = vmatmul.bf16.gmra.mxu2 %v4844_v43  ;;  %v4952_v43 = vor.u32 %v5627_v29, %v4951_v46 }
 0x278   :  { %3402 = vmatmul.bf16.gmra.mxu3 %v4848_v14 }
 0x27a   :  { %3491 = vmatmul.bf16.gmra.mxu0 %v4852_v27 }
 0x27b   :  { %3580 = vmatmul.bf16.gmra.mxu1 %v4856_v30 }
 0x286   :  { %3318 = vmatmul.bf16.gmra.mxu2 %v4880_v23  ;;  %v5710_v23 = vld [vmem:[%s8841_s2 + $0x108] sm:$0xff] }
 0x287   :  { %v3457_v9 = vpop.f32.mrf.mxu0  ;;  %3632 = vmatpush.bf16.msra.mxu2 %v5710_v23 }
 0x288   :  { %3407 = vmatmul.bf16.gmra.mxu3 %v4884_v39  ;;  %v7810_v31 = vpop.f32.mrf.mxu1 }
 0x289   :  { %v3279_v32 = vpop.f32.mrf.mxu2 }
 0x28a   :  { %3496 = vmatmul.bf16.gmra.mxu0 %v4888_v38 }
 0x28b   :  { %v3368_v57 = vpop.f32.mrf.mxu3  ;;  %3585 = vmatmul.bf16.gmra.mxu1 %v4892_v25  ;;  %v4987_v25 = vld [vmem:[#allocation2 + $0x318] sm:$0xf]  ;;  %3633 = vmatpush.bf16.msra.mxu2 %v5709_v63  ;;  %v5726_v63 = vld [vmem:[%s8841_s2 + $0x188] sm:$0xff] }
 0x28c   :  { %v3369_v10 = vadd.f32 %v3368_v57, %v3279_v32  ;;  %v4988_v57 = vor.u32 %v5636_v50, %v4987_v25  ;;  %v5654_v50 = vld [vmem:[#allocation2 + $0x3c8] sm:$0xf0]  ;;  %v5061_v25 = vld [vmem:[#allocation2 + $0x3cc] sm:$0xf0] }
 0x28e   :  { %v7815_v28 = vadd.f32 %v3457_v9, %v3369_v10  ;;  %v5637_v10 = vld [vmem:[#allocation2 + $0x340] sm:$0xf0] }
 0x28f   :  { %v3459_v45 = vpop.f32.mrf.mxu0 }
 0x290   :  { %v7817_v11 = vpop.f32.mrf.mxu1 }
 0x291   :  { %v3281_v51 = vpop.f32.mrf.mxu2 }
 0x293   :  { %v3370_v48 = vpop.f32.mrf.mxu3 }
 0x294   :  { %v3371_v42 = vadd.f32 %v3370_v48, %v3281_v51  ;;  %v4992_v51 = vor.u32 %v5632_v26, %v4989_v1 }
 0x296   :  { %v7819_v52 = vadd.f32 %v3459_v45, %v3371_v42  ;;  %3323 = vmatmul.bf16.gmra.mxu2 %v4916_v19  ;;  %v4996_v42 = vor.u32 %v5637_v10, %v4995_v41  ;;  %v5633_v19 = vld [vmem:[#allocation2 + $0x324] sm:$0xf] }
 0x297   :  { %v3462_v53 = vpop.f32.mrf.mxu0  ;;  %v5000_v13 = vor.u32 %v5633_v19, %v4997_v24  ;;  %v5655_v24 = vld [vmem:[#allocation2 + $0x3d0] sm:$0xf0] }
 0x298   :  { %3412 = vmatmul.bf16.gmra.mxu3 %v4920_v12  ;;  %v7821_v54 = vpop.f32.mrf.mxu1 }
 0x299   :  { %v3284_v2 = vpop.f32.mrf.mxu2 }
 0x29a   :  { %3501 = vmatmul.bf16.gmra.mxu0 %v4924_v6 }
 0x29b   :  { %v3373_v36 = vpop.f32.mrf.mxu3  ;;  %3590 = vmatmul.bf16.gmra.mxu1 %v4928_v40 }
 0x29c   :  { %v3374_v3 = vadd.f32 %v3373_v36, %v3284_v2  ;;  %v5645_v2 = vld [vmem:[#allocation2 + $0x380] sm:$0xf0] }
 0x29e   :  { %v7826_v35 = vadd.f32 %v3462_v53, %v3374_v3  ;;  %v5023_v3 = vld [vmem:[#allocation2 + $0x360] sm:$0xf] }
 0x29f   :  { %v3464_v34 = vpop.f32.mrf.mxu0  ;;  %v5024_v29 = vor.u32 %v5645_v2, %v5023_v3  ;;  %v5728_v3 = vld [vmem:[%s8841_s2 + $0x198] sm:$0xff] }
 0x2a0   :  { %v7828_v17 = vpop.f32.mrf.mxu1 }
 0x2a1   :  { %v3286_v49 = vpop.f32.mrf.mxu2 }
 0x2a3   :  { %v3375_v15 = vpop.f32.mrf.mxu3 }
 0x2a4   :  { %v3376_v8 = vadd.f32 %v3375_v15, %v3286_v49  ;;  %v5641_v15 = vld [vmem:[#allocation2 + $0x364] sm:$0xf] }
 0x2a5   :  { %v5028_v61 = vor.u32 %v5641_v15, %v5025_v56 }
 0x2a6   :  { %v7833_v14 = vadd.f32 %v3464_v34, %v3376_v8  ;;  %3328 = vmatmul.bf16.gmra.mxu2 %v4952_v43  ;;  %v5730_v34 = vld [vmem:[%s8841_s2 + $0x1a8] sm:$0xff]  ;;  %v5033_v8 = vld [vmem:[#allocation2 + $0x38c] sm:$0xf0] }
 0x2a7   :  { %v3467_v27 = vpop.f32.mrf.mxu0  ;;  %3806 = vmatpush.bf16.msra.mxu0 %v5730_v34  ;;  %v5736_v34 = vld [vmem:[%s8841_s2 + $0x1d8] sm:$0xff] }
 0x2a8   :  { %3417 = vmatmul.bf16.gmra.mxu3 %v4956_v55  ;;  %v7835_v30 = vpop.f32.mrf.mxu1  ;;  %v5032_v55 = vor.u32 %v5646_v18, %v5031_v0 }
 0x2a9   :  { %v3289_v60 = vpop.f32.mrf.mxu2 }
 0x2aa   :  { %3506 = vmatmul.bf16.gmra.mxu0 %v4960_v7 }
 0x2ab   :  { %v3378_v37 = vpop.f32.mrf.mxu3  ;;  %3595 = vmatmul.bf16.gmra.mxu1 %v4964_v59  ;;  %v5740_v59 = vld [vmem:[%s8841_s2 + $0x1f8] sm:$0xff]  ;;  %3807 = vmatpush.bf16.msra.mxu0 %v5729_v20 }
 0x2ac   :  { %v3379_v16 = vadd.f32 %v3378_v37, %v3289_v60  ;;  %3893 = vmatpush.bf16.msrb.mxu1 %v5740_v59  ;;  %v5734_v59 = vld [vmem:[%s8841_s2 + $0x1c8] sm:$0xff] }
 0x2ae   :  { %v7840_v33 = vadd.f32 %v3467_v27, %v3379_v16  ;;  %v5036_v27 = vor.u32 %v5642_v22, %v5033_v8  ;;  %v5735_v8 = vld [vmem:[%s8841_s2 + $0x1d0] sm:$0xff] }
 0x2af   :  { %v3469_v39 = vpop.f32.mrf.mxu0  ;;  %3808 = vmatpush.bf16.msra.mxu0 %v5728_v3  ;;  %v5095_v22 = vld [vmem:[#allocation2 + $0x3f0] sm:$0xf]  ;;  %v5131_v3 = vld [vmem:[#allocation2 + $0x438] sm:$0xf] }
 0x2b0   :  { %v7842_v4 = vpop.f32.mrf.mxu1 }
 0x2b1   :  { %v3291_v9 = vpop.f32.mrf.mxu2 }
 0x2b3   :  { %v3380_v38 = vpop.f32.mrf.mxu3 }
 0x2b4   :  { %v3381_v32 = vadd.f32 %v3380_v38, %v3291_v9  ;;  %v5059_v38 = vld [vmem:[#allocation2 + $0x3a8] sm:$0xf] }
 0x2b5   :  { %v5060_v10 = vor.u32 %v5654_v50, %v5059_v38  ;;  %v5717_v50 = vld [vmem:[%s8841_s2 + $0x140] sm:$0xff] }
 0x2b6   :  { %v7844_v45 = vadd.f32 %v3469_v39, %v3381_v32  ;;  %3333 = vmatmul.bf16.gmra.mxu2 %v4988_v57  ;;  %v5739_v39 = vld [vmem:[%s8841_s2 + $0x1f0] sm:$0xff]  ;;  %v5738_v32 = vld [vmem:[%s8841_s2 + $0x1e8] sm:$0xff]  ;;  %v5721_v57 = vld [vmem:[%s8841_s2 + $0x160] sm:$0xff] }
 0x2b7   :  { %v3472_v48 = vpop.f32.mrf.mxu0  ;;  %3894 = vmatpush.bf16.msrb.mxu1 %v5739_v39  ;;  %3718 = vmatpush.bf16.msra.mxu3 %v5721_v57  ;;  %v5659_v39 = vld [vmem:[#allocation2 + $0x3f4] sm:$0xf]  ;;  %v5103_v57 = vld [vmem:[#allocation2 + $0x3f8] sm:$0xf] }
 0x2b8   :  { %3422 = vmatmul.bf16.gmra.mxu3 %v4992_v51  ;;  %v7846_v47 = vpop.f32.mrf.mxu1  ;;  %v5650_v51 = vld [vmem:[#allocation2 + $0x3ac] sm:$0xf] }
 0x2b9   :  { %v3294_v58 = vpop.f32.mrf.mxu2  ;;  %v5064_v41 = vor.u32 %v5650_v51, %v5061_v25  ;;  %v5105_v25 = vld [vmem:[#allocation2 + $0x41c] sm:$0xf0] }
 0x2ba   :  { %3511 = vmatmul.bf16.gmra.mxu0 %v4996_v42  ;;  %v5069_v42 = vld [vmem:[#allocation2 + $0x3d4] sm:$0xf0]  ;;  %v5725_v51 = vld [vmem:[%s8841_s2 + $0x180] sm:$0xff] }
 0x2bb   :  { %v3383_v12 = vpop.f32.mrf.mxu3  ;;  %3600 = vmatmul.bf16.gmra.mxu1 %v5000_v13  ;;  %v5067_v13 = vld [vmem:[#allocation2 + $0x3b0] sm:$0xf] }
 0x2bc   :  { %v3384_v53 = vadd.f32 %v3383_v12, %v3294_v58  ;;  %3895 = vmatpush.bf16.msrb.mxu1 %v5738_v32  ;;  %v5651_v58 = vld [vmem:[#allocation2 + $0x3b4] sm:$0xf]  ;;  %v5068_v12 = vor.u32 %v5655_v24, %v5067_v13  ;;  %v5733_v24 = vld [vmem:[%s8841_s2 + $0x1c0] sm:$0xff]  ;;  %v5748_v13 = vld [vmem:[%s8841_s2 + $0x238] sm:$0xff] }
 0x2bd   :  { %v5072_v2 = vor.u32 %v5651_v58, %v5069_v42  ;;  %3982 = vmatpush.bf16.msrb.mxu2 %v5748_v13  ;;  %v4617_v13 = vld [vmem:[#allocation2 + $0x3c] sm:$0xf0] }
 0x2be   :  { %v7851_v44 = vadd.f32 %v3472_v48, %v3384_v53  ;;  %v5737_v53 = vld [vmem:[%s8841_s2 + $0x1e0] sm:$0xff] }
 0x2bf   :  { %v3474_v6 = vpop.f32.mrf.mxu0 }
 0x2c0   :  { %v7853_v5 = vpop.f32.mrf.mxu1  ;;  %3896 = vmatpush.bf16.msrb.mxu1 %v5737_v53 }
 0x2c1   :  { %v3296_v40 = vpop.f32.mrf.mxu2 }
 0x2c3   :  { %v3385_v36 = vpop.f32.mrf.mxu3 }
 0x2c4   :  { %v3386_v49 = vadd.f32 %v3385_v36, %v3296_v40  ;;  %3897 = vmatpush.bf16.msrb.mxu1 %v5736_v34 }
 0x2c6   :  { %v7858_v46 = vadd.f32 %v3474_v6, %v3386_v49  ;;  %3338 = vmatmul.bf16.gmra.mxu2 %v5024_v29  ;;  %v5720_v6 = vld [vmem:[%s8841_s2 + $0x158] sm:$0xff]  ;;  %v5719_v29 = vld [vmem:[%s8841_s2 + $0x150] sm:$0xff] }
 0x2c7   :  { %v3477_v43 = vpop.f32.mrf.mxu0  ;;  %3719 = vmatpush.bf16.msra.mxu3 %v5720_v6 }
 0x2c8   :  { %3427 = vmatmul.bf16.gmra.mxu3 %v5028_v61  ;;  %v7860_v21 = vpop.f32.mrf.mxu1  ;;  %v5727_v61 = vld [vmem:[%s8841_s2 + $0x190] sm:$0xff]  ;;  %3898 = vmatpush.bf16.msrb.mxu1 %v5735_v8 }
 0x2c9   :  { %v3299_v62 = vpop.f32.mrf.mxu2  ;;  %3809 = vmatpush.bf16.msra.mxu0 %v5727_v61 }
 0x2ca   :  { %3516 = vmatmul.bf16.gmra.mxu0 %v5032_v55  ;;  %v5663_v55 = vld [vmem:[#allocation2 + $0x410] sm:$0xf0] }
 0x2cb   :  { %v3388_v7 = vpop.f32.mrf.mxu3  ;;  %3605 = vmatmul.bf16.gmra.mxu1 %v5036_v27  ;;  %3720 = vmatpush.bf16.msra.mxu3 %v5719_v29  ;;  %v5668_v29 = vld [vmem:[#allocation2 + $0x43c] sm:$0xf] }
 0x2cc   :  { %v3389_v60 = vadd.f32 %v3388_v7, %v3299_v62  ;;  %v5097_v7 = vld [vmem:[#allocation2 + $0x414] sm:$0xf0]  ;;  %3899 = vmatpush.bf16.msrb.mxu1 %v5734_v59 }
 0x2cd   :  { %3810 = vmatpush.bf16.msra.mxu0 %v5726_v63 }
 0x2ce   :  { %v7868_v37 = vadd.f32 %v3477_v43, %v3389_v60  ;;  %v5718_v43 = vld [vmem:[%s8841_s2 + $0x148] sm:$0xff] }
 0x2cf   :  { %v3479_v23 = vpop.f32.mrf.mxu0  ;;  %3721 = vmatpush.bf16.msra.mxu3 %v5718_v43  ;;  %v5141_v43 = vld [vmem:[#allocation2 + $0x464] sm:$0xf0] }
 0x2d0   :  { %v7870_v16 = vpop.f32.mrf.mxu1  ;;  %3900 = vmatpush.bf16.msrb.mxu1 %v5733_v24  ;;  %v5535_v24 = vld [vmem:[#allocation2 + $0x14] sm:$0xf] }
 0x2d1   :  { %v3301_v9 = vpop.f32.mrf.mxu2  ;;  %3811 = vmatpush.bf16.msra.mxu0 %v5725_v51 }
 0x2d3   :  { %v3390_v1 = vpop.f32.mrf.mxu3  ;;  %3722 = vmatpush.bf16.msra.mxu3 %v5717_v50 }
 0x2d4   :  { %v3391_v26 = vadd.f32 %v3390_v1, %v3301_v9  ;;  %v5664_v9 = vld [vmem:[#allocation2 + $0x418] sm:$0xf0]  ;;  %v5100_v1 = vor.u32 %v5659_v39, %v5097_v7  ;;  %v5669_v7 = vld [vmem:[#allocation2 + $0x444] sm:$0xf] }
 0x2d5   :  { %v5144_v63 = vor.u32 %v5669_v7, %v5141_v43  ;;  %v4643_v7 = vld [vmem:[#allocation2 + $0x58] sm:$0xf] }
 0x2d6   :  { %v7881_v48 = vadd.f32 %v3479_v23, %v3391_v26  ;;  %3343 = vmatmul.bf16.gmra.mxu2 %v5060_v10  ;;  %v5096_v23 = vor.u32 %v5663_v55, %v5095_v22  ;;  %v5104_v26 = vor.u32 %v5664_v9, %v5103_v57  ;;  %v5660_v10 = vld [vmem:[#allocation2 + $0x3fc] sm:$0xf]  ;;  %v5139_v22 = vld [vmem:[#allocation2 + $0x440] sm:$0xf]  ;;  %v4609_v57 = vld [vmem:[#allocation2 + $0x34] sm:$0xf0] }
 0x2d7   :  { %v3482_v19 = vpop.f32.mrf.mxu0 }
 0x2d8   :  { %3432 = vmatmul.bf16.gmra.mxu3 %v5064_v41  ;;  %v7892_v40 = vpop.f32.mrf.mxu1  ;;  %v5108_v41 = vor.u32 %v5660_v10, %v5105_v25  ;;  %v5539_v25 = vld [vmem:[#allocation2 + $0x30] sm:$0xf0] }
 0x2d9   :  { %v3304_v36 = vpop.f32.mrf.mxu2 }
 0x2da   :  { %3521 = vmatmul.bf16.gmra.mxu0 %v5068_v12 }
 0x2db   :  { %v3393_v56 = vpop.f32.mrf.mxu3  ;;  %3610 = vmatmul.bf16.gmra.mxu1 %v5072_v2  ;;  %v5672_v2 = vld [vmem:[#allocation2 + $0x458] sm:$0xf0] }
 0x2dc   :  { %v3394_v49 = vadd.f32 %v3393_v56, %v3304_v36  ;;  %v5133_v56 = vld [vmem:[#allocation2 + $0x45c] sm:$0xf0] }
 0x2dd   :  { %v5136_v8 = vor.u32 %v5668_v29, %v5133_v56 }
 0x2de   :  { %v7903_v15 = vadd.f32 %v3482_v19, %v3394_v49  ;;  %v5132_v49 = vor.u32 %v5672_v2, %v5131_v3  ;;  %v5536_v2 = vld [vmem:[#allocation2 + $0x1c] sm:$0xf] }
 0x2df   :  { %v3484_v18 = vpop.f32.mrf.mxu0 }
 0x2e0   :  { %v7914_v27 = vpop.f32.mrf.mxu1 }
 0x2e1   :  { %v3306_v0 = vpop.f32.mrf.mxu2 }
 0x2e3   :  { %v3395_v62 = vpop.f32.mrf.mxu3 }
 0x2e4   :  { %v3396_v60 = vadd.f32 %v3395_v62, %v3306_v0 }
 0x2e6   :  { %v7925_v38 = vadd.f32 %v3484_v18, %v3396_v60  ;;  %3348 = vmatmul.bf16.gmra.mxu2 %v5096_v23  ;;  %v5673_v18 = vld [vmem:[#allocation2 + $0x460] sm:$0xf0] }
 0x2e7   :  { %v3487_v32 = vpop.f32.mrf.mxu0  ;;  %v5140_v62 = vor.u32 %v5673_v18, %v5139_v22 }
 0x2e8   :  { %3437 = vmatmul.bf16.gmra.mxu3 %v5100_v1  ;;  %v7936_v12 = vpop.f32.mrf.mxu1 }
 0x2e9   :  { %v3309_v42 = vpop.f32.mrf.mxu2 }
 0x2ea   :  { %3526 = vmatmul.bf16.gmra.mxu0 %v5104_v26  ;;  %v4607_v26 = vld [vmem:[#allocation2 + $0x10] sm:$0xf] }
 0x2eb   :  { %v3398_v19 = vpop.f32.mrf.mxu3  ;;  %3615 = vmatmul.bf16.gmra.mxu1 %v5108_v41  ;;  %v4608_v51 = vor.u32 %v5539_v25, %v4607_v26  ;;  %v5540_v41 = vld [vmem:[#allocation2 + $0x38] sm:$0xf0]  ;;  %v4651_v26 = vld [vmem:[#allocation2 + $0x60] sm:$0xf] }
 0x2ec   :  { %v3399_v58 = vadd.f32 %v3398_v19, %v3309_v42  ;;  %v4612_v19 = vor.u32 %v5535_v24, %v4609_v57 }
 0x2ee   :  { %v7938_v20 = vadd.f32 %v3487_v32, %v3399_v58 }
 0x2ef   :  { %v3489_v53 = vpop.f32.mrf.mxu0 }
 0x2f0   :  { %v7942_v0 = vpop.f32.mrf.mxu1 }
 0x2f1   :  { %v3311_v6 = vpop.f32.mrf.mxu2 }
 0x2f3   :  { %v3400_v36 = vpop.f32.mrf.mxu3 }
 0x2f4   :  { %v3401_v34 = vadd.f32 %v3400_v36, %v3311_v6  ;;  %v4620_v36 = vor.u32 %v5536_v2, %v4617_v13 }
 0x2f6   :  { %v7940_v61 = vadd.f32 %v3489_v53, %v3401_v34  ;;  %3353 = vmatmul.bf16.gmra.mxu2 %v5132_v49  ;;  %v4615_v53 = vld [vmem:[#allocation2 + $0x18] sm:$0xf]  ;;  %v5747_v49 = vld [vmem:[%s8841_s2 + $0x230] sm:$0xff] }
 0x2f7   :  { %v3492_v55 = vpop.f32.mrf.mxu0  ;;  %v4616_v6 = vor.u32 %v5540_v41, %v4615_v53  ;;  %3983 = vmatpush.bf16.msrb.mxu2 %v5747_v49  ;;  %v4679_v49 = vld [vmem:[#allocation2 + $0xa0] sm:$0xf] }
 0x2f8   :  { %3442 = vmatmul.bf16.gmra.mxu3 %v5136_v8  ;;  %v7946_v50 = vpop.f32.mrf.mxu1 }
 0x2f9   :  { %v3314_v59 = vpop.f32.mrf.mxu2 }
 0x2fa   :  { %3531 = vmatmul.bf16.gmra.mxu0 %v5140_v62  ;;  %v4645_v62 = vld [vmem:[#allocation2 + $0x7c] sm:$0xf0] }
 0x2fb   :  { %v3403_v60 = vpop.f32.mrf.mxu3  ;;  %3620 = vmatmul.bf16.gmra.mxu1 %v5144_v63 }
 0x2fc   :  { %v3404_v23 = vadd.f32 %v3403_v60, %v3314_v59 }
 0x2fe   :  { %v7944_v39 = vadd.f32 %v3492_v55, %v3404_v23  ;;  %v5548_v55 = vld [vmem:[#allocation2 + $0x78] sm:$0xf0] }
 0x2ff   :  { %v3494_v9 = vpop.f32.mrf.mxu0  ;;  %v4644_v59 = vor.u32 %v5548_v55, %v4643_v7  ;;  %v5544_v23 = vld [vmem:[#allocation2 + $0x5c] sm:$0xf]  ;;  %v5558_v55 = vld [vmem:[#allocation2 + $0xc8] sm:$0xf0]  ;;  %v4689_v7 = vld [vmem:[#allocation2 + $0xcc] sm:$0xf0] }
 0x300   :  { %v7950_v3 = vpop.f32.mrf.mxu1  ;;  %v4648_v25 = vor.u32 %v5544_v23, %v4645_v62 }
 0x301   :  { %v3316_v1 = vpop.f32.mrf.mxu2 }
 0x303   :  { %v3405_v32 = vpop.f32.mrf.mxu3 }
 0x304   :  { %v3406_v10 = vadd.f32 %v3405_v32, %v3316_v1  ;;  %v4653_v32 = vld [vmem:[#allocation2 + $0x84] sm:$0xf0] }
 0x306   :  { %v7948_v42 = vadd.f32 %v3494_v9, %v3406_v10  ;;  %3634 = vmatmul.bf16.vlgmr.msra.gmra.mxu2 %v4608_v51  ;;  %v5549_v9 = vld [vmem:[#allocation2 + $0x80] sm:$0xf0] }
 0x307   :  { %v3497_v58 = vpop.f32.mrf.mxu0  ;;  %v4652_v10 = vor.u32 %v5549_v9, %v4651_v26  ;;  %v5545_v51 = vld [vmem:[#allocation2 + $0x64] sm:$0xf]  ;;  %v5554_v9 = vld [vmem:[#allocation2 + $0xac] sm:$0xf] }
 0x308   :  { %3723 = vmatmul.bf16.vlgmr.msra.gmra.mxu3 %v4612_v19  ;;  %v7957_v60 = vpop.f32.mrf.mxu1  ;;  %v4656_v24 = vor.u32 %v5545_v51, %v4653_v32  ;;  %v4692_v32 = vor.u32 %v5554_v9, %v4689_v7 }
 0x309   :  { %v3319_v56 = vpop.f32.mrf.mxu2 }
 0x30a   :  { %3812 = vmatmul.bf16.vlgmr.msra.gmra.mxu0 %v4616_v6 }
 0x30b   :  { %v3408_v34 = vpop.f32.mrf.mxu3  ;;  %3901 = vmatmul.bf16.vlgmr.msrb.gmra.mxu1 %v4620_v36  ;;  %v5557_v36 = vld [vmem:[#allocation2 + $0xc0] sm:$0xf0] }
 0x30c   :  { %v3409_v29 = vadd.f32 %v3408_v34, %v3319_v56  ;;  %v4681_v34 = vld [vmem:[#allocation2 + $0xc4] sm:$0xf0] }
 0x30e   :  { %v7955_v18 = vadd.f32 %v3497_v58, %v3409_v29 }
 0x30f   :  { %v3499_v8 = vpop.f32.mrf.mxu0 }
 0x310   :  { %v7963_v53 = vpop.f32.mrf.mxu1 }
 0x311   :  { %v3321_v43 = vpop.f32.mrf.mxu2 }
 0x313   :  { %v3410_v22 = vpop.f32.mrf.mxu3 }
 0x314   :  { %v3411_v63 = vadd.f32 %v3410_v22, %v3321_v43  ;;  %v5553_v43 = vld [vmem:[#allocation2 + $0xa4] sm:$0xf] }
 0x315   :  { %v4684_v62 = vor.u32 %v5553_v43, %v4681_v34 }
 0x316   :  { %v7959_v1 = vadd.f32 %v3499_v8, %v3411_v63  ;;  %3639 = vmatmul.bf16.gmra.mxu2 %v4644_v59  ;;  %v4680_v8 = vor.u32 %v5557_v36, %v4679_v49  ;;  %v4687_v59 = vld [vmem:[#allocation2 + $0xa8] sm:$0xf]  ;;  %v4717_v36 = vld [vmem:[#allocation2 + $0x10c] sm:$0xf0] }
 0x317   :  { %v3502_v57 = vpop.f32.mrf.mxu0  ;;  %v4688_v23 = vor.u32 %v5558_v55, %v4687_v59 }
 0x318   :  { %3728 = vmatmul.bf16.gmra.mxu3 %v4648_v25  ;;  %v7967_v25 = vpop.f32.mrf.mxu1 }
 0x319   :  { %v3324_v41 = vpop.f32.mrf.mxu2 }
 0x31a   :  { %3817 = vmatmul.bf16.gmra.mxu0 %v4652_v10  ;;  %v5746_v10 = vld [vmem:[%s8841_s2 + $0x228] sm:$0xff] }
 0x31b   :  { %v3413_v19 = vpop.f32.mrf.mxu3  ;;  %3906 = vmatmul.bf16.gmra.mxu1 %v4656_v24  ;;  %3984 = vmatpush.bf16.msrb.mxu2 %v5746_v10 }
 0x31c   :  { %v3414_v13 = vadd.f32 %v3413_v19, %v3324_v41 }
 0x31e   :  { %v7961_v58 = vadd.f32 %v3502_v57, %v3414_v13  ;;  %v5566_v13 = vld [vmem:[#allocation2 + $0x108] sm:$0xf0] }
 0x31f   :  { %v3504_v6 = vpop.f32.mrf.mxu0 }
 0x321   :  { %v3326_v2 = vpop.f32.mrf.mxu2 }
 0x323   :  { %v3415_v56 = vpop.f32.mrf.mxu3 }
 0x324   :  { %v3416_v29 = vadd.f32 %v3415_v56, %v3326_v2  ;;  %v4715_v56 = vld [vmem:[#allocation2 + $0xe8] sm:$0xf] }
 0x325   :  { %v4716_v49 = vor.u32 %v5566_v13, %v4715_v56  ;;  %v5575_v13 = vld [vmem:[#allocation2 + $0x150] sm:$0xf0]  ;;  %v4751_v56 = vld [vmem:[#allocation2 + $0x130] sm:$0xf] }
 0x326   :  { %v7965_v22 = vadd.f32 %v3504_v6, %v3416_v29  ;;  %3644 = vmatmul.bf16.gmra.mxu2 %v4680_v8  ;;  %v7974_v6 = vpop.f32.mrf.mxu1  ;;  %v5562_v29 = vld [vmem:[#allocation2 + $0xec] sm:$0xf]  ;;  %v5567_v8 = vld [vmem:[#allocation2 + $0x110] sm:$0xf0] }
 0x327   :  { %v3507_v63 = vpop.f32.mrf.mxu0  ;;  %v4720_v55 = vor.u32 %v5562_v29, %v4717_v36  ;;  %v4753_v36 = vld [vmem:[#allocation2 + $0x154] sm:$0xf0]  ;;  %v5571_v29 = vld [vmem:[#allocation2 + $0x134] sm:$0xf] }
 0x328   :  { %3733 = vmatmul.bf16.gmra.mxu3 %v4684_v62  ;;  %v4725_v62 = vld [vmem:[#allocation2 + $0x114] sm:$0xf0] }
 0x329   :  { %v3329_v57 = vpop.f32.mrf.mxu2 }
 0x32a   :  { %3822 = vmatmul.bf16.gmra.mxu0 %v4688_v23  ;;  %v5563_v23 = vld [vmem:[#allocation2 + $0xf4] sm:$0xf] }
 0x32b   :  { %v3418_v26 = vpop.f32.mrf.mxu3  ;;  %3911 = vmatmul.bf16.gmra.mxu1 %v4692_v32  ;;  %v4728_v9 = vor.u32 %v5563_v23, %v4725_v62  ;;  %v4756_v62 = vor.u32 %v5571_v29, %v4753_v36  ;;  %v4789_v29 = vld [vmem:[#allocation2 + $0x19c] sm:$0xf0] }
 0x32c   :  { %v3419_v51 = vadd.f32 %v3418_v26, %v3329_v57 }
 0x32e   :  { %v7972_v24 = vadd.f32 %v3507_v63, %v3419_v51  ;;  %v4723_v63 = vld [vmem:[#allocation2 + $0xf0] sm:$0xf]  ;;  %v7978_v10 = vpop.f32.mrf.mxu1 }
 0x32f   :  { %v3509_v41 = vpop.f32.mrf.mxu0  ;;  %v4724_v59 = vor.u32 %v5567_v8, %v4723_v63  ;;  %v5576_v8 = vld [vmem:[#allocation2 + $0x158] sm:$0xf0]  ;;  %v4761_v63 = vld [vmem:[#allocation2 + $0x15c] sm:$0xf0] }
 0x331   :  { %v3331_v19 = vpop.f32.mrf.mxu2 }
 0x333   :  { %v3420_v2 = vpop.f32.mrf.mxu3 }
 0x334   :  { %v3421_v34 = vadd.f32 %v3420_v2, %v3331_v19 }
 0x336   :  { %v7976_v43 = vadd.f32 %v3509_v41, %v3421_v34  ;;  %3649 = vmatmul.bf16.gmra.mxu2 %v4716_v49  ;;  %v4752_v49 = vor.u32 %v5575_v13, %v4751_v56 }
 0x337   :  { %v3512_v7 = vpop.f32.mrf.mxu0 }
 0x338   :  { %3738 = vmatmul.bf16.gmra.mxu3 %v4720_v55 }
 0x339   :  { %v3334_v32 = vpop.f32.mrf.mxu2 }
 0x33a   :  { %3827 = vmatmul.bf16.gmra.mxu0 %v4724_v59  ;;  %v7984_v59 = vpop.f32.mrf.mxu1 }
 0x33b   :  { %v3423_v57 = vpop.f32.mrf.mxu3  ;;  %3916 = vmatmul.bf16.gmra.mxu1 %v4728_v9  ;;  %9087 = vst [vmem:[#allocation5_spill] sm:$0xff] %v7984_v59 }
 0x33c   :  { %v3424_v26 = vadd.f32 %v3423_v57, %v3334_v32  ;;  %v5572_v32 = vld [vmem:[#allocation2 + $0x13c] sm:$0xf] }
 0x33d   :  { %v4764_v57 = vor.u32 %v5572_v32, %v4761_v63 }
 0x33e   :  { %v7980_v51 = vadd.f32 %v3512_v7, %v3424_v26  ;;  %v4759_v7 = vld [vmem:[#allocation2 + $0x138] sm:$0xf] }
 0x33f   :  { %v3514_v41 = vpop.f32.mrf.mxu0  ;;  %v4760_v9 = vor.u32 %v5576_v8, %v4759_v7  ;;  %v4787_v8 = vld [vmem:[#allocation2 + $0x178] sm:$0xf]  ;;  %v5580_v7 = vld [vmem:[#allocation2 + $0x17c] sm:$0xf] }
 0x340   :  { %9085 = vst [vmem:[#allocation3_spill] sm:$0xff] %v7980_v51 }
 0x341   :  { %v3336_v19 = vpop.f32.mrf.mxu2 }
 0x342   :  { %v7991_v36 = vpop.f32.mrf.mxu1 }
 0x343   :  { %v3425_v2 = vpop.f32.mrf.mxu3  ;;  %9089 = vst [vmem:[#allocation7_spill] sm:$0xff] %v7991_v36 }
 0x344   :  { %v3426_v34 = vadd.f32 %v3425_v2, %v3336_v19 }
 0x346   :  { %v7982_v55 = vadd.f32 %v3514_v41, %v3426_v34  ;;  %3654 = vmatmul.bf16.gmra.mxu2 %v4752_v49  ;;  %v5745_v41 = vld [vmem:[%s8841_s2 + $0x220] sm:$0xff]  ;;  %v5584_v34 = vld [vmem:[#allocation2 + $0x198] sm:$0xf0] }
 0x347   :  { %v3517_v23 = vpop.f32.mrf.mxu0  ;;  %3985 = vmatpush.bf16.msrb.mxu2 %v5745_v41  ;;  %v4788_v63 = vor.u32 %v5584_v34, %v4787_v8 }
 0x348   :  { %9086 = vst [vmem:[#allocation4_spill] sm:$0xff] %v7982_v55  ;;  %3743 = vmatmul.bf16.gmra.mxu3 %v4756_v62 }
 0x349   :  { %v3339_v26 = vpop.f32.mrf.mxu2 }
 0x34a   :  { %3832 = vmatmul.bf16.gmra.mxu0 %v4760_v9  ;;  %v5585_v9 = vld [vmem:[#allocation2 + $0x1a0] sm:$0xf0]  ;;  %v7995_v36 = vpop.f32.mrf.mxu1 }
 0x34b   :  { %v3428_v51 = vpop.f32.mrf.mxu3  ;;  %3921 = vmatmul.bf16.gmra.mxu1 %v4764_v57  ;;  %v4792_v57 = vor.u32 %v5580_v7, %v4789_v29  ;;  %9091 = vst [vmem:[#allocation9_spill] sm:$0xff] %v7995_v36  ;;  %v5593_v29 = vld [vmem:[#allocation2 + $0x1e0] sm:$0xf0] }
 0x34c   :  { %v3429_v19 = vadd.f32 %v3428_v51, %v3339_v26  ;;  %v4797_v51 = vld [vmem:[#allocation2 + $0x1a4] sm:$0xf0] }
 0x34e   :  { %v7989_v13 = vadd.f32 %v3517_v23, %v3429_v19  ;;  %v4795_v23 = vld [vmem:[#allocation2 + $0x180] sm:$0xf]  ;;  %v5581_v19 = vld [vmem:[#allocation2 + $0x184] sm:$0xf] }
 0x34f   :  { %v3519_v2 = vpop.f32.mrf.mxu0  ;;  %v4796_v41 = vor.u32 %v5585_v9, %v4795_v23  ;;  %v5594_v23 = vld [vmem:[#allocation2 + $0x1e8] sm:$0xf0] }
 0x350   :  { %9088 = vst [vmem:[#allocation6_spill] sm:$0xff] %v7989_v13  ;;  %v4800_v13 = vor.u32 %v5581_v19, %v4797_v51  ;;  %v5589_v51 = vld [vmem:[#allocation2 + $0x1c4] sm:$0xf] }
 0x351   :  { %v3341_v56 = vpop.f32.mrf.mxu2 }
 0x352   :  { %v7999_v9 = vpop.f32.mrf.mxu1 }
 0x353   :  { %v3430_v49 = vpop.f32.mrf.mxu3  ;;  %9093 = vst [vmem:[#allocation11_spill] sm:$0xff] %v7999_v9 }
 0x354   :  { %v3431_v62 = vadd.f32 %v3430_v49, %v3341_v56 }
 0x356   :  { %v7993_v32 = vadd.f32 %v3519_v2, %v3431_v62  ;;  %3659 = vmatmul.bf16.gmra.mxu2 %v4788_v63  ;;  %v4825_v62 = vld [vmem:[#allocation2 + $0x1e4] sm:$0xf0]  ;;  %v4823_v63 = vld [vmem:[#allocation2 + $0x1c0] sm:$0xf] }
 0x357   :  { %v3522_v26 = vpop.f32.mrf.mxu0  ;;  %v4828_v19 = vor.u32 %v5589_v51, %v4825_v62  ;;  %v4861_v51 = vld [vmem:[#allocation2 + $0x22c] sm:$0xf0] }
 0x358   :  { %9090 = vst [vmem:[#allocation8_spill] sm:$0xff] %v7993_v32  ;;  %3748 = vmatmul.bf16.gmra.mxu3 %v4792_v57  ;;  %v4824_v57 = vor.u32 %v5593_v29, %v4823_v63 }
 0x359   :  { %v3344_v55 = vpop.f32.mrf.mxu2 }
 0x35a   :  { %3837 = vmatmul.bf16.gmra.mxu0 %v4796_v41 }
 0x35b   :  { %v3433_v59 = vpop.f32.mrf.mxu3  ;;  %3926 = vmatmul.bf16.gmra.mxu1 %v4800_v13  ;;  %v4833_v13 = vld [vmem:[#allocation2 + $0x1ec] sm:$0xf0] }
 0x35c   :  { %v3434_v56 = vadd.f32 %v3433_v59, %v3344_v55  ;;  %v4831_v59 = vld [vmem:[#allocation2 + $0x1c8] sm:$0xf] }
 0x35e   :  { %v7997_v34 = vadd.f32 %v3522_v26, %v3434_v56  ;;  %v4832_v26 = vor.u32 %v5594_v23, %v4831_v59  ;;  %v5590_v56 = vld [vmem:[#allocation2 + $0x1cc] sm:$0xf]  ;;  %v4859_v23 = vld [vmem:[#allocation2 + $0x208] sm:$0xf] }
 0x35f   :  { %v3524_v2 = vpop.f32.mrf.mxu0  ;;  %v5598_v59 = vld [vmem:[#allocation2 + $0x20c] sm:$0xf] }
 0x360   :  { %9092 = vst [vmem:[#allocation10_spill] sm:$0xff] %v7997_v34  ;;  %v4836_v34 = vor.u32 %v5590_v56, %v4833_v13  ;;  %v4864_v56 = vor.u32 %v5598_v59, %v4861_v51 }
 0x361   :  { %v3346_v49 = vpop.f32.mrf.mxu2 }
 0x363   :  { %v3435_v8 = vpop.f32.mrf.mxu3 }
 0x364   :  { %v3436_v7 = vadd.f32 %v3435_v8, %v3346_v49  ;;  %v5744_v49 = vld [vmem:[%s8841_s2 + $0x218] sm:$0xff]  ;;  %v8008_v8 = vpop.f32.mrf.mxu1 }
 0x365   :  { %3986 = vmatpush.bf16.msrb.mxu2 %v5744_v49  ;;  %9096 = vst [vmem:[#allocation14_spill] sm:$0xff] %v8008_v8  ;;  %v5599_v49 = vld [vmem:[#allocation2 + $0x214] sm:$0xf] }
 0x366   :  { %v8001_v41 = vadd.f32 %v3524_v2, %v3436_v7  ;;  %3664 = vmatmul.bf16.gmra.mxu2 %v4824_v57  ;;  %v5602_v7 = vld [vmem:[#allocation2 + $0x228] sm:$0xf0] }
 0x367   :  { %v3527_v55 = vpop.f32.mrf.mxu0  ;;  %v4860_v13 = vor.u32 %v5602_v7, %v4859_v23 }
 0x368   :  { %9094 = vst [vmem:[#allocation12_spill] sm:$0xff] %v8001_v41  ;;  %3753 = vmatmul.bf16.gmra.mxu3 %v4828_v19 }
 0x369   :  { %v3349_v32 = vpop.f32.mrf.mxu2 }
 0x36a   :  { %3842 = vmatmul.bf16.gmra.mxu0 %v4832_v26 }
 0x36b   :  { %v3438_v36 = vpop.f32.mrf.mxu3  ;;  %3931 = vmatmul.bf16.gmra.mxu1 %v4836_v34  ;;  %v5603_v34 = vld [vmem:[#allocation2 + $0x230] sm:$0xf0] }
 0x36c   :  { %v3439_v29 = vadd.f32 %v3438_v36, %v3349_v32  ;;  %v4869_v36 = vld [vmem:[#allocation2 + $0x234] sm:$0xf0]  ;;  %v4867_v32 = vld [vmem:[#allocation2 + $0x210] sm:$0xf] }
 0x36e   :  { %v8006_v2 = vadd.f32 %v3527_v55, %v3439_v29  ;;  %v4868_v55 = vor.u32 %v5603_v34, %v4867_v32  ;;  %v8012_v29 = vpop.f32.mrf.mxu1 }
 0x36f   :  { %v3529_v62 = vpop.f32.mrf.mxu0  ;;  %9098 = vst [vmem:[#allocation16_spill] sm:$0xff] %v8012_v29 }
 0x370   :  { %9095 = vst [vmem:[#allocation13_spill] sm:$0xff] %v8006_v2  ;;  %v4872_v2 = vor.u32 %v5599_v49, %v4869_v36  ;;  %v5513_v36 = vld [vmem:[%s8842_s3 + $0x78] sm:$0xf0] }
 0x371   :  { %v3351_v63 = vpop.f32.mrf.mxu2  ;;  %v5612_v49 = vld [vmem:[#allocation2 + $0x278] sm:$0xf0] }
 0x373   :  { %v3440_v57 = vpop.f32.mrf.mxu3 }
 0x374   :  { %v3441_v19 = vadd.f32 %v3440_v57, %v3351_v63  ;;  %v5764_v63 = vld [vmem:[%s8842_s3 + $0x74] sm:$0xf0] }
 0x376   :  { %v8010_v26 = vadd.f32 %v3529_v62, %v3441_v19  ;;  %3669 = vmatmul.bf16.gmra.mxu2 %v4860_v13  ;;  %v5511_v62 = vld [vmem:[%s8842_s3 + $0x70] sm:$0xf]  ;;  %v5611_v19 = vld [vmem:[#allocation2 + $0x270] sm:$0xf0]  ;;  %v4897_v13 = vld [vmem:[#allocation2 + $0x274] sm:$0xf0]  ;;  %v8022_v59 = vpop.f32.mrf.mxu1 }
 0x377   :  { %v3532_v8 = vpop.f32.mrf.mxu0  ;;  %v5512_v57 = vor.u32 %v5764_v63, %v5511_v62  ;;  %9100 = vst [vmem:[#allocation18_spill] sm:$0xff] %v8022_v59  ;;  %v3547_v59 = vadd.f32 %v7810_v31, %v7815_v28  ;;  %v5620_v31 = vld [vmem:[#allocation2 + $0x2b8] sm:$0xf0] }
 0x378   :  { %9097 = vst [vmem:[#allocation15_spill] sm:$0xff] %v8010_v26  ;;  %3758 = vmatmul.bf16.gmra.mxu3 %v4864_v56  ;;  %v5763_v56 = vld [vmem:[%s8842_s3 + $0x74] sm:$0xf]  ;;  %v5608_v26 = vld [vmem:[#allocation2 + $0x25c] sm:$0xf] }
 0x379   :  { %v3354_v41 = vpop.f32.mrf.mxu2  ;;  %4279 = vmatpush.bf16.msrb.mxu3 %v5512_v57  ;;  %v4903_v57 = vld [vmem:[#allocation2 + $0x258] sm:$0xf] }
 0x37a   :  { %3847 = vmatmul.bf16.gmra.mxu0 %v4868_v55  ;;  %v5607_v55 = vld [vmem:[#allocation2 + $0x254] sm:$0xf] }
 0x37b   :  { %v3443_v9 = vpop.f32.mrf.mxu3  ;;  %3936 = vmatmul.bf16.gmra.mxu1 %v4872_v2  ;;  %v4895_v2 = vld [vmem:[#allocation2 + $0x250] sm:$0xf]  ;;  %v4900_v63 = vor.u32 %v5607_v55, %v4897_v13 }
 0x37c   :  { %v3444_v7 = vadd.f32 %v3443_v9, %v3354_v41  ;;  %v4896_v41 = vor.u32 %v5611_v19, %v4895_v2  ;;  %v5743_v13 = vld [vmem:[%s8841_s2 + $0x210] sm:$0xff] }
 0x37d   :  { %3987 = vmatpush.bf16.msrb.mxu2 %v5743_v13 }
 0x37e   :  { %v8020_v51 = vadd.f32 %v3532_v8, %v3444_v7  ;;  %v5516_v8 = vor.u32 %v5763_v56, %v5513_v36  ;;  %v4905_v7 = vld [vmem:[#allocation2 + $0x27c] sm:$0xf0]  ;;  %v8039_v56 = vpop.f32.mrf.mxu1  ;;  %v3549_v36 = vadd.f32 %v7817_v11, %v7819_v52  ;;  %v5617_v11 = vld [vmem:[#allocation2 + $0x2a4] sm:$0xf]  ;;  %v3552_v52 = vadd.f32 %v7821_v54, %v7826_v35 }
 0x37f   :  { %v3534_v32 = vpop.f32.mrf.mxu0  ;;  %v4908_v29 = vor.u32 %v5608_v26, %v4905_v7  ;;  %v4939_v7 = vld [vmem:[#allocation2 + $0x2a0] sm:$0xf]  ;;  %v3554_v54 = vadd.f32 %v7828_v17, %v7833_v14  ;;  %v5625_v14 = vld [vmem:[#allocation2 + $0x2e4] sm:$0xf] }
 0x380   :  { %9099 = vst [vmem:[#allocation17_spill] sm:$0xff] %v8020_v51  ;;  %4368 = vmatpush.bf16.msrb.mxu0 %v5516_v8  ;;  %v4904_v51 = vor.u32 %v5612_v49, %v4903_v57  ;;  %v5616_v8 = vld [vmem:[#allocation2 + $0x29c] sm:$0xf]  ;;  %v4941_v49 = vld [vmem:[#allocation2 + $0x2c4] sm:$0xf0] }
 0x381   :  { %v3356_v23 = vpop.f32.mrf.mxu2 }
 0x383   :  { %v3445_v34 = vpop.f32.mrf.mxu3 }
 0x384   :  { %v3446_v9 = vadd.f32 %v3445_v34, %v3356_v23 }
 0x386   :  { %v8030_v62 = vadd.f32 %v3534_v32, %v3446_v9  ;;  %3674 = vmatmul.bf16.gmra.mxu2 %v4896_v41  ;;  %v5621_v32 = vld [vmem:[#allocation2 + $0x2c0] sm:$0xf0] }
 0x387   :  { %v4940_v57 = vor.u32 %v5621_v32, %v4939_v7  ;;  %v4969_v32 = vld [vmem:[#allocation2 + $0x304] sm:$0xf0] }
 0x388   :  { %3763 = vmatmul.bf16.gmra.mxu3 %v4900_v63  ;;  %v8045_v63 = vpop.f32.mrf.mxu1 }
 0x389   :  { %v3635_v23 = vpop.f32.mrf.mxu2 }
 0x38a   :  { %3852 = vmatmul.bf16.gmra.mxu0 %v4904_v51  ;;  %v3636_v19 = vadd.f32 %v3635_v23, %v3547_v59  ;;  %v4933_v51 = vld [vmem:[#allocation2 + $0x2bc] sm:$0xf0]  ;;  %v4931_v59 = vld [vmem:[#allocation2 + $0x298] sm:$0xf]  ;;  %v4944_v23 = vor.u32 %v5617_v11, %v4941_v49  ;;  %v5505_v49 = vld [vmem:[%s8842_s3 + $0x68] sm:$0xf0] }
 0x38b   :  { %v3724_v34 = vpop.f32.mrf.mxu3  ;;  %3941 = vmatmul.bf16.gmra.mxu1 %v4908_v29  ;;  %v4932_v29 = vor.u32 %v5620_v31, %v4931_v59  ;;  %v4936_v55 = vor.u32 %v5616_v8, %v4933_v51  ;;  %v5629_v51 = vld [vmem:[#allocation2 + $0x300] sm:$0xf0]  ;;  %v5630_v11 = vld [vmem:[#allocation2 + $0x308] sm:$0xf0] }
 0x38c   :  { %v8037_v2 = vadd.f32 %v3724_v34, %v3636_v19 }
 0x390   :  { %v8059_v35 = vpop.f32.mrf.mxu1 }
 0x391   :  { %v3637_v9 = vpop.f32.mrf.mxu2 }
 0x392   :  { %v3638_v28 = vadd.f32 %v3637_v9, %v3549_v36  ;;  %v5503_v36 = vld [vmem:[%s8842_s3 + $0x60] sm:$0xf]  ;;  %v5762_v9 = vld [vmem:[%s8842_s3 + $0x64] sm:$0xf0] }
 0x393   :  { %v3726_v26 = vpop.f32.mrf.mxu3 }
 0x394   :  { %v8043_v41 = vadd.f32 %v3726_v26, %v3638_v28  ;;  %v5504_v28 = vor.u32 %v5762_v9, %v5503_v36  ;;  %v3557_v36 = vadd.f32 %v7835_v30, %v7840_v33  ;;  %v5638_v30 = vld [vmem:[#allocation2 + $0x348] sm:$0xf0] }
 0x396   :  { %3679 = vmatmul.bf16.gmra.mxu2 %v4932_v29  ;;  %4280 = vmatpush.bf16.msrb.mxu3 %v5504_v28  ;;  %v4967_v29 = vld [vmem:[#allocation2 + $0x2e0] sm:$0xf] }
 0x398   :  { %3768 = vmatmul.bf16.gmra.mxu3 %v4936_v55  ;;  %v5761_v55 = vld [vmem:[%s8842_s3 + $0x64] sm:$0xf] }
 0x399   :  { %v3640_v19 = vpop.f32.mrf.mxu2  ;;  %v5508_v17 = vor.u32 %v5761_v55, %v5505_v49  ;;  %v5005_v49 = vld [vmem:[#allocation2 + $0x34c] sm:$0xf0] }
 0x39a   :  { %3857 = vmatmul.bf16.gmra.mxu0 %v4940_v57  ;;  %v3641_v34 = vadd.f32 %v3640_v19, %v3552_v52  ;;  %v4968_v57 = vor.u32 %v5629_v51, %v4967_v29  ;;  %v4972_v52 = vor.u32 %v5625_v14, %v4969_v32  ;;  %v4975_v19 = vld [vmem:[#allocation2 + $0x2e8] sm:$0xf] }
 0x39b   :  { %v3729_v13 = vpop.f32.mrf.mxu3  ;;  %3946 = vmatmul.bf16.gmra.mxu1 %v4944_v23  ;;  %v4977_v23 = vld [vmem:[#allocation2 + $0x30c] sm:$0xf0]  ;;  %4369 = vmatpush.bf16.msrb.mxu0 %v5508_v17  ;;  %v8080_v17 = vpop.f32.mrf.mxu0 }
 0x39c   :  { %v8055_v31 = vadd.f32 %v3729_v13, %v3641_v34  ;;  %v4976_v34 = vor.u32 %v5630_v11, %v4975_v19  ;;  %v5626_v13 = vld [vmem:[#allocation2 + $0x2ec] sm:$0xf]  ;;  %v5639_v19 = vld [vmem:[#allocation2 + $0x350] sm:$0xf0] }
 0x39d   :  { %v4980_v9 = vor.u32 %v5626_v13, %v4977_v23  ;;  %v5634_v23 = vld [vmem:[#allocation2 + $0x32c] sm:$0xf]  ;;  %v5013_v13 = vld [vmem:[#allocation2 + $0x354] sm:$0xf0] }
 0x3a1   :  { %v3642_v26 = vpop.f32.mrf.mxu2 }
 0x3a2   :  { %v3643_v59 = vadd.f32 %v3642_v26, %v3554_v54  ;;  %v8071_v26 = vpop.f32.mrf.mxu1 }
 0x3a3   :  { %v3731_v8 = vpop.f32.mrf.mxu3 }
 0x3a4   :  { %v8067_v7 = vadd.f32 %v3731_v8, %v3643_v59  ;;  %v5742_v59 = vld [vmem:[%s8841_s2 + $0x208] sm:$0xff]  ;;  %v3559_v8 = vadd.f32 %v7842_v4, %v7844_v45  ;;  %v5635_v45 = vld [vmem:[#allocation2 + $0x334] sm:$0xf] }
 0x3a5   :  { %3988 = vmatpush.bf16.msrb.mxu2 %v5742_v59 }
 0x3a6   :  { %3684 = vmatmul.bf16.gmra.mxu2 %v4968_v57  ;;  %v5003_v57 = vld [vmem:[#allocation2 + $0x328] sm:$0xf] }
 0x3a7   :  { %v5004_v11 = vor.u32 %v5638_v30, %v5003_v57  ;;  %v5647_v57 = vld [vmem:[#allocation2 + $0x390] sm:$0xf0] }
 0x3a8   :  { %3773 = vmatmul.bf16.gmra.mxu3 %v4972_v52 }
 0x3a9   :  { %v3645_v28 = vpop.f32.mrf.mxu2 }
 0x3aa   :  { %3862 = vmatmul.bf16.gmra.mxu0 %v4976_v34  ;;  %v3646_v54 = vadd.f32 %v3645_v28, %v3557_v36  ;;  %v8084_v52 = vpop.f32.mrf.mxu1  ;;  %v5008_v34 = vor.u32 %v5634_v23, %v5005_v49  ;;  %v5011_v36 = vld [vmem:[#allocation2 + $0x330] sm:$0xf]  ;;  %v5016_v28 = vor.u32 %v5635_v45, %v5013_v13  ;;  %v5759_v13 = vld [vmem:[%s8842_s3 + $0x54] sm:$0xf] }
 0x3ab   :  { %v3734_v51 = vpop.f32.mrf.mxu3  ;;  %3951 = vmatmul.bf16.gmra.mxu1 %v4980_v9  ;;  %v5012_v4 = vor.u32 %v5639_v19, %v5011_v36  ;;  %v3562_v9 = vadd.f32 %v7846_v47, %v7851_v44  ;;  %v3564_v44 = vadd.f32 %v7853_v5, %v7858_v46  ;;  %v5039_v23 = vld [vmem:[#allocation2 + $0x370] sm:$0xf]  ;;  %v5497_v36 = vld [vmem:[%s8842_s3 + $0x58] sm:$0xf0] }
 0x3ac   :  { %v8076_v29 = vadd.f32 %v3734_v51, %v3646_v54  ;;  %v5040_v45 = vor.u32 %v5647_v57, %v5039_v23  ;;  %v5648_v5 = vld [vmem:[#allocation2 + $0x398] sm:$0xf0] }
 0x3b1   :  { %v3647_v32 = vpop.f32.mrf.mxu2 }
 0x3b2   :  { %v3648_v33 = vadd.f32 %v3647_v32, %v3559_v8  ;;  %v5495_v8 = vld [vmem:[%s8842_s3 + $0x50] sm:$0xf]  ;;  %v5760_v32 = vld [vmem:[%s8842_s3 + $0x54] sm:$0xf0]  ;;  %v8098_v47 = vpop.f32.mrf.mxu1 }
 0x3b3   :  { %v3736_v55 = vpop.f32.mrf.mxu3 }
 0x3b4   :  { %v8082_v14 = vadd.f32 %v3736_v55, %v3648_v33  ;;  %v5496_v33 = vor.u32 %v5760_v32, %v5495_v8  ;;  %v8096_v55 = vpop.f32.mrf.mxu0  ;;  %v5644_v32 = vld [vmem:[#allocation2 + $0x37c] sm:$0xf] }
 0x3b6   :  { %3689 = vmatmul.bf16.gmra.mxu2 %v5004_v11  ;;  %4281 = vmatpush.bf16.msrb.mxu3 %v5496_v33  ;;  %v3567_v33 = vadd.f32 %v7860_v21, %v7868_v37  ;;  %v5656_v21 = vld [vmem:[#allocation2 + $0x3d8] sm:$0xf0] }
 0x3b8   :  { %3778 = vmatmul.bf16.gmra.mxu3 %v5008_v34  ;;  %v5041_v34 = vld [vmem:[#allocation2 + $0x394] sm:$0xf0] }
 0x3b9   :  { %v3650_v54 = vpop.f32.mrf.mxu2 }
 0x3ba   :  { %3867 = vmatmul.bf16.gmra.mxu0 %v5012_v4  ;;  %v3651_v51 = vadd.f32 %v3650_v54, %v3562_v9  ;;  %v5500_v9 = vor.u32 %v5759_v13, %v5497_v36  ;;  %v5049_v54 = vld [vmem:[#allocation2 + $0x39c] sm:$0xf0]  ;;  %v3569_v13 = vadd.f32 %v7870_v16, %v7881_v48  ;;  %v5653_v48 = vld [vmem:[#allocation2 + $0x3c4] sm:$0xf] }
 0x3bb   :  { %v3739_v59 = vpop.f32.mrf.mxu3  ;;  %3956 = vmatmul.bf16.gmra.mxu1 %v5016_v28  ;;  %v5643_v28 = vld [vmem:[#allocation2 + $0x374] sm:$0xf] }
 0x3bc   :  { %v8094_v30 = vadd.f32 %v3739_v59, %v3651_v51  ;;  %v5044_v46 = vor.u32 %v5643_v28, %v5041_v34  ;;  %4370 = vmatpush.bf16.msrb.mxu0 %v5500_v9  ;;  %v5047_v51 = vld [vmem:[#allocation2 + $0x378] sm:$0xf]  ;;  %v8110_v59 = vpop.f32.mrf.mxu0 }
 0x3bd   :  { %v5048_v8 = vor.u32 %v5648_v5, %v5047_v51  ;;  %v5077_v5 = vld [vmem:[#allocation2 + $0x3dc] sm:$0xf0]  ;;  %v5652_v51 = vld [vmem:[#allocation2 + $0x3bc] sm:$0xf] }
 0x3c1   :  { %v3652_v49 = vpop.f32.mrf.mxu2 }
 0x3c2   :  { %v3653_v11 = vadd.f32 %v3652_v49, %v3564_v44  ;;  %v8114_v44 = vpop.f32.mrf.mxu1  ;;  %v5052_v49 = vor.u32 %v5644_v32, %v5049_v54  ;;  %v5080_v32 = vor.u32 %v5652_v51, %v5077_v5 }
 0x3c3   :  { %v3741_v19 = vpop.f32.mrf.mxu3 }
 0x3c4   :  { %v8108_v4 = vadd.f32 %v3741_v19, %v3653_v11  ;;  %v5741_v19 = vld [vmem:[%s8841_s2 + $0x200] sm:$0xff]  ;;  %v8123_v37 = vpop.f32.mrf.mxu0 }
 0x3c5   :  { %3989 = vmatpush.bf16.msrb.mxu2 %v5741_v19 }
 0x3c6   :  { %3694 = vmatmul.bf16.gmra.mxu2 %v5040_v45 }
 0x3c8   :  { %3783 = vmatmul.bf16.gmra.mxu3 %v5044_v46  ;;  %v5075_v46 = vld [vmem:[#allocation2 + $0x3b8] sm:$0xf] }
 0x3c9   :  { %v3655_v57 = vpop.f32.mrf.mxu2  ;;  %v5076_v54 = vor.u32 %v5656_v21, %v5075_v46  ;;  %v5758_v21 = vld [vmem:[%s8842_s3 + $0x44] sm:$0xf0] }
 0x3ca   :  { %3872 = vmatmul.bf16.gmra.mxu0 %v5048_v8  ;;  %v3656_v11 = vadd.f32 %v3655_v57, %v3567_v33  ;;  %v8127_v9 = vpop.f32.mrf.mxu1  ;;  %v5657_v8 = vld [vmem:[#allocation2 + $0x3e0] sm:$0xf0]  ;;  %v5085_v33 = vld [vmem:[#allocation2 + $0x3e4] sm:$0xf0]  ;;  %v3572_v57 = vadd.f32 %v7892_v40, %v7903_v15  ;;  %v3574_v15 = vadd.f32 %v7914_v27, %v7925_v38  ;;  %v5666_v27 = vld [vmem:[#allocation2 + $0x428] sm:$0xf0] }
 0x3cb   :  { %v3744_v23 = vpop.f32.mrf.mxu3  ;;  %3961 = vmatmul.bf16.gmra.mxu1 %v5052_v49  ;;  %v5083_v49 = vld [vmem:[#allocation2 + $0x3c0] sm:$0xf] }
 0x3cc   :  { %v8119_v34 = vadd.f32 %v3744_v23, %v3656_v11  ;;  %v5084_v16 = vor.u32 %v5657_v8, %v5083_v49  ;;  %v5088_v11 = vor.u32 %v5653_v48, %v5085_v33  ;;  %v8139_v5 = vpop.f32.mrf.mxu0  ;;  %v5665_v8 = vld [vmem:[#allocation2 + $0x420] sm:$0xf0]  ;;  %v5111_v33 = vld [vmem:[#allocation2 + $0x400] sm:$0xf] }
 0x3cd   :  { %v5757_v48 = vld [vmem:[%s8842_s3 + $0x44] sm:$0xf] }
 0x3d1   :  { %v3657_v36 = vpop.f32.mrf.mxu2 }
 0x3d2   :  { %v8125_v45 = vadd.f32 %v3657_v36, %v3569_v13  ;;  %v5487_v36 = vld [vmem:[%s8842_s3 + $0x40] sm:$0xf]  ;;  %v8143_v40 = vpop.f32.mrf.mxu1 }
 0x3d3   :  { %v8129_v28 = vpop.f32.mrf.mxu3 }
 0x3d4   :  { %v8157_v38 = vpop.f32.mrf.mxu0 }
 0x3d6   :  { %3699 = vmatmul.bf16.gmra.mxu2 %v5076_v54  ;;  %v5488_v54 = vor.u32 %v5758_v21, %v5487_v36  ;;  %v5121_v36 = vld [vmem:[#allocation2 + $0x42c] sm:$0xf0] }
 0x3d8   :  { %3788 = vmatmul.bf16.gmra.mxu3 %v5080_v32 }
 0x3d9   :  { %v3660_v23 = vpop.f32.mrf.mxu2  ;;  %4282 = vmatpush.bf16.msrb.mxu3 %v5488_v54  ;;  %v5119_v54 = vld [vmem:[#allocation2 + $0x408] sm:$0xf] }
 0x3da   :  { %3877 = vmatmul.bf16.gmra.mxu0 %v5084_v16  ;;  %v3661_v19 = vadd.f32 %v3660_v23, %v3572_v57  ;;  %v5113_v16 = vld [vmem:[#allocation2 + $0x424] sm:$0xf0]  ;;  %v5489_v57 = vld [vmem:[%s8842_s3 + $0x48] sm:$0xf0]  ;;  %v8159_v21 = vpop.f32.mrf.mxu1 }
 0x3db   :  { %v3749_v13 = vpop.f32.mrf.mxu3  ;;  %3966 = vmatmul.bf16.gmra.mxu1 %v5088_v11  ;;  %v5112_v11 = vor.u32 %v5665_v8, %v5111_v33  ;;  %v5492_v23 = vor.u32 %v5757_v48, %v5489_v57 }
 0x3dc   :  { %v8141_v46 = vadd.f32 %v3749_v13, %v3661_v19  ;;  %v5661_v19 = vld [vmem:[#allocation2 + $0x404] sm:$0xf] }
 0x3dd   :  { %v5116_v13 = vor.u32 %v5661_v19, %v5113_v16  ;;  %4371 = vmatpush.bf16.msrb.mxu0 %v5492_v23  ;;  %v8165_v16 = vpop.f32.mrf.mxu0 }
 0x3de   :  { %9101 = vst [vmem:[#allocation19_spill] sm:$0xff] %v8141_v46  ;;  %v3577_v46 = vadd.f32 %v7936_v12, %v7938_v20  ;;  %v5670_v20 = vld [vmem:[#allocation2 + $0x44c] sm:$0xf] }
 0x3e1   :  { %v3662_v51 = vpop.f32.mrf.mxu2 }
 0x3e2   :  { %v8147_v32 = vadd.f32 %v3662_v51, %v3574_v15  ;;  %v5120_v15 = vor.u32 %v5666_v27, %v5119_v54  ;;  %v5662_v51 = vld [vmem:[#allocation2 + $0x40c] sm:$0xf]  ;;  %v8169_v23 = vpop.f32.mrf.mxu1 }
 0x3e3   :  { %v8149_v49 = vpop.f32.mrf.mxu3  ;;  %v5674_v27 = vld [vmem:[#allocation2 + $0x468] sm:$0xf0] }
 0x3e4   :  { %9102 = vst [vmem:[#allocation20_spill] sm:$0xff] %v8149_v49  ;;  %v5124_v49 = vor.u32 %v5662_v51, %v5121_v36  ;;  %v5149_v36 = vld [vmem:[#allocation2 + $0x46c] sm:$0xf0]  ;;  %v5157_v51 = vld [vmem:[#allocation2 + $0x474] sm:$0xf0] }
 0x3e6   :  { %3704 = vmatmul.bf16.gmra.mxu2 %v5112_v11  ;;  %v3579_v11 = vadd.f32 %v7942_v0, %v7940_v61  ;;  %v5671_v61 = vld [vmem:[#allocation2 + $0x454] sm:$0xf]  ;;  %v3582_v0 = vadd.f32 %v7946_v50, %v7944_v39  ;;  %v3584_v50 = vadd.f32 %v7950_v3, %v7948_v42  ;;  %v3587_v42 = vadd.f32 %v7957_v60, %v7955_v18 }
 0x3e7   :  { %v3592_v18 = vadd.f32 %v7967_v25, %v7961_v58  ;;  %v5559_v58 = vld [vmem:[#allocation2 + $0xd0] sm:$0xf0] }
 0x3e8   :  { %3793 = vmatmul.bf16.gmra.mxu3 %v5116_v13 }
 0x3e9   :  { %v3665_v8 = vpop.f32.mrf.mxu2 }
 0x3ea   :  { %3882 = vmatmul.bf16.gmra.mxu0 %v5120_v15  ;;  %v3666_v33 = vadd.f32 %v3665_v8, %v3577_v46  ;;  %v5147_v46 = vld [vmem:[#allocation2 + $0x448] sm:$0xf]  ;;  %v5152_v15 = vor.u32 %v5670_v20, %v5149_v36  ;;  %v5675_v8 = vld [vmem:[#allocation2 + $0x470] sm:$0xf0]  ;;  %v5479_v20 = vld [vmem:[%s8842_s3 + $0x30] sm:$0xf] }
 0x3eb   :  { %v3754_v48 = vpop.f32.mrf.mxu3  ;;  %3971 = vmatmul.bf16.gmra.mxu1 %v5124_v49  ;;  %v5148_v54 = vor.u32 %v5674_v27, %v5147_v46  ;;  %v5155_v49 = vld [vmem:[#allocation2 + $0x450] sm:$0xf]  ;;  %v5756_v36 = vld [vmem:[%s8842_s3 + $0x34] sm:$0xf0] }
 0x3ec   :  { %v8163_v57 = vadd.f32 %v3754_v48, %v3666_v33  ;;  %v5156_v33 = vor.u32 %v5675_v8, %v5155_v49  ;;  %v5160_v48 = vor.u32 %v5671_v61, %v5157_v51  ;;  %v5480_v39 = vor.u32 %v5756_v36, %v5479_v20  ;;  %v5541_v49 = vld [vmem:[#allocation2 + $0x40] sm:$0xf0]  ;;  %v4623_v8 = vld [vmem:[#allocation2 + $0x20] sm:$0xf] }
 0x3ed   :  { %v4624_v61 = vor.u32 %v5541_v49, %v4623_v8  ;;  %v3589_v20 = vadd.f32 %v7963_v53, %v7959_v1  ;;  %v4659_v49 = vld [vmem:[#allocation2 + $0x68] sm:$0xf] }
 0x3ee   :  { %9103 = vst [vmem:[#allocation21_spill] sm:$0xff] %v8163_v57  ;;  %4283 = vmatpush.bf16.msrb.mxu3 %v5480_v39  ;;  %v5550_v39 = vld [vmem:[#allocation2 + $0x88] sm:$0xf0]  ;;  %v5754_v1 = vld [vmem:[%s8842_s3 + $0x24] sm:$0xf0] }
 0x3ef   :  { %v4660_v8 = vor.u32 %v5550_v39, %v4659_v49 }
 0x3f1   :  { %v3667_v19 = vpop.f32.mrf.mxu2 }
 0x3f2   :  { %v8171_v13 = vadd.f32 %v3667_v19, %v3579_v11  ;;  %v8177_v19 = vpop.f32.mrf.mxu0 }
 0x3f3   :  { %v8173_v12 = vpop.f32.mrf.mxu3 }
 0x3f4   :  { %9104 = vst [vmem:[#allocation22_spill] sm:$0xff] %v8173_v12  ;;  %v8179_v12 = vpop.f32.mrf.mxu1 }
 0x3f6   :  { %3709 = vmatmul.bf16.gmra.mxu2 %v5148_v54 }
 0x3f8   :  { %3798 = vmatmul.bf16.gmra.mxu3 %v5152_v15 }
 0x3f9   :  { %v3670_v11 = vpop.f32.mrf.mxu2 }
 0x3fa   :  { %3887 = vmatmul.bf16.gmra.mxu0 %v5156_v33  ;;  %v3671_v57 = vadd.f32 %v3670_v11, %v3582_v0  ;;  %v5755_v33 = vld [vmem:[%s8842_s3 + $0x34] sm:$0xf] }
 0x3fb   :  { %v3759_v27 = vpop.f32.mrf.mxu3  ;;  %3976 = vmatmul.bf16.gmra.mxu1 %v5160_v48 }
 0x3fc   :  { %v8187_v46 = vadd.f32 %v3759_v27, %v3671_v57  ;;  %v5481_v57 = vld [vmem:[%s8842_s3 + $0x38] sm:$0xf0] }
 0x3fd   :  { %v5484_v0 = vor.u32 %v5755_v33, %v5481_v57 }
 0x3ff   :  { %4372 = vmatpush.bf16.msrb.mxu0 %v5484_v0 }
 0x401   :  { %v3672_v54 = vpop.f32.mrf.mxu2 }
 0x402   :  { %v8191_v15 = vadd.f32 %v3672_v54, %v3584_v50 }
 0x403   :  { %v8193_v51 = vpop.f32.mrf.mxu3 }
 0x406   :  { %3990 = vmatmul.bf16.vlgmr.msrb.gmra.mxu2 %v4624_v61  ;;  %v5471_v61 = vld [vmem:[%s8842_s3 + $0x20] sm:$0xf] }
 0x407   :  { %v5472_v0 = vor.u32 %v5754_v1, %v5471_v61 }
 0x409   :  { %v3675_v3 = vpop.f32.mrf.mxu2  ;;  %4284 = vmatpush.bf16.msrb.mxu3 %v5472_v0 }
 0x40a   :  { %v3676_v48 = vadd.f32 %v3675_v3, %v3587_v42  ;;  %v3594_v42 = vadd.f32 %v7974_v6, %v7965_v22  ;;  %v8233_v22 = vpop.f32.mrf.mxu0  ;;  %v3597_v6 = vadd.f32 %v7978_v10, %v7972_v24  ;;  %v9113_v24 = vld [vmem:[#allocation3_spill] sm:$0xff] }
 0x40b   :  { %v3764_v11 = vpop.f32.mrf.mxu3  ;;  %v9114_v10 = vld [vmem:[#allocation7_spill] sm:$0xff] }
 0x40c   :  { %v8203_v27 = vadd.f32 %v3764_v11, %v3676_v48  ;;  %v4695_v11 = vld [vmem:[#allocation2 + $0xb0] sm:$0xf] }
 0x40d   :  { %v4696_v39 = vor.u32 %v5559_v58, %v4695_v11  ;;  %v4731_v11 = vld [vmem:[#allocation2 + $0xf8] sm:$0xf] }
 0x40e   :  { %9105 = vst [vmem:[#allocation23_spill] sm:$0xff] %v8203_v27 }
 0x411   :  { %v3677_v36 = vpop.f32.mrf.mxu2 }
 0x412   :  { %v8207_v50 = vadd.f32 %v3677_v36, %v3589_v20  ;;  %v5753_v20 = vld [vmem:[%s8842_s3 + $0x24] sm:$0xf]  ;;  %v5473_v36 = vld [vmem:[%s8842_s3 + $0x28] sm:$0xf0]  ;;  %v8241_v1 = vpop.f32.mrf.mxu0 }
 0x413   :  { %v8209_v54 = vpop.f32.mrf.mxu3  ;;  %v5476_v49 = vor.u32 %v5753_v20, %v5473_v36  ;;  %v3602_v36 = vadd.f32 %v9114_v10, %v9113_v24 }
 0x415   :  { %4373 = vmatpush.bf16.msrb.mxu0 %v5476_v49 }
 0x416   :  { %3995 = vmatmul.bf16.gmra.mxu2 %v4660_v8 }
 0x419   :  { %v3680_v60 = vpop.f32.mrf.mxu2 }
 0x41a   :  { %v3681_v33 = vadd.f32 %v3680_v60, %v3592_v18 }
 0x41b   :  { %v3769_v57 = vpop.f32.mrf.mxu3 }
 0x41c   :  { %v8219_v53 = vadd.f32 %v3769_v57, %v3681_v33  ;;  %v9110_v57 = vld [vmem:[#allocation5_spill] sm:$0xff] }
 0x41d   :  { %v3599_v61 = vadd.f32 %v9110_v57, %v7976_v43  ;;  %v5463_v43 = vld [vmem:[%s8842_s3 + $0x10] sm:$0xf] }
 0x41e   :  { %9106 = vst [vmem:[#allocation24_spill] sm:$0xff] %v8219_v53 }
 0x421   :  { %v3682_v3 = vpop.f32.mrf.mxu2 }
 0x422   :  { %v8223_v25 = vadd.f32 %v3682_v3, %v3594_v42  ;;  %v5568_v42 = vld [vmem:[#allocation2 + $0x118] sm:$0xf0] }
 0x423   :  { %v8225_v48 = vpop.f32.mrf.mxu3  ;;  %v4732_v20 = vor.u32 %v5568_v42, %v4731_v11 }
 0x424   :  { %9107 = vst [vmem:[#allocation25_spill] sm:$0xff] %v8223_v25  ;;  %v5604_v25 = vld [vmem:[#allocation2 + $0x238] sm:$0xf0] }
 0x425   :  { %9108 = vst [vmem:[#allocation26_spill] sm:$0xff] %v8225_v48 }
 0x426   :  { %4000 = vmatmul.bf16.gmra.mxu2 %v4696_v39 }
 0x429   :  { %v3685_v8 = vpop.f32.mrf.mxu2 }
 0x42a   :  { %v3686_v18 = vadd.f32 %v3685_v8, %v3597_v6  ;;  %v8249_v6 = vpop.f32.mrf.mxu0 }
 0x42b   :  { %v3774_v60 = vpop.f32.mrf.mxu3 }
 0x42c   :  { %v8237_v33 = vadd.f32 %v3774_v60, %v3686_v18  ;;  %v5752_v18 = vld [vmem:[%s8842_s3 + $0x14] sm:$0xf0] }
 0x42d   :  { %v5464_v57 = vor.u32 %v5752_v18, %v5463_v43 }
 0x42e   :  { %9109 = vst [vmem:[#allocation27_spill] sm:$0xff] %v8237_v33  ;;  %v9123_v33 = vld [vmem:[#allocation8_spill] sm:$0xff] }
 0x42f   :  { %4285 = vmatpush.bf16.msrb.mxu3 %v5464_v57  ;;  %v9120_v57 = vld [vmem:[#allocation6_spill] sm:$0xff] }
 0x431   :  { %v3687_v0 = vpop.f32.mrf.mxu2 }
 0x432   :  { %v8243_v3 = vadd.f32 %v3687_v0, %v3599_v61  ;;  %v9116_v61 = vld [vmem:[#allocation4_spill] sm:$0xff]  ;;  %v9117_v0 = vld [vmem:[#allocation9_spill] sm:$0xff]  ;;  %v8271_v18 = vpop.f32.mrf.mxu0 }
 0x433   :  { %v8245_v58 = vpop.f32.mrf.mxu3  ;;  %v3604_v42 = vadd.f32 %v9117_v0, %v9116_v61  ;;  %v9121_v61 = vld [vmem:[#allocation11_spill] sm:$0xff] }
 0x434   :  { %9111 = vst [vmem:[#allocation5_spill] sm:$0xff] %v8243_v3  ;;  %v3607_v0 = vadd.f32 %v9121_v61, %v9120_v57  ;;  %v9128_v57 = vld [vmem:[#allocation16_spill] sm:$0xff] }
 0x435   :  { %9112 = vst [vmem:[#allocation28_spill] sm:$0xff] %v8245_v58  ;;  %v9124_v58 = vld [vmem:[#allocation14_spill] sm:$0xff] }
 0x436   :  { %4005 = vmatmul.bf16.gmra.mxu2 %v4732_v20  ;;  %v5577_v20 = vld [vmem:[#allocation2 + $0x160] sm:$0xf0]  ;;  %v3609_v3 = vadd.f32 %v9124_v58, %v9123_v33  ;;  %v5455_v33 = vld [vmem:[%s8842_s3] sm:$0xf] }
 0x439   :  { %v3690_v39 = vpop.f32.mrf.mxu2 }
 0x43a   :  { %v3691_v49 = vadd.f32 %v3690_v39, %v3602_v36  ;;  %v4767_v36 = vld [vmem:[#allocation2 + $0x140] sm:$0xf]  ;;  %v5751_v39 = vld [vmem:[%s8842_s3 + $0x14] sm:$0xf] }
 0x43b   :  { %v3779_v8 = vpop.f32.mrf.mxu3 }
 0x43c   :  { %v8257_v60 = vadd.f32 %v3779_v8, %v3691_v49  ;;  %v5465_v49 = vld [vmem:[%s8842_s3 + $0x18] sm:$0xf0]  ;;  %v4768_v8 = vor.u32 %v5577_v20, %v4767_v36  ;;  %v5586_v20 = vld [vmem:[#allocation2 + $0x1a8] sm:$0xf0] }
 0x43d   :  { %v5468_v43 = vor.u32 %v5751_v39, %v5465_v49  ;;  %v4803_v49 = vld [vmem:[#allocation2 + $0x188] sm:$0xf] }
 0x43e   :  { %9115 = vst [vmem:[#allocation3_spill] sm:$0xff] %v8257_v60 }
 0x43f   :  { %4374 = vmatpush.bf16.msrb.mxu0 %v5468_v43  ;;  %v9127_v43 = vld [vmem:[#allocation10_spill] sm:$0xff] }
 0x440   :  { %v3612_v61 = vadd.f32 %v9128_v57, %v9127_v43  ;;  %v5595_v57 = vld [vmem:[#allocation2 + $0x1f0] sm:$0xf0] }
 0x441   :  { %v3692_v11 = vpop.f32.mrf.mxu2 }
 0x442   :  { %v8261_v24 = vadd.f32 %v3692_v11, %v3604_v42 }
 0x443   :  { %v8263_v10 = vpop.f32.mrf.mxu3 }
 0x444   :  { %9118 = vst [vmem:[#allocation7_spill] sm:$0xff] %v8261_v24  ;;  %v8277_v24 = vpop.f32.mrf.mxu0 }
 0x445   :  { %9119 = vst [vmem:[#allocation4_spill] sm:$0xff] %v8263_v10 }
 0x446   :  { %4010 = vmatmul.bf16.gmra.mxu2 %v4768_v8  ;;  %v4804_v8 = vor.u32 %v5586_v20, %v4803_v49  ;;  %v9130_v20 = vld [vmem:[#allocation12_spill] sm:$0xff]  ;;  %v9131_v49 = vld [vmem:[#allocation18_spill] sm:$0xff] }
 0x449   :  { %v3695_v42 = vpop.f32.mrf.mxu2 }
 0x44a   :  { %v3696_v11 = vadd.f32 %v3695_v42, %v3607_v0 }
 0x44b   :  { %v3784_v60 = vpop.f32.mrf.mxu3 }
 0x44c   :  { %v8275_v10 = vadd.f32 %v3784_v60, %v3696_v11  ;;  %v8287_v0 = vpop.f32.mrf.mxu0 }
 0x44e   :  { %9122 = vst [vmem:[#allocation9_spill] sm:$0xff] %v8275_v10 }
 0x451   :  { %v3697_v53 = vpop.f32.mrf.mxu2 }
 0x452   :  { %v8281_v36 = vadd.f32 %v3697_v53, %v3609_v3  ;;  %v5750_v53 = vld [vmem:[%s8842_s3 + $0x4] sm:$0xf0] }
 0x453   :  { %v8283_v39 = vpop.f32.mrf.mxu3  ;;  %v5456_v58 = vor.u32 %v5750_v53, %v5455_v33  ;;  %v9134_v53 = vld [vmem:[#allocation13_spill] sm:$0xff] }
 0x454   :  { %9125 = vst [vmem:[#allocation6_spill] sm:$0xff] %v8281_v36  ;;  %v5749_v36 = vld [vmem:[%s8842_s3 + $0x4] sm:$0xf] }
 0x455   :  { %9126 = vst [vmem:[#allocation11_spill] sm:$0xff] %v8283_v39  ;;  %4286 = vmatpush.bf16.msrb.mxu3 %v5456_v58  ;;  %v4839_v39 = vld [vmem:[#allocation2 + $0x1d0] sm:$0xf]  ;;  %v3617_v58 = vadd.f32 %v8039_v56, %v9134_v53 }
 0x456   :  { %4015 = vmatmul.bf16.gmra.mxu2 %v4804_v8  ;;  %v3614_v8 = vadd.f32 %v9131_v49, %v9130_v20 }
 0x459   :  { %v3700_v60 = vpop.f32.mrf.mxu2 }
 0x45a   :  { %v3701_v42 = vadd.f32 %v3700_v60, %v3612_v61  ;;  %v8301_v61 = vpop.f32.mrf.mxu0 }
 0x45b   :  { %v3789_v11 = vpop.f32.mrf.mxu3 }
 0x45c   :  { %v8295_v3 = vadd.f32 %v3789_v11, %v3701_v42  ;;  %v5457_v42 = vld [vmem:[%s8842_s3 + $0x8] sm:$0xf0]  ;;  %v4840_v11 = vor.u32 %v5595_v57, %v4839_v39  ;;  %v4875_v39 = vld [vmem:[#allocation2 + $0x218] sm:$0xf] }
 0x45d   :  { %v5460_v33 = vor.u32 %v5749_v36, %v5457_v42  ;;  %v4876_v57 = vor.u32 %v5604_v25, %v4875_v39  ;;  %v9136_v42 = vld [vmem:[#allocation17_spill] sm:$0xff]  ;;  %v4911_v25 = vld [vmem:[#allocation2 + $0x260] sm:$0xf] }
 0x45e   :  { %9129 = vst [vmem:[#allocation8_spill] sm:$0xff] %v8295_v3 }
 0x45f   :  { %4375 = vmatpush.bf16.msrb.mxu0 %v5460_v33 }
 0x461   :  { %v3702_v43 = vpop.f32.mrf.mxu2 }
 0x462   :  { %v8299_v10 = vadd.f32 %v3702_v43, %v3614_v8  ;;  %v8315_v3 = vpop.f32.mrf.mxu0 }
 0x463   :  { %v8303_v60 = vpop.f32.mrf.mxu3 }
 0x464   :  { %9132 = vst [vmem:[#allocation14_spill] sm:$0xff] %v8299_v10 }
 0x465   :  { %9133 = vst [vmem:[#allocation10_spill] sm:$0xff] %v8303_v60  ;;  %v9135_v60 = vld [vmem:[#allocation15_spill] sm:$0xff] }
 0x466   :  { %4020 = vmatmul.bf16.gmra.mxu2 %v4840_v11  ;;  %v3619_v10 = vadd.f32 %v8045_v63, %v9135_v60  ;;  %v3622_v11 = vadd.f32 %v8059_v35, %v9136_v42  ;;  %v3624_v63 = vadd.f32 %v8071_v26, %v8030_v62  ;;  %v5613_v60 = vld [vmem:[#allocation2 + $0x280] sm:$0xf0]  ;;  %v3814_v35 = vadd.f32 %v8080_v17, %v8037_v2  ;;  %v8345_v17 = vpop.f32.mrf.mxu1 }
 0x467   :  { %v3816_v42 = vadd.f32 %v8096_v55, %v8043_v41  ;;  %v3821_v55 = vadd.f32 %v8123_v37, %v8067_v7  ;;  %v3826_v37 = vadd.f32 %v8157_v38, %v8082_v14  ;;  %v3831_v38 = vadd.f32 %v8177_v19, %v8108_v4 }
 0x468   :  { %v3903_v62 = vadd.f32 %v8084_v52, %v3814_v35  ;;  %v3819_v52 = vadd.f32 %v8110_v59, %v8055_v31  ;;  %v3747_v4 = vadd.f32 %v8129_v28, %v8125_v45 }
 0x469   :  { %v3705_v20 = vpop.f32.mrf.mxu2 }
 0x46a   :  { %v3706_v49 = vadd.f32 %v3705_v20, %v3617_v58  ;;  %v8323_v56 = vpop.f32.mrf.mxu0 }
 0x46b   :  { %v3794_v8 = vpop.f32.mrf.mxu3 }
 0x46c   :  { %v8313_v43 = vadd.f32 %v3794_v8, %v3706_v49  ;;  %v4912_v8 = vor.u32 %v5613_v60, %v4911_v25 }
 0x471   :  { %v3707_v48 = vpop.f32.mrf.mxu2 }
 0x472   :  { %v8319_v27 = vadd.f32 %v3707_v48, %v3619_v10  ;;  %v8331_v48 = vpop.f32.mrf.mxu0 }
 0x473   :  { %v8321_v36 = vpop.f32.mrf.mxu3 }
 0x476   :  { %4025 = vmatmul.bf16.gmra.mxu2 %v4876_v57 }
 0x479   :  { %v3710_v33 = vpop.f32.mrf.mxu2 }
 0x47a   :  { %v3711_v53 = vadd.f32 %v3710_v33, %v3622_v11  ;;  %v8337_v57 = vpop.f32.mrf.mxu0  ;;  %v3905_v11 = vadd.f32 %v8098_v47, %v3816_v42  ;;  %v3908_v47 = vadd.f32 %v8114_v44, %v3819_v52  ;;  %v3910_v42 = vadd.f32 %v8127_v9, %v3821_v55  ;;  %v5640_v52 = vld [vmem:[#allocation2 + $0x358] sm:$0xf0] }
 0x47b   :  { %v3799_v58 = vpop.f32.mrf.mxu3  ;;  %v3824_v44 = vadd.f32 %v8139_v5, %v8076_v29 }
 0x47c   :  { %v8327_v20 = vadd.f32 %v3799_v58, %v3711_v53  ;;  %v5622_v53 = vld [vmem:[#allocation2 + $0x2c8] sm:$0xf0] }
 0x481   :  { %v3712_v10 = vpop.f32.mrf.mxu2 }
 0x482   :  { %v8333_v49 = vadd.f32 %v3712_v10, %v3624_v63  ;;  %v4947_v63 = vld [vmem:[#allocation2 + $0x2a8] sm:$0xf] }
 0x483   :  { %v4948_v25 = vor.u32 %v5622_v53, %v4947_v63  ;;  %v4983_v53 = vld [vmem:[#allocation2 + $0x2f0] sm:$0xf] }
 0x486   :  { %4030 = vmatmul.bf16.gmra.mxu2 %v4912_v8  ;;  %v8343_v8 = vpop.f32.mrf.mxu0 }
 0x489   :  { %v3991_v39 = vpop.f32.mrf.mxu2 }
 0x48a   :  { %v3992_v26 = vadd.f32 %v3991_v39, %v3903_v62 }
 0x48c   :  { %v4071_v10 = vmax.f32 %v3992_v26, 0.0  ;;  %v5631_v26 = vld [vmem:[#allocation2 + $0x310] sm:$0xf0] }
 0x48e   :  { %v8352_v39 = vpop.f32.mrf.mxu0 }
 0x491   :  { %v3993_v33 = vpop.f32.mrf.mxu2 }
 0x492   :  { %v3994_v58 = vadd.f32 %v3993_v33, %v3905_v11  ;;  %v3924_v33 = vpop.f32.mrf.mxu1 }
 0x494   :  { %v4072_v60 = vmax.f32 %v3994_v58, 0.0 }
 0x496   :  { %v4103_v2 = vpack.c.bf16 %v4072_v60, %v4071_v10  ;;  %4035 = vmatmul.bf16.gmra.mxu2 %v4948_v25  ;;  %v4984_v10 = vor.u32 %v5631_v26, %v4983_v53  ;;  %v8355_v7 = vpop.f32.mrf.mxu0  ;;  %v3913_v60 = vadd.f32 %v8143_v40, %v3824_v44  ;;  %v3829_v40 = vadd.f32 %v8165_v16, %v8094_v30  ;;  %v5055_v44 = vld [vmem:[#allocation2 + $0x380] sm:$0xf] }
 0x498   :  { %4287 = vmatmul.bf16.vlgmr.msrb.gmra.mxu3 %v4103_v2  ;;  %4376 = vmatmul.bf16.vlgmr.msrb.gmra.mxu0 %v4103_v2  ;;  %v3915_v2 = vadd.f32 %v8159_v21, %v3826_v37 }
 0x499   :  { %v3996_v41 = vpop.f32.mrf.mxu2 }
 0x49a   :  { %v3997_v35 = vadd.f32 %v3996_v41, %v3908_v47  ;;  %v8361_v9 = vpop.f32.mrf.mxu1 }
 0x49c   :  { %v4073_v58 = vmax.f32 %v3997_v35, 0.0  ;;  %v5019_v35 = vld [vmem:[#allocation2 + $0x338] sm:$0xf] }
 0x49d   :  { %v5020_v26 = vor.u32 %v5640_v52, %v5019_v35 }
 0x49e   :  { %v8365_v47 = vpop.f32.mrf.mxu0 }
 0x4a1   :  { %v3998_v62 = vpop.f32.mrf.mxu2 }
 0x4a2   :  { %v3999_v11 = vadd.f32 %v3998_v62, %v3910_v42  ;;  %v3929_v5 = vpop.f32.mrf.mxu1 }
 0x4a4   :  { %v4074_v63 = vmax.f32 %v3999_v11, 0.0  ;;  %v3918_v11 = vadd.f32 %v8169_v23, %v3829_v40 }
 0x4a6   :  { %4040 = vmatmul.bf16.gmra.mxu2 %v4984_v10  ;;  %v4104_v31 = vpack.c.bf16 %v4074_v63, %v4073_v58  ;;  %v8371_v21 = vpop.f32.mrf.mxu0  ;;  %v3920_v58 = vadd.f32 %v8179_v12, %v3831_v38  ;;  %v3834_v12 = vadd.f32 %v8233_v22, %v8119_v34  ;;  %v9137_v34 = vld [vmem:[#allocation20_spill] sm:$0xff] }
 0x4a7   :  { %v3752_v22 = vadd.f32 %v9137_v34, %v8147_v32 }
 0x4a8   :  { %4292 = vmatmul.bf16.gmra.mxu3 %v4104_v31  ;;  %4381 = vmatmul.bf16.gmra.mxu0 %v4104_v31  ;;  %v5649_v31 = vld [vmem:[#allocation2 + $0x3a0] sm:$0xf0] }
 0x4a9   :  { %v4001_v59 = vpop.f32.mrf.mxu2 }
 0x4aa   :  { %v4002_v25 = vadd.f32 %v4001_v59, %v3913_v60  ;;  %v3932_v63 = vpop.f32.mrf.mxu1 }
 0x4ac   :  { %v4075_v42 = vmax.f32 %v4002_v25, 0.0  ;;  %v5056_v25 = vor.u32 %v5649_v31, %v5055_v44 }
 0x4ae   :  { %v8375_v16 = vpop.f32.mrf.mxu0 }
 0x4b1   :  { %v4003_v41 = vpop.f32.mrf.mxu2 }
 0x4b2   :  { %v4004_v55 = vadd.f32 %v4003_v41, %v3915_v2  ;;  %v3934_v19 = vpop.f32.mrf.mxu1  ;;  %v3836_v2 = vadd.f32 %v8241_v1, %v3747_v4  ;;  %v3923_v41 = vadd.f32 %v8345_v17, %v3834_v12  ;;  %v9138_v17 = vld [vmem:[#allocation19_spill] sm:$0xff] }
 0x4b4   :  { %v4076_v62 = vmax.f32 %v4004_v55, 0.0  ;;  %v3925_v55 = vadd.f32 %v3924_v33, %v3836_v2  ;;  %v3839_v33 = vadd.f32 %v8249_v6, %v9138_v17  ;;  %v9139_v6 = vld [vmem:[#allocation22_spill] sm:$0xff] }
 0x4b5   :  { %v3757_v2 = vadd.f32 %v9139_v6, %v8171_v13 }
 0x4b6   :  { %4045 = vmatmul.bf16.gmra.mxu2 %v5020_v26  ;;  %v4105_v29 = vpack.c.bf16 %v4076_v62, %v4075_v42  ;;  %v8383_v35 = vpop.f32.mrf.mxu0  ;;  %v5658_v62 = vld [vmem:[#allocation2 + $0x3e8] sm:$0xf0] }
 0x4b8   :  { %4297 = vmatmul.bf16.gmra.mxu3 %v4105_v29  ;;  %4386 = vmatmul.bf16.gmra.mxu0 %v4105_v29  ;;  %v5091_v29 = vld [vmem:[#allocation2 + $0x3c8] sm:$0xf] }
 0x4b9   :  { %v4006_v14 = vpop.f32.mrf.mxu2 }
 0x4ba   :  { %v4007_v53 = vadd.f32 %v4006_v14, %v3918_v11  ;;  %v5092_v14 = vor.u32 %v5658_v62, %v5091_v29  ;;  %v3937_v40 = vpop.f32.mrf.mxu1 }
 0x4bc   :  { %v4077_v37 = vmax.f32 %v4007_v53, 0.0  ;;  %v3841_v53 = vadd.f32 %v8271_v18, %v3752_v22 }
 0x4be   :  { %v8389_v11 = vpop.f32.mrf.mxu0 }
 0x4c1   :  { %v4008_v10 = vpop.f32.mrf.mxu2 }
 0x4c2   :  { %v4009_v59 = vadd.f32 %v4008_v10, %v3920_v58  ;;  %v3928_v58 = vadd.f32 %v8361_v9, %v3839_v33  ;;  %v3939_v10 = vpop.f32.mrf.mxu1 }
 0x4c4   :  { %v4078_v60 = vmax.f32 %v4009_v59, 0.0  ;;  %v3930_v59 = vadd.f32 %v3929_v5, %v3841_v53 }
 0x4c6   :  { %4050 = vmatmul.bf16.gmra.mxu2 %v5056_v25  ;;  %v4106_v30 = vpack.c.bf16 %v4078_v60, %v4077_v37  ;;  %v5127_v37 = vld [vmem:[#allocation2 + $0x410] sm:$0xf]  ;;  %v5667_v60 = vld [vmem:[#allocation2 + $0x430] sm:$0xf0] }
 0x4c7   :  { %v5128_v4 = vor.u32 %v5667_v60, %v5127_v37 }
 0x4c8   :  { %4302 = vmatmul.bf16.gmra.mxu3 %v4106_v30  ;;  %4391 = vmatmul.bf16.gmra.mxu0 %v4106_v30 }
 0x4c9   :  { %v4011_v23 = vpop.f32.mrf.mxu2 }
 0x4ca   :  { %v4012_v52 = vadd.f32 %v4011_v23, %v3923_v41  ;;  %v8393_v23 = vpop.f32.mrf.mxu0  ;;  %v3942_v18 = vpop.f32.mrf.mxu1  ;;  %v9140_v41 = vld [vmem:[#allocation21_spill] sm:$0xff] }
 0x4cb   :  { %v3844_v5 = vadd.f32 %v8277_v24, %v9140_v41  ;;  %v3762_v24 = vadd.f32 %v8193_v51, %v8191_v15  ;;  %v8418_v41 = vpop.f32.mrf.mxu3 }
 0x4cc   :  { %v4079_v45 = vmax.f32 %v4012_v52, 0.0  ;;  %v3846_v52 = vadd.f32 %v8287_v0, %v3757_v2 }
 0x4cd   :  { %v3851_v17 = vadd.f32 %v8315_v3, %v3762_v24 }
 0x4d1   :  { %v4013_v42 = vpop.f32.mrf.mxu2 }
 0x4d2   :  { %v4014_v26 = vadd.f32 %v4013_v42, %v3925_v55  ;;  %v3933_v55 = vadd.f32 %v3932_v63, %v3844_v5  ;;  %v8400_v42 = vpop.f32.mrf.mxu0 }
 0x4d4   :  { %v4080_v28 = vmax.f32 %v4014_v26, 0.0  ;;  %v3935_v26 = vadd.f32 %v3934_v19, %v3846_v52  ;;  %v3849_v19 = vadd.f32 %v8301_v61, %v8187_v46  ;;  %v9141_v61 = vld [vmem:[#allocation23_spill] sm:$0xff] }
 0x4d5   :  { %v3854_v3 = vadd.f32 %v8323_v56, %v9141_v61 }
 0x4d6   :  { %v4107_v38 = vpack.c.bf16 %v4080_v28, %v4079_v45  ;;  %4055 = vmatmul.bf16.gmra.mxu2 %v5092_v14  ;;  %v5676_v45 = vld [vmem:[#allocation2 + $0x478] sm:$0xf0]  ;;  %v3944_v14 = vpop.f32.mrf.mxu1  ;;  %v3938_v53 = vadd.f32 %v3937_v40, %v3849_v19 }
 0x4d8   :  { %4307 = vmatmul.bf16.gmra.mxu3 %v4107_v38  ;;  %4396 = vmatmul.bf16.gmra.mxu0 %v4107_v38  ;;  %v5163_v38 = vld [vmem:[#allocation2 + $0x458] sm:$0xf] }
 0x4d9   :  { %v4016_v1 = vpop.f32.mrf.mxu2  ;;  %v5164_v22 = vor.u32 %v5676_v45, %v5163_v38  ;;  %v9144_v45 = vld [vmem:[#allocation24_spill] sm:$0xff] }
 0x4da   :  { %v4017_v31 = vadd.f32 %v4016_v1, %v3928_v58  ;;  %v8404_v0 = vpop.f32.mrf.mxu0 }
 0x4dc   :  { %v4081_v32 = vmax.f32 %v4017_v31, 0.0  ;;  %v3940_v31 = vadd.f32 %v3939_v10, %v3851_v17 }
 0x4de   :  { %v3947_v33 = vpop.f32.mrf.mxu1 }
 0x4e1   :  { %v4018_v44 = vpop.f32.mrf.mxu2 }
 0x4e2   :  { %v4019_v25 = vadd.f32 %v4018_v44, %v3930_v59  ;;  %v8409_v37 = vpop.f32.mrf.mxu0 }
 0x4e4   :  { %v4082_v30 = vmax.f32 %v4019_v25, 0.0 }
 0x4e6   :  { %v4108_v12 = vpack.c.bf16 %v4082_v30, %v4081_v32  ;;  %4060 = vmatmul.bf16.gmra.mxu2 %v5128_v4  ;;  %v3949_v25 = vpop.f32.mrf.mxu1  ;;  %v3767_v32 = vadd.f32 %v8209_v54, %v8207_v50  ;;  %v3943_v30 = vadd.f32 %v3942_v18, %v3854_v3  ;;  %v4136_v50 = vld [vmem:[%s8840_s0 + $0x8] sm:$0xff] }
 0x4e8   :  { %4312 = vmatmul.bf16.gmra.mxu3 %v4108_v12  ;;  %4401 = vmatmul.bf16.gmra.mxu0 %v4108_v12  ;;  %v3856_v40 = vadd.f32 %v8331_v48, %v3767_v32  ;;  %v9142_v48 = vld [vmem:[#allocation25_spill] sm:$0xff] }
 0x4e9   :  { %v4021_v9 = vpop.f32.mrf.mxu2  ;;  %v9145_v32 = vld [vmem:[#allocation5_spill] sm:$0xff] }
 0x4ea   :  { %v4022_v62 = vadd.f32 %v4021_v9, %v3933_v55  ;;  %v8416_v10 = vpop.f32.mrf.mxu0  ;;  %v3945_v12 = vadd.f32 %v3944_v14, %v3856_v40  ;;  %v4139_v40 = vld [vmem:[%s8840_s0 + $0x20] sm:$0xff] }
 0x4ec   :  { %v4083_v13 = vmax.f32 %v4022_v62, 0.0  ;;  %v9143_v62 = vld [vmem:[#allocation26_spill] sm:$0xff] }
 0x4ee   :  { %v3952_v6 = vpop.f32.mrf.mxu1 }
 0x4f1   :  { %v4023_v29 = vpop.f32.mrf.mxu2 }
 0x4f2   :  { %v4024_v28 = vadd.f32 %v4023_v29, %v3935_v26  ;;  %v3772_v26 = vadd.f32 %v9143_v62, %v9142_v48  ;;  %v4135_v29 = vld [vmem:[%s8840_s0] sm:$0xff]  ;;  %v4141_v62 = vld [vmem:[%s8840_s0 + $0x30] sm:$0xff] }
 0x4f4   :  { %v4084_v34 = vmax.f32 %v4024_v28, 0.0  ;;  %v3859_v28 = vadd.f32 %v8337_v57, %v9144_v45 }
 0x4f6   :  { %v4109_v1 = vpack.c.bf16 %v4084_v34, %v4083_v13  ;;  %4065 = vmatmul.bf16.gmra.mxu2 %v5164_v22  ;;  %v3954_v14 = vpop.f32.mrf.mxu1  ;;  %v4138_v13 = vld [vmem:[%s8840_s0 + $0x18] sm:$0xff]  ;;  %v3861_v22 = vadd.f32 %v8343_v8, %v3772_v26  ;;  %v3948_v24 = vadd.f32 %v3947_v33, %v3859_v28  ;;  %v4140_v33 = vld [vmem:[%s8840_s0 + $0x28] sm:$0xff] }
 0x4f8   :  { %4317 = vmatmul.bf16.gmra.mxu3 %v4109_v1  ;;  %4406 = vmatmul.bf16.gmra.mxu0 %v4109_v1  ;;  %v3950_v57 = vadd.f32 %v3949_v25, %v3861_v22 }
 0x4f9   :  { %v4026_v63 = vpop.f32.mrf.mxu2 }
 0x4fa   :  { %v4027_v58 = vadd.f32 %v4026_v63, %v3938_v53  ;;  %v4137_v53 = vld [vmem:[%s8840_s0 + $0x10] sm:$0xff] }
 0x4fc   :  { %v4085_v60 = vmax.f32 %v4027_v58, 0.0 }
 0x501   :  { %v4028_v59 = vpop.f32.mrf.mxu2 }
 0x502   :  { %v4029_v44 = vadd.f32 %v4028_v59, %v3940_v31 }
 0x504   :  { %v4086_v15 = vmax.f32 %v4029_v44, 0.0 }
 0x506   :  { %v4110_v51 = vpack.c.bf16 %v4086_v15, %v4085_v60  ;;  %v3957_v60 = vpop.f32.mrf.mxu1 }
 0x508   :  { %4322 = vmatmul.bf16.gmra.mxu3 %v4110_v51  ;;  %4411 = vmatmul.bf16.gmra.mxu0 %v4110_v51 }
 0x509   :  { %v4031_v46 = vpop.f32.mrf.mxu2 }
 0x50a   :  { %v4032_v4 = vadd.f32 %v4031_v46, %v3943_v30  ;;  %v9146_v46 = vld [vmem:[#allocation28_spill] sm:$0xff]  ;;  %v9147_v30 = vld [vmem:[#allocation27_spill] sm:$0xff] }
 0x50b   :  { %v3777_v61 = vadd.f32 %v9146_v46, %v9145_v32 }
 0x50c   :  { %v4087_v54 = vmax.f32 %v4032_v4, 0.0  ;;  %v3864_v4 = vadd.f32 %v8352_v39, %v9147_v30 }
 0x511   :  { %v4033_v2 = vpop.f32.mrf.mxu2 }
 0x512   :  { %v4034_v9 = vadd.f32 %v4033_v2, %v3945_v12  ;;  %v4142_v2 = vld [vmem:[%s8840_s0 + $0x38] sm:$0xff] }
 0x514   :  { %v4088_v5 = vmax.f32 %v4034_v9, 0.0 }
 0x515   :  { %v4377_v52 = vpop.f32.mrf.mxu0 }
 0x516   :  { %v4111_v56 = vpack.c.bf16 %v4088_v5, %v4087_v54  ;;  %v4378_v55 = vadd.f32 %v4377_v52, %v4136_v50  ;;  %v3866_v50 = vadd.f32 %v8355_v7, %v3777_v61  ;;  %v3953_v5 = vadd.f32 %v3952_v6, %v3864_v4  ;;  %v4144_v6 = vld [vmem:[%s8840_s0 + $0x48] sm:$0xff] }
 0x518   :  { %4458 = vst [vmem:[%s8843_s4 + $0x8] sm:$0xff] %v4378_v55  ;;  %4327 = vmatmul.bf16.gmra.mxu3 %v4111_v56  ;;  %4416 = vmatmul.bf16.gmra.mxu0 %v4111_v56  ;;  %v3959_v56 = vpop.f32.mrf.mxu1  ;;  %v3955_v39 = vadd.f32 %v3954_v14, %v3866_v50 }
 0x519   :  { %v4036_v18 = vpop.f32.mrf.mxu2 }
 0x51a   :  { %v4037_v19 = vadd.f32 %v4036_v18, %v3948_v24 }
 0x51b   :  { %v4288_v38 = vpop.f32.mrf.mxu3 }
 0x51c   :  { %v4289_v34 = vadd.f32 %v4288_v38, %v4135_v29  ;;  %v4089_v31 = vmax.f32 %v4037_v19, 0.0  ;;  %v9150_v19 = vld [vmem:[#allocation3_spill] sm:$0xff] }
 0x51d   :  { %v4379_v1 = vpop.f32.mrf.mxu0 }
 0x51e   :  { %4457 = vst [vmem:[%s8843_s4] sm:$0xff] %v4289_v34  ;;  %v4380_v63 = vadd.f32 %v4379_v1, %v4138_v13  ;;  %v9148_v13 = vld [vmem:[#allocation7_spill] sm:$0xff]  ;;  %v9149_v34 = vld [vmem:[#allocation4_spill] sm:$0xff] }
 0x51f   :  { %v3782_v22 = vadd.f32 %v9149_v34, %v9148_v13 }
 0x520   :  { %4460 = vst [vmem:[%s8843_s4 + $0x18] sm:$0xff] %v4380_v63  ;;  %v3962_v1 = vpop.f32.mrf.mxu1  ;;  %v4143_v63 = vld [vmem:[%s8840_s0 + $0x40] sm:$0xff] }
 0x521   :  { %v4038_v17 = vpop.f32.mrf.mxu2 }
 0x522   :  { %v4039_v58 = vadd.f32 %v4038_v17, %v3950_v57  ;;  %v3869_v57 = vadd.f32 %v8365_v47, %v9150_v19  ;;  %v9154_v19 = vld [vmem:[#allocation14_spill] sm:$0xff] }
 0x523   :  { %v4290_v8 = vpop.f32.mrf.mxu3 }
 0x524   :  { %v4090_v59 = vmax.f32 %v4039_v58, 0.0  ;;  %v4291_v44 = vadd.f32 %v4290_v8, %v4137_v53  ;;  %v4146_v53 = vld [vmem:[%s8840_s0 + $0x58] sm:$0xff]  ;;  %v3871_v8 = vadd.f32 %v8371_v21, %v3782_v22 }
 0x525   :  { %v4382_v15 = vpop.f32.mrf.mxu0 }
 0x526   :  { %v4112_v51 = vpack.c.bf16 %v4090_v59, %v4089_v31  ;;  %4459 = vst [vmem:[%s8843_s4 + $0x10] sm:$0xff] %v4291_v44  ;;  %v4383_v25 = vadd.f32 %v4382_v15, %v4140_v33  ;;  %v3958_v31 = vadd.f32 %v3957_v60, %v3869_v57  ;;  %v3960_v47 = vadd.f32 %v3959_v56, %v3871_v8  ;;  %v4148_v60 = vld [vmem:[%s8840_s0 + $0x68] sm:$0xff]  ;;  %v9155_v57 = vld [vmem:[#allocation10_spill] sm:$0xff] }
 0x527   :  { %v9156_v8 = vld [vmem:[#allocation8_spill] sm:$0xff] }
 0x528   :  { %4462 = vst [vmem:[%s8843_s4 + $0x28] sm:$0xff] %v4383_v25  ;;  %4332 = vmatmul.bf16.gmra.mxu3 %v4112_v51  ;;  %4421 = vmatmul.bf16.gmra.mxu0 %v4112_v51  ;;  %v4145_v51 = vld [vmem:[%s8840_s0 + $0x50] sm:$0xff]  ;;  %v3964_v21 = vpop.f32.mrf.mxu1 }
 0x529   :  { %v4041_v3 = vpop.f32.mrf.mxu2 }
 0x52a   :  { %v4042_v55 = vadd.f32 %v4041_v3, %v3953_v5  ;;  %v9153_v5 = vld [vmem:[#allocation9_spill] sm:$0xff] }
 0x52b   :  { %v4293_v12 = vpop.f32.mrf.mxu3 }
 0x52c   :  { %v4294_v9 = vadd.f32 %v4293_v12, %v4139_v40  ;;  %v4091_v18 = vmax.f32 %v4042_v55, 0.0  ;;  %v9151_v12 = vld [vmem:[#allocation6_spill] sm:$0xff] }
 0x52d   :  { %v4384_v54 = vpop.f32.mrf.mxu0  ;;  %v4150_v55 = vld [vmem:[%s8840_s0 + $0x78] sm:$0xff] }
 0x52e   :  { %4461 = vst [vmem:[%s8843_s4 + $0x20] sm:$0xff] %v4294_v9  ;;  %v4385_v52 = vadd.f32 %v4384_v54, %v4142_v2  ;;  %v9152_v2 = vld [vmem:[#allocation11_spill] sm:$0xff] }
 0x52f   :  { %v3787_v9 = vadd.f32 %v9152_v2, %v9151_v12  ;;  %v4147_v54 = vld [vmem:[%s8840_s0 + $0x60] sm:$0xff] }
 0x530   :  { %4464 = vst [vmem:[%s8843_s4 + $0x38] sm:$0xff] %v4385_v52  ;;  %v3874_v52 = vadd.f32 %v8375_v16, %v9153_v5  ;;  %v4155_v5 = vld [vmem:[%s8840_s0 + $0xa0] sm:$0xff] }
 0x531   :  { %v4043_v48 = vpop.f32.mrf.mxu2 }
 0x532   :  { %v4044_v7 = vadd.f32 %v4043_v48, %v3955_v39  ;;  %v3876_v48 = vadd.f32 %v8383_v35, %v3787_v9 }
 0x533   :  { %v4295_v26 = vpop.f32.mrf.mxu3 }
 0x534   :  { %v4092_v29 = vmax.f32 %v4044_v7, 0.0  ;;  %v4296_v45 = vadd.f32 %v4295_v26, %v4141_v62  ;;  %v3967_v62 = vpop.f32.mrf.mxu1  ;;  %v3963_v26 = vadd.f32 %v3962_v1, %v3874_v52  ;;  %v3965_v16 = vadd.f32 %v3964_v21, %v3876_v48 }
 0x535   :  { %v4387_v28 = vpop.f32.mrf.mxu0  ;;  %v3884_v52 = vadd.f32 %v8400_v42, %v8313_v43 }
 0x536   :  { %v4113_v38 = vpack.c.bf16 %v4092_v29, %v4091_v18  ;;  %4463 = vst [vmem:[%s8843_s4 + $0x30] sm:$0xff] %v4296_v45  ;;  %v4388_v14 = vadd.f32 %v4387_v28, %v4144_v6  ;;  %v4149_v45 = vld [vmem:[%s8840_s0 + $0x70] sm:$0xff] }
 0x538   :  { %4466 = vst [vmem:[%s8843_s4 + $0x48] sm:$0xff] %v4388_v14  ;;  %4337 = vmatmul.bf16.gmra.mxu3 %v4113_v38  ;;  %4426 = vmatmul.bf16.gmra.mxu0 %v4113_v38  ;;  %v4152_v38 = vld [vmem:[%s8840_s0 + $0x88] sm:$0xff] }
 0x539   :  { %v4046_v24 = vpop.f32.mrf.mxu2 }
 0x53a   :  { %v4047_v44 = vadd.f32 %v4046_v24, %v3958_v31 }
 0x53b   :  { %v4298_v17 = vpop.f32.mrf.mxu3 }
 0x53c   :  { %v4299_v58 = vadd.f32 %v4298_v17, %v4143_v63  ;;  %v4093_v46 = vmax.f32 %v4047_v44, 0.0  ;;  %v3969_v63 = vpop.f32.mrf.mxu1  ;;  %v3792_v17 = vadd.f32 %v9155_v57, %v9154_v19  ;;  %v4162_v19 = vld [vmem:[%s8840_s0 + $0xd8] sm:$0xff] }
 0x53d   :  { %v4389_v33 = vpop.f32.mrf.mxu0 }
 0x53e   :  { %4465 = vst [vmem:[%s8843_s4 + $0x40] sm:$0xff] %v4299_v58  ;;  %v4390_v59 = vadd.f32 %v4389_v33, %v4146_v53  ;;  %v4151_v58 = vld [vmem:[%s8840_s0 + $0x80] sm:$0xff]  ;;  %v3879_v33 = vadd.f32 %v8389_v11, %v9156_v8 }
 0x540   :  { %4468 = vst [vmem:[%s8843_s4 + $0x58] sm:$0xff] %v4390_v59  ;;  %v4154_v59 = vld [vmem:[%s8840_s0 + $0x98] sm:$0xff] }
 0x541   :  { %v4048_v15 = vpop.f32.mrf.mxu2 }
 0x542   :  { %v4049_v25 = vadd.f32 %v4048_v15, %v3960_v47  ;;  %v3881_v47 = vadd.f32 %v8393_v23, %v3792_v17 }
 0x543   :  { %v4300_v32 = vpop.f32.mrf.mxu3 }
 0x544   :  { %v4094_v61 = vmax.f32 %v4049_v25, 0.0  ;;  %v4301_v3 = vadd.f32 %v4300_v32, %v4145_v51  ;;  %v3968_v51 = vadd.f32 %v3967_v62, %v3879_v33  ;;  %v3970_v11 = vadd.f32 %v3969_v63, %v3881_v47  ;;  %v3972_v32 = vpop.f32.mrf.mxu1  ;;  %v4161_v33 = vld [vmem:[%s8840_s0 + $0xd0] sm:$0xff] }
 0x545   :  { %v4392_v40 = vpop.f32.mrf.mxu0  ;;  %v3973_v62 = vadd.f32 %v3972_v32, %v3884_v52 }
 0x546   :  { %v4114_v30 = vpack.c.bf16 %v4094_v61, %v4093_v46  ;;  %4467 = vst [vmem:[%s8843_s4 + $0x50] sm:$0xff] %v4301_v3  ;;  %v4393_v4 = vadd.f32 %v4392_v40, %v4148_v60  ;;  %v4153_v46 = vld [vmem:[%s8840_s0 + $0x90] sm:$0xff]  ;;  %v4156_v3 = vld [vmem:[%s8840_s0 + $0xa8] sm:$0xff] }
 0x548   :  { %4470 = vst [vmem:[%s8843_s4 + $0x68] sm:$0xff] %v4393_v4  ;;  %4342 = vmatmul.bf16.gmra.mxu3 %v4114_v30  ;;  %4431 = vmatmul.bf16.gmra.mxu0 %v4114_v30 }
 0x549   :  { %v4051_v50 = vpop.f32.mrf.mxu2 }
 0x54a   :  { %v4052_v18 = vadd.f32 %v4051_v50, %v3963_v26  ;;  %v3797_v50 = vadd.f32 %v8321_v36, %v8319_v27  ;;  %v4158_v27 = vld [vmem:[%s8840_s0 + $0xb8] sm:$0xff] }
 0x54b   :  { %v4303_v56 = vpop.f32.mrf.mxu3 }
 0x54c   :  { %v4304_v39 = vadd.f32 %v4303_v56, %v4147_v54  ;;  %v4095_v14 = vmax.f32 %v4052_v18, 0.0  ;;  %v3974_v56 = vpop.f32.mrf.mxu1 }
 0x54d   :  { %v4394_v7 = vpop.f32.mrf.mxu0 }
 0x54e   :  { %4469 = vst [vmem:[%s8843_s4 + $0x60] sm:$0xff] %v4304_v39  ;;  %v4395_v6 = vadd.f32 %v4394_v7, %v4150_v55  ;;  %v3886_v39 = vadd.f32 %v8404_v0, %v3797_v50 }
 0x550   :  { %4472 = vst [vmem:[%s8843_s4 + $0x78] sm:$0xff] %v4395_v6  ;;  %v3975_v43 = vadd.f32 %v3974_v56, %v3886_v39  ;;  %v4157_v6 = vld [vmem:[%s8840_s0 + $0xb0] sm:$0xff] }
 0x551   :  { %v4053_v29 = vpop.f32.mrf.mxu2 }
 0x552   :  { %v4054_v35 = vadd.f32 %v4053_v29, %v3965_v16  ;;  %v4160_v16 = vld [vmem:[%s8840_s0 + $0xc8] sm:$0xff] }
 0x553   :  { %v4305_v28 = vpop.f32.mrf.mxu3 }
 0x554   :  { %v4096_v13 = vmax.f32 %v4054_v35, 0.0  ;;  %v4306_v34 = vadd.f32 %v4305_v28, %v4149_v45  ;;  %v3977_v28 = vpop.f32.mrf.mxu1 }
 0x555   :  { %v4397_v22 = vpop.f32.mrf.mxu0 }
 0x556   :  { %v4115_v1 = vpack.c.bf16 %v4096_v13, %v4095_v14  ;;  %4471 = vst [vmem:[%s8843_s4 + $0x70] sm:$0xff] %v4306_v34  ;;  %v4398_v24 = vadd.f32 %v4397_v22, %v4152_v38  ;;  %v3802_v34 = vadd.f32 %v8418_v41, %v8333_v49 }
 0x558   :  { %4474 = vst [vmem:[%s8843_s4 + $0x88] sm:$0xff] %v4398_v24  ;;  %4347 = vmatmul.bf16.gmra.mxu3 %v4115_v1  ;;  %4436 = vmatmul.bf16.gmra.mxu0 %v4115_v1  ;;  %v4159_v1 = vld [vmem:[%s8840_s0 + $0xc0] sm:$0xff]  ;;  %v3889_v24 = vadd.f32 %v8409_v37, %v8327_v20  ;;  %v3891_v41 = vadd.f32 %v8416_v10, %v3802_v34 }
 0x559   :  { %v4056_v53 = vpop.f32.mrf.mxu2 }
 0x55a   :  { %v4057_v21 = vadd.f32 %v4056_v53, %v3968_v51  ;;  %v3978_v17 = vadd.f32 %v3977_v28, %v3889_v24  ;;  %v4177_v24 = vld [vmem:[%s8840_s0 + $0x150] sm:$0xff] }
 0x55b   :  { %v4308_v31 = vpop.f32.mrf.mxu3 }
 0x55c   :  { %v4309_v44 = vadd.f32 %v4308_v31, %v4151_v58  ;;  %v4097_v40 = vmax.f32 %v4057_v21, 0.0  ;;  %v3979_v58 = vpop.f32.mrf.mxu1 }
 0x55d   :  { %v4399_v15 = vpop.f32.mrf.mxu0  ;;  %v3980_v20 = vadd.f32 %v3979_v58, %v3891_v41  ;;  %v4182_v58 = vld [vmem:[%s8840_s0 + $0x178] sm:$0xff] }
 0x55e   :  { %4473 = vst [vmem:[%s8843_s4 + $0x80] sm:$0xff] %v4309_v44  ;;  %v4400_v25 = vadd.f32 %v4399_v15, %v4154_v59  ;;  %v4164_v59 = vld [vmem:[%s8840_s0 + $0xe8] sm:$0xff] }
 0x560   :  { %4476 = vst [vmem:[%s8843_s4 + $0x98] sm:$0xff] %v4400_v25 }
 0x561   :  { %v4058_v60 = vpop.f32.mrf.mxu2 }
 0x562   :  { %v4059_v23 = vadd.f32 %v4058_v60, %v3970_v11  ;;  %v4163_v11 = vld [vmem:[%s8840_s0 + $0xe0] sm:$0xff]  ;;  %v4166_v60 = vld [vmem:[%s8840_s0 + $0xf8] sm:$0xff] }
 0x563   :  { %v4310_v61 = vpop.f32.mrf.mxu3 }
 0x564   :  { %v4098_v30 = vmax.f32 %v4059_v23, 0.0  ;;  %v4311_v4 = vadd.f32 %v4310_v61, %v4153_v46 }
 0x565   :  { %v4402_v12 = vpop.f32.mrf.mxu0 }
 0x566   :  { %v4116_v2 = vpack.c.bf16 %v4098_v30, %v4097_v40  ;;  %4475 = vst [vmem:[%s8843_s4 + $0x90] sm:$0xff] %v4311_v4  ;;  %v4403_v9 = vadd.f32 %v4402_v12, %v4156_v3  ;;  %v4165_v3 = vld [vmem:[%s8840_s0 + $0xf0] sm:$0xff]  ;;  %v4168_v30 = vld [vmem:[%s8840_s0 + $0x108] sm:$0xff] }
 0x568   :  { %4478 = vst [vmem:[%s8843_s4 + $0xa8] sm:$0xff] %v4403_v9  ;;  %4352 = vmatmul.bf16.gmra.mxu3 %v4116_v2  ;;  %4441 = vmatmul.bf16.gmra.mxu0 %v4116_v2  ;;  %v4167_v9 = vld [vmem:[%s8840_s0 + $0x100] sm:$0xff] }
 0x569   :  { %v4061_v54 = vpop.f32.mrf.mxu2 }
 0x56a   :  { %v4062_v26 = vadd.f32 %v4061_v54, %v3973_v62  ;;  %v4170_v54 = vld [vmem:[%s8840_s0 + $0x118] sm:$0xff] }
 0x56b   :  { %v4313_v55 = vpop.f32.mrf.mxu3 }
 0x56c   :  { %v4314_v36 = vadd.f32 %v4313_v55, %v4155_v5  ;;  %v4099_v29 = vmax.f32 %v4062_v26, 0.0  ;;  %v4169_v55 = vld [vmem:[%s8840_s0 + $0x110] sm:$0xff] }
 0x56d   :  { %v4404_v48 = vpop.f32.mrf.mxu0 }
 0x56e   :  { %4477 = vst [vmem:[%s8843_s4 + $0xa0] sm:$0xff] %v4314_v36  ;;  %v4405_v7 = vadd.f32 %v4404_v48, %v4158_v27  ;;  %v4172_v36 = vld [vmem:[%s8840_s0 + $0x128] sm:$0xff] }
 0x570   :  { %4480 = vst [vmem:[%s8843_s4 + $0xb8] sm:$0xff] %v4405_v7  ;;  %v4171_v7 = vld [vmem:[%s8840_s0 + $0x120] sm:$0xff] }
 0x571   :  { %v4063_v42 = vpop.f32.mrf.mxu2 }
 0x572   :  { %v4064_v18 = vadd.f32 %v4063_v42, %v3975_v43  ;;  %v4174_v43 = vld [vmem:[%s8840_s0 + $0x138] sm:$0xff] }
 0x573   :  { %v4315_v0 = vpop.f32.mrf.mxu3 }
 0x574   :  { %v4100_v45 = vmax.f32 %v4064_v18, 0.0  ;;  %v4316_v35 = vadd.f32 %v4315_v0, %v4157_v6  ;;  %v4173_v0 = vld [vmem:[%s8840_s0 + $0x130] sm:$0xff] }
 0x575   :  { %v4407_v38 = vpop.f32.mrf.mxu0 }
 0x576   :  { %v4117_v14 = vpack.c.bf16 %v4100_v45, %v4099_v29  ;;  %4479 = vst [vmem:[%s8843_s4 + $0xb0] sm:$0xff] %v4316_v35  ;;  %v4408_v13 = vadd.f32 %v4407_v38, %v4160_v16  ;;  %v4176_v29 = vld [vmem:[%s8840_s0 + $0x148] sm:$0xff]  ;;  %v4175_v38 = vld [vmem:[%s8840_s0 + $0x140] sm:$0xff] }
 0x578   :  { %4482 = vst [vmem:[%s8843_s4 + $0xc8] sm:$0xff] %v4408_v13  ;;  %4357 = vmatmul.bf16.gmra.mxu3 %v4117_v14  ;;  %4446 = vmatmul.bf16.gmra.mxu0 %v4117_v14  ;;  %v4178_v13 = vld [vmem:[%s8840_s0 + $0x158] sm:$0xff] }
 0x579   :  { %v4066_v22 = vpop.f32.mrf.mxu2 }
 0x57a   :  { %v4067_v8 = vadd.f32 %v4066_v22, %v3978_v17  ;;  %v4179_v17 = vld [vmem:[%s8840_s0 + $0x160] sm:$0xff] }
 0x57b   :  { %v4318_v63 = vpop.f32.mrf.mxu3 }
 0x57c   :  { %v4319_v49 = vadd.f32 %v4318_v63, %v4159_v1  ;;  %v4101_v44 = vmax.f32 %v4067_v8, 0.0 }
 0x57d   :  { %v4409_v57 = vpop.f32.mrf.mxu0 }
 0x57e   :  { %4481 = vst [vmem:[%s8843_s4 + $0xc0] sm:$0xff] %v4319_v49  ;;  %v4410_v53 = vadd.f32 %v4409_v57, %v4162_v19  ;;  %v4180_v19 = vld [vmem:[%s8840_s0 + $0x168] sm:$0xff] }
 0x580   :  { %4484 = vst [vmem:[%s8843_s4 + $0xd8] sm:$0xff] %v4410_v53 }
 0x581   :  { %v4068_v37 = vpop.f32.mrf.mxu2 }
 0x582   :  { %v4069_v10 = vadd.f32 %v4068_v37, %v3980_v20 }
 0x583   :  { %v4320_v31 = vpop.f32.mrf.mxu3 }
 0x584   :  { %v4102_v47 = vmax.f32 %v4069_v10, 0.0  ;;  %v4321_v15 = vadd.f32 %v4320_v31, %v4161_v33  ;;  %v4181_v33 = vld [vmem:[%s8840_s0 + $0x170] sm:$0xff]  ;;  %v4184_v31 = vld [vmem:[%s8840_s0 + $0x188] sm:$0xff] }
 0x585   :  { %v4412_v51 = vpop.f32.mrf.mxu0 }
 0x586   :  { %v4118_v25 = vpack.c.bf16 %v4102_v47, %v4101_v44  ;;  %4483 = vst [vmem:[%s8843_s4 + $0xd0] sm:$0xff] %v4321_v15  ;;  %v4413_v21 = vadd.f32 %v4412_v51, %v4164_v59  ;;  %v4183_v15 = vld [vmem:[%s8840_s0 + $0x180] sm:$0xff] }
 0x588   :  { %4486 = vst [vmem:[%s8843_s4 + $0xe8] sm:$0xff] %v4413_v21  ;;  %4362 = vmatmul.bf16.gmra.mxu3 %v4118_v25  ;;  %4451 = vmatmul.bf16.gmra.mxu0 %v4118_v25  ;;  %v4186_v25 = vld [vmem:[%s8840_s0 + $0x198] sm:$0xff] }
 0x58b   :  { %v4323_v32 = vpop.f32.mrf.mxu3 }
 0x58c   :  { %v4324_v46 = vadd.f32 %v4323_v32, %v4163_v11 }
 0x58d   :  { %v4414_v23 = vpop.f32.mrf.mxu0 }
 0x58e   :  { %4485 = vst [vmem:[%s8843_s4 + $0xe0] sm:$0xff] %v4324_v46  ;;  %v4415_v61 = vadd.f32 %v4414_v23, %v4166_v60  ;;  %v4185_v60 = vld [vmem:[%s8840_s0 + $0x190] sm:$0xff]  ;;  %v4188_v23 = vld [vmem:[%s8840_s0 + $0x1a8] sm:$0xff] }
 0x590   :  { %4488 = vst [vmem:[%s8843_s4 + $0xf8] sm:$0xff] %v4415_v61 }
 0x593   :  { %v4325_v40 = vpop.f32.mrf.mxu3 }
 0x594   :  { %v4326_v4 = vadd.f32 %v4325_v40, %v4165_v3 }
 0x595   :  { %v4417_v12 = vpop.f32.mrf.mxu0 }
 0x596   :  { %4487 = vst [vmem:[%s8843_s4 + $0xf0] sm:$0xff] %v4326_v4  ;;  %v4418_v2 = vadd.f32 %v4417_v12, %v4168_v30  ;;  %v4187_v30 = vld [vmem:[%s8840_s0 + $0x1a0] sm:$0xff]  ;;  %v4190_v12 = vld [vmem:[%s8840_s0 + $0x1b8] sm:$0xff] }
 0x598   :  { %4490 = vst [vmem:[%s8843_s4 + $0x108] sm:$0xff] %v4418_v2 }
 0x59b   :  { %v4328_v50 = vpop.f32.mrf.mxu3 }
 0x59c   :  { %v4329_v5 = vadd.f32 %v4328_v50, %v4167_v9 }
 0x59d   :  { %v4419_v52 = vpop.f32.mrf.mxu0 }
 0x59e   :  { %4489 = vst [vmem:[%s8843_s4 + $0x100] sm:$0xff] %v4329_v5  ;;  %v4420_v56 = vadd.f32 %v4419_v52, %v4170_v54  ;;  %v4189_v54 = vld [vmem:[%s8840_s0 + $0x1b0] sm:$0xff]  ;;  %v4192_v52 = vld [vmem:[%s8840_s0 + $0x1c8] sm:$0xff] }
 0x5a0   :  { %4492 = vst [vmem:[%s8843_s4 + $0x118] sm:$0xff] %v4420_v56 }
 0x5a3   :  { %v4330_v27 = vpop.f32.mrf.mxu3 }
 0x5a4   :  { %v4331_v39 = vadd.f32 %v4330_v27, %v4169_v55 }
 0x5a5   :  { %v4422_v48 = vpop.f32.mrf.mxu0 }
 0x5a6   :  { %4491 = vst [vmem:[%s8843_s4 + $0x110] sm:$0xff] %v4331_v39  ;;  %v4423_v62 = vadd.f32 %v4422_v48, %v4172_v36  ;;  %v4191_v36 = vld [vmem:[%s8840_s0 + $0x1c0] sm:$0xff]  ;;  %v4194_v48 = vld [vmem:[%s8840_s0 + $0x1d8] sm:$0xff] }
 0x5a8   :  { %4494 = vst [vmem:[%s8843_s4 + $0x128] sm:$0xff] %v4423_v62 }
 0x5ab   :  { %v4333_v26 = vpop.f32.mrf.mxu3 }
 0x5ac   :  { %v4334_v42 = vadd.f32 %v4333_v26, %v4171_v7 }
 0x5ad   :  { %v4424_v6 = vpop.f32.mrf.mxu0 }
 0x5ae   :  { %4493 = vst [vmem:[%s8843_s4 + $0x120] sm:$0xff] %v4334_v42  ;;  %v4425_v18 = vadd.f32 %v4424_v6, %v4174_v43  ;;  %v4193_v43 = vld [vmem:[%s8840_s0 + $0x1d0] sm:$0xff]  ;;  %v4196_v6 = vld [vmem:[%s8840_s0 + $0x1e8] sm:$0xff] }
 0x5b0   :  { %4496 = vst [vmem:[%s8843_s4 + $0x138] sm:$0xff] %v4425_v18 }
 0x5b3   :  { %v4335_v16 = vpop.f32.mrf.mxu3 }
 0x5b4   :  { %v4336_v45 = vadd.f32 %v4335_v16, %v4173_v0 }
 0x5b5   :  { %v4427_v35 = vpop.f32.mrf.mxu0 }
 0x5b6   :  { %4495 = vst [vmem:[%s8843_s4 + $0x130] sm:$0xff] %v4336_v45  ;;  %v4428_v28 = vadd.f32 %v4427_v35, %v4176_v29  ;;  %v4195_v29 = vld [vmem:[%s8840_s0 + $0x1e0] sm:$0xff]  ;;  %v4198_v35 = vld [vmem:[%s8840_s0 + $0x1f8] sm:$0xff] }
 0x5b8   :  { %4498 = vst [vmem:[%s8843_s4 + $0x148] sm:$0xff] %v4428_v28 }
 0x5bb   :  { %v4338_v14 = vpop.f32.mrf.mxu3 }
 0x5bc   :  { %v4339_v34 = vadd.f32 %v4338_v14, %v4175_v38 }
 0x5bd   :  { %v4429_v22 = vpop.f32.mrf.mxu0 }
 0x5be   :  { %4497 = vst [vmem:[%s8843_s4 + $0x140] sm:$0xff] %v4339_v34  ;;  %v4430_v1 = vadd.f32 %v4429_v22, %v4178_v13  ;;  %v4197_v13 = vld [vmem:[%s8840_s0 + $0x1f0] sm:$0xff] }
 0x5c0   :  { %4500 = vst [vmem:[%s8843_s4 + $0x158] sm:$0xff] %v4430_v1 }
 0x5c3   :  { %v4340_v63 = vpop.f32.mrf.mxu3 }
 0x5c4   :  { %v4341_v49 = vadd.f32 %v4340_v63, %v4177_v24 }
 0x5c5   :  { %v4432_v41 = vpop.f32.mrf.mxu0 }
 0x5c6   :  { %4499 = vst [vmem:[%s8843_s4 + $0x150] sm:$0xff] %v4341_v49  ;;  %v4433_v57 = vadd.f32 %v4432_v41, %v4180_v19 }
 0x5c8   :  { %4502 = vst [vmem:[%s8843_s4 + $0x168] sm:$0xff] %v4433_v57 }
 0x5cb   :  { %v4343_v53 = vpop.f32.mrf.mxu3 }
 0x5cc   :  { %v4344_v8 = vadd.f32 %v4343_v53, %v4179_v17 }
 0x5cd   :  { %v4434_v20 = vpop.f32.mrf.mxu0 }
 0x5ce   :  { %4501 = vst [vmem:[%s8843_s4 + $0x160] sm:$0xff] %v4344_v8  ;;  %v4435_v37 = vadd.f32 %v4434_v20, %v4182_v58 }
 0x5d0   :  { %4504 = vst [vmem:[%s8843_s4 + $0x178] sm:$0xff] %v4435_v37 }
 0x5d3   :  { %v4345_v10 = vpop.f32.mrf.mxu3 }
 0x5d4   :  { %v4346_v59 = vadd.f32 %v4345_v10, %v4181_v33 }
 0x5d5   :  { %v4437_v44 = vpop.f32.mrf.mxu0 }
 0x5d6   :  { %4503 = vst [vmem:[%s8843_s4 + $0x170] sm:$0xff] %v4346_v59  ;;  %v4438_v47 = vadd.f32 %v4437_v44, %v4184_v31 }
 0x5d8   :  { %4506 = vst [vmem:[%s8843_s4 + $0x188] sm:$0xff] %v4438_v47 }
 0x5db   :  { %v4348_v51 = vpop.f32.mrf.mxu3 }
 0x5dc   :  { %v4349_v21 = vadd.f32 %v4348_v51, %v4183_v15 }
 0x5dd   :  { %v4439_v11 = vpop.f32.mrf.mxu0 }
 0x5de   :  { %4505 = vst [vmem:[%s8843_s4 + $0x180] sm:$0xff] %v4349_v21  ;;  %v4440_v32 = vadd.f32 %v4439_v11, %v4186_v25 }
 0x5e0   :  { %4508 = vst [vmem:[%s8843_s4 + $0x198] sm:$0xff] %v4440_v32 }
 0x5e3   :  { %v4350_v46 = vpop.f32.mrf.mxu3 }
 0x5e4   :  { %v4351_v61 = vadd.f32 %v4350_v46, %v4185_v60 }
 0x5e5   :  { %v4442_v3 = vpop.f32.mrf.mxu0 }
 0x5e6   :  { %4507 = vst [vmem:[%s8843_s4 + $0x190] sm:$0xff] %v4351_v61  ;;  %v4443_v40 = vadd.f32 %v4442_v3, %v4188_v23 }
 0x5e8   :  { %4510 = vst [vmem:[%s8843_s4 + $0x1a8] sm:$0xff] %v4443_v40 }
 0x5eb   :  { %v4353_v4 = vpop.f32.mrf.mxu3 }
 0x5ec   :  { %v4354_v2 = vadd.f32 %v4353_v4, %v4187_v30 }
 0x5ed   :  { %v4444_v9 = vpop.f32.mrf.mxu0 }
 0x5ee   :  { %4509 = vst [vmem:[%s8843_s4 + $0x1a0] sm:$0xff] %v4354_v2  ;;  %v4445_v50 = vadd.f32 %v4444_v9, %v4190_v12 }
 0x5f0   :  { %4512 = vst [vmem:[%s8843_s4 + $0x1b8] sm:$0xff] %v4445_v50 }
 0x5f3   :  { %v4355_v5 = vpop.f32.mrf.mxu3 }
 0x5f4   :  { %v4356_v56 = vadd.f32 %v4355_v5, %v4189_v54 }
 0x5f5   :  { %v4447_v55 = vpop.f32.mrf.mxu0 }
 0x5f6   :  { %4511 = vst [vmem:[%s8843_s4 + $0x1b0] sm:$0xff] %v4356_v56  ;;  %v4448_v27 = vadd.f32 %v4447_v55, %v4192_v52 }
 0x5f8   :  { %4514 = vst [vmem:[%s8843_s4 + $0x1c8] sm:$0xff] %v4448_v27 }
 0x5fb   :  { %v4358_v39 = vpop.f32.mrf.mxu3 }
 0x5fc   :  { %v4359_v62 = vadd.f32 %v4358_v39, %v4191_v36 }
 0x5fd   :  { %v4449_v7 = vpop.f32.mrf.mxu0 }
 0x5fe   :  { %4513 = vst [vmem:[%s8843_s4 + $0x1c0] sm:$0xff] %v4359_v62  ;;  %v4450_v26 = vadd.f32 %v4449_v7, %v4194_v48 }
 0x600   :  { %4516 = vst [vmem:[%s8843_s4 + $0x1d8] sm:$0xff] %v4450_v26 }
 0x603   :  { %v4360_v42 = vpop.f32.mrf.mxu3 }
 0x604   :  { %v4361_v18 = vadd.f32 %v4360_v42, %v4193_v43 }
 0x605   :  { %v4452_v0 = vpop.f32.mrf.mxu0 }
 0x606   :  { %4515 = vst [vmem:[%s8843_s4 + $0x1d0] sm:$0xff] %v4361_v18  ;;  %v4453_v16 = vadd.f32 %v4452_v0, %v4196_v6 }
 0x608   :  { %4518 = vst [vmem:[%s8843_s4 + $0x1e8] sm:$0xff] %v4453_v16 }
 0x60b   :  { %v4363_v45 = vpop.f32.mrf.mxu3 }
 0x60c   :  { %v4364_v28 = vadd.f32 %v4363_v45, %v4195_v29 }
 0x60d   :  { %v4454_v38 = vpop.f32.mrf.mxu0 }
 0x60e   :  { %4517 = vst [vmem:[%s8843_s4 + $0x1e0] sm:$0xff] %v4364_v28  ;;  %v4455_v14 = vadd.f32 %v4454_v38, %v4198_v35 }
 0x610   :  { %4520 = vst [vmem:[%s8843_s4 + $0x1f8] sm:$0xff] %v4455_v14 }
 0x613   :  { %v4365_v34 = vpop.f32.mrf.mxu3 }
 0x614   :  { %v4366_v22 = vadd.f32 %v4365_v34, %v4197_v13 }
 0x616   :  { %4519 = vst [vmem:[%s8843_s4 + $0x1f0] sm:$0xff] %v4366_v22 }

</bundles_post_ra>
